<compile_context>
chip_gen: v7x
topology: tpu7x:2x2x1
jax: 0.10.0
libtpu: 0.0.40
codegen_flags: <defaults>
</compile_context>

<pallas_src>
import jax
import jax.numpy as jnp
from jax.experimental import pallas as pl
from jax.experimental.pallas import tpu as pltpu

# ---- hyperparameters (small, consistent with the module's __init__) ----
N_CHANNEL_OUT = 4
N_CONV_CHANNEL_1 = 8
N_CONV_CHANNEL_2 = 16
N_CONV_CHANNEL_3 = 32
LSTM_HIDDEN = 32
N_LSTM_LAYER = 2
BATCH = 2
SEQ = 8
BN_EPS = 1e-5


# --------------------- in-kernel helper constructions ------------------------
def _upsample_matrix(l_in):
    """(2*l_in, l_in) 0/1 matrix with (U @ y)[m] = y[m // 2]  (nearest x2)."""
    r = jax.lax.broadcasted_iota(jnp.int32, (2 * l_in, l_in), 0)
    c = jax.lax.broadcasted_iota(jnp.int32, (2 * l_in, l_in), 1)
    return jnp.logical_and(2 * c <= r, r <= 2 * c + 1).astype(jnp.float32)


def _shift_matrices(l):
    """(P_prev @ y)[i] = y[i-1] (0 at i=0); (P_next @ y)[i] = y[i+1] (0 at i=l-1)."""
    r = jax.lax.broadcasted_iota(jnp.int32, (l, l), 0)
    c = jax.lax.broadcasted_iota(jnp.int32, (l, l), 1)
    p_prev = (c == r - 1).astype(jnp.float32)
    p_next = (c == r + 1).astype(jnp.float32)
    return p_prev, p_next


def _conv3_bn(y, p_prev, p_next, w_ref, b, s, t):
    """Conv1d(k=3, stride=1, padding=1) + folded eval-mode BatchNorm1d.

    y: (L, Cin) channel-last value; w_ref: (3, Cin, Cout) ref; b/s/t: (1, Cout).
    out[l] = sum_k y[l+k-1] @ w[k]  (zero-padded ends), then y*s + t.
    """
    f32 = jnp.float32
    h = (jnp.dot(jnp.dot(p_prev, y, preferred_element_type=f32), w_ref[0],
                 preferred_element_type=f32)
         + jnp.dot(y, w_ref[1], preferred_element_type=f32)
         + jnp.dot(jnp.dot(p_next, y, preferred_element_type=f32), w_ref[2],
                   preferred_element_type=f32)
         + b)
    return h * s + t


# ------------------------------ fused kernel ---------------------------------
def _decoder_kernel(x_ref, h0_ref, c0_ref, wih_ref, whh_ref, blstm_ref,
                    wlin_ref, blin_ref, *rest):
    conv_refs = rest[:-2]
    o_ref = rest[-2]
    dec_sc = rest[-1]                                # (B*T, H) VMEM scratch

    T, B, H = x_ref.shape
    n_layer = h0_ref.shape[0]
    f32 = jnp.float32

    # ---------------- LSTM (time-major, statically unrolled) -----------------
    x_all = x_ref[...]                               # (T, B, H)
    xs = [x_all[t] for t in range(T)]                # list of (B, H)
    for l in range(n_layer):
        wih = wih_ref[l]                             # (H, 4H)
        whh = whh_ref[l]                             # (H, 4H)
        bias = blstm_ref[l]                          # (1, 4H)
        # Hoisted input projection: independent of the recurrence, so these
        # matmuls overlap with the serial h-chain instead of lengthening it.
        gx = [jnp.dot(xs[t], wih, preferred_element_type=f32) + bias
              for t in range(T)]
        h = h0_ref[l]                                # (B, H)
        c = c0_ref[l]                                # (B, H)
        outs = []
        for t in range(T):                           # static unroll (T = 8)
            g = gx[t] + jnp.dot(h, whh, preferred_element_type=f32)  # (B, 4H)
            sg = jax.nn.sigmoid(g)                   # whole-tile EUP pushes,
            tg = jnp.tanh(g)                         # gates sliced afterwards
            c = sg[:, H:2 * H] * c + sg[:, 0:H] * tg[:, 2 * H:3 * H]
            h = sg[:, 3 * H:4 * H] * jnp.tanh(c)
            outs.append(h)
        xs = outs                                    # feeds the next layer

    # ------ assemble decoder input, batch-major rows (row = b*T + t) ---------
    for t in range(T):
        for b in range(B):
            dec_sc[pl.ds(b * T + t, 1), :] = xs[t][b:b + 1, :]

    # --------------------------- Linear (one matmul) -------------------------
    y_all = (jnp.dot(dec_sc[...], wlin_ref[...], preferred_element_type=f32)
             + blin_ref[...])                        # (B*T, C3)

    # ------------------- [Upsample x2 -> conv_block] x 3 ---------------------
    n_block = len(conv_refs) // 8
    ups = [_upsample_matrix(T * (2 ** k)) for k in range(n_block)]
    shifts = [_shift_matrices(T * (2 ** (k + 1))) for k in range(n_block)]

    for b in range(B):                               # B = 2, static (no grid)
        y = y_all[b * T:(b + 1) * T, :]              # (T, C3)
        for k in range(n_block):
            (w1_ref, b1_ref, s1_ref, t1_ref,
             w2_ref, b2_ref, s2_ref, t2_ref) = conv_refs[8 * k:8 * (k + 1)]
            p_prev, p_next = shifts[k]
            # nn.Upsample(scale_factor=2), nearest
            y = jnp.dot(ups[k], y, preferred_element_type=f32)
            # Conv1d -> BatchNorm1d -> ReLU
            y = _conv3_bn(y, p_prev, p_next, w1_ref,
                          b1_ref[...], s1_ref[...], t1_ref[...])
            y = jnp.maximum(y, 0.0)
            # TODO(synk): Dropout(p=0.5) is identity here (eval mode);
            # training-mode stochastic dropout is not implemented.
            # Conv1d -> BatchNorm1d (no ReLU, matching conv_block)
            y = _conv3_bn(y, p_prev, p_next, w2_ref,
                          b2_ref[...], s2_ref[...], t2_ref[...])
        o_ref[b] = y                                 # (8*T, C_out)


# --------------------------------- wrapper -----------------------------------
def conv_rec_decoder_forward(x, s, params):
    """x: (B, T, H); s = (h0, c0), each (n_lstm_layer, B, H) -> (B, 8*T, C_out)."""
    h0, c0 = s
    B, T, H = x.shape
    xt = jnp.transpose(x, (1, 0, 2))                 # time-major for the kernel
    flat_conv = [a for blk in params['conv'] for a in blk]
    return pl.pallas_call(
        _decoder_kernel,
        out_shape=jax.ShapeDtypeStruct((B, 8 * T, N_CHANNEL_OUT), jnp.float32),
        scratch_shapes=[pltpu.VMEM((B * T, H), jnp.float32)],
    )(xt, h0, c0,
      params['lstm_wih'], params['lstm_whh'], params['lstm_b'],
      params['lin_w'], params['lin_b'], *flat_conv)


# ------------------------------ parameter setup ------------------------------
def init_params(key):
    scale = 0.1
    keys = iter(jax.random.split(key, 64))
    H = LSTM_HIDDEN
    params = {}

    wih, whh, bl = [], [], []
    for _ in range(N_LSTM_LAYER):
        w_ih = scale * jax.random.normal(next(keys), (4 * H, H), jnp.float32)
        w_hh = scale * jax.random.normal(next(keys), (4 * H, H), jnp.float32)
        b_ih = scale * jax.random.normal(next(keys), (4 * H,), jnp.float32)
        b_hh = scale * jax.random.normal(next(keys), (4 * H,), jnp.float32)
        wih.append(w_ih.T)                           # (H, 4H), gates [i, f, g, o]
        whh.append(w_hh.T)
        bl.append((b_ih + b_hh).reshape(1, 4 * H))
    params['lstm_wih'] = jnp.stack(wih)              # (n_layer, H, 4H)
    params['lstm_whh'] = jnp.stack(whh)
    params['lstm_b'] = jnp.stack(bl)                 # (n_layer, 1, 4H)

    w_lin = scale * jax.random.normal(next(keys), (N_CONV_CHANNEL_3, H), jnp.float32)
    b_lin = scale * jax.random.normal(next(keys), (N_CONV_CHANNEL_3,), jnp.float32)
    params['lin_w'] = w_lin.T                        # (H, C3)
    params['lin_b'] = b_lin.reshape(1, -1)

    def bn(c):
        # Folded eval-mode BatchNorm1d: y = s*x + t (as-if-trained stats;
        # PyTorch fresh-module defaults would be running_mean=0, running_var=1).
        gamma = 1.0 + scale * jax.random.normal(next(keys), (c,), jnp.float32)
        beta = scale * jax.random.normal(next(keys), (c,), jnp.float32)
        rm = scale * jax.random.normal(next(keys), (c,), jnp.float32)
        rv = 1.0 + 0.1 * jnp.abs(jax.random.normal(next(keys), (c,), jnp.float32))
        s_ = gamma / jnp.sqrt(rv + BN_EPS)
        t_ = beta - rm * s_
        return s_.reshape(1, c), t_.reshape(1, c)

    def conv_block_params(cin, cout):
        w1 = scale * jax.random.normal(next(keys), (cout, cin, 3), jnp.float32)
        b1 = scale * jax.random.normal(next(keys), (cout,), jnp.float32)
        s1, t1 = bn(cout)
        w2 = scale * jax.random.normal(next(keys), (cout, cout, 3), jnp.float32)
        b2 = scale * jax.random.normal(next(keys), (cout,), jnp.float32)
        s2, t2 = bn(cout)
        # weights stored as (3, Cin, Cout): kernel does (shift @ x) @ w[k]
        return (jnp.transpose(w1, (2, 1, 0)), b1.reshape(1, cout), s1, t1,
                jnp.transpose(w2, (2, 1, 0)), b2.reshape(1, cout), s2, t2)

    params['conv'] = [
        conv_block_params(N_CONV_CHANNEL_3, N_CONV_CHANNEL_2),
        conv_block_params(N_CONV_CHANNEL_2, N_CONV_CHANNEL_1),
        conv_block_params(N_CONV_CHANNEL_1, N_CHANNEL_OUT),
    ]
    return params


# ----------------------------------- main -------------------------------------
if __name__ == "__main__":
    key = jax.random.PRNGKey(0)
    k_p, k_x, k_h, k_c = jax.random.split(key, 4)
    params = init_params(k_p)
    x = jax.random.normal(k_x, (BATCH, SEQ, LSTM_HIDDEN), jnp.float32)
    h0 = jax.random.normal(k_h, (N_LSTM_LAYER, BATCH, LSTM_HIDDEN), jnp.float32)
    c0 = jax.random.normal(k_c, (N_LSTM_LAYER, BATCH, LSTM_HIDDEN), jnp.float32)

    fwd = jax.jit(conv_rec_decoder_forward)
    out = fwd(x, (h0, c0), params)
    jax.block_until_ready(out)
    assert out.shape == (BATCH, SEQ * 8, N_CHANNEL_OUT), out.shape
    assert out.dtype == jnp.float32
    print("KERNEL_OK")
</pallas_src>

<mosaic_0001>
module attributes {stable_mosaic.version = 11 : i64} {
  func.func @_decoder_kernel(%arg0: memref<8x2x32xf32, #tpu.memory_space<vmem>>, %arg1: memref<2x2x32xf32, #tpu.memory_space<vmem>>, %arg2: memref<2x2x32xf32, #tpu.memory_space<vmem>>, %arg3: memref<2x32x128xf32, #tpu.memory_space<vmem>>, %arg4: memref<2x32x128xf32, #tpu.memory_space<vmem>>, %arg5: memref<2x1x128xf32, #tpu.memory_space<vmem>>, %arg6: memref<32x32xf32, #tpu.memory_space<vmem>>, %arg7: memref<1x32xf32, #tpu.memory_space<vmem>>, %arg8: memref<3x32x16xf32, #tpu.memory_space<vmem>>, %arg9: memref<1x16xf32, #tpu.memory_space<vmem>>, %arg10: memref<1x16xf32, #tpu.memory_space<vmem>>, %arg11: memref<1x16xf32, #tpu.memory_space<vmem>>, %arg12: memref<3x16x16xf32, #tpu.memory_space<vmem>>, %arg13: memref<1x16xf32, #tpu.memory_space<vmem>>, %arg14: memref<1x16xf32, #tpu.memory_space<vmem>>, %arg15: memref<1x16xf32, #tpu.memory_space<vmem>>, %arg16: memref<3x16x8xf32, #tpu.memory_space<vmem>>, %arg17: memref<1x8xf32, #tpu.memory_space<vmem>>, %arg18: memref<1x8xf32, #tpu.memory_space<vmem>>, %arg19: memref<1x8xf32, #tpu.memory_space<vmem>>, %arg20: memref<3x8x8xf32, #tpu.memory_space<vmem>>, %arg21: memref<1x8xf32, #tpu.memory_space<vmem>>, %arg22: memref<1x8xf32, #tpu.memory_space<vmem>>, %arg23: memref<1x8xf32, #tpu.memory_space<vmem>>, %arg24: memref<3x8x4xf32, #tpu.memory_space<vmem>>, %arg25: memref<1x4xf32, #tpu.memory_space<vmem>>, %arg26: memref<1x4xf32, #tpu.memory_space<vmem>>, %arg27: memref<1x4xf32, #tpu.memory_space<vmem>>, %arg28: memref<3x4x4xf32, #tpu.memory_space<vmem>>, %arg29: memref<1x4xf32, #tpu.memory_space<vmem>>, %arg30: memref<1x4xf32, #tpu.memory_space<vmem>>, %arg31: memref<1x4xf32, #tpu.memory_space<vmem>>, %arg32: memref<2x64x4xf32, #tpu.memory_space<vmem>>, %arg33: memref<16x32xf32, #tpu.memory_space<vmem>>) attributes {dimension_semantics = [], scalar_prefetch = 0 : i64, scratch_operands = 1 : i64, tpu.core_type = #tpu.core_type<tc>} {
    %c0 = arith.constant 0 : index
    %c0_0 = arith.constant 0 : index
    %c0_1 = arith.constant 0 : index
    %0 = vector.load %arg0[%c0, %c0_0, %c0_1] : memref<8x2x32xf32, #tpu.memory_space<vmem>>, vector<8x2x32xf32>
    %1 = vector.extract_strided_slice %0 {offsets = [0, 0, 0], sizes = [1, 2, 32], strides = [1, 1, 1]} : vector<8x2x32xf32> to vector<1x2x32xf32>
    %2 = vector.shape_cast %1 : vector<1x2x32xf32> to vector<2x32xf32>
    %3 = vector.extract_strided_slice %0 {offsets = [1, 0, 0], sizes = [1, 2, 32], strides = [1, 1, 1]} : vector<8x2x32xf32> to vector<1x2x32xf32>
    %4 = vector.shape_cast %3 : vector<1x2x32xf32> to vector<2x32xf32>
    %5 = vector.extract_strided_slice %0 {offsets = [2, 0, 0], sizes = [1, 2, 32], strides = [1, 1, 1]} : vector<8x2x32xf32> to vector<1x2x32xf32>
    %6 = vector.shape_cast %5 : vector<1x2x32xf32> to vector<2x32xf32>
    %7 = vector.extract_strided_slice %0 {offsets = [3, 0, 0], sizes = [1, 2, 32], strides = [1, 1, 1]} : vector<8x2x32xf32> to vector<1x2x32xf32>
    %8 = vector.shape_cast %7 : vector<1x2x32xf32> to vector<2x32xf32>
    %9 = vector.extract_strided_slice %0 {offsets = [4, 0, 0], sizes = [1, 2, 32], strides = [1, 1, 1]} : vector<8x2x32xf32> to vector<1x2x32xf32>
    %10 = vector.shape_cast %9 : vector<1x2x32xf32> to vector<2x32xf32>
    %11 = vector.extract_strided_slice %0 {offsets = [5, 0, 0], sizes = [1, 2, 32], strides = [1, 1, 1]} : vector<8x2x32xf32> to vector<1x2x32xf32>
    %12 = vector.shape_cast %11 : vector<1x2x32xf32> to vector<2x32xf32>
    %13 = vector.extract_strided_slice %0 {offsets = [6, 0, 0], sizes = [1, 2, 32], strides = [1, 1, 1]} : vector<8x2x32xf32> to vector<1x2x32xf32>
    %14 = vector.shape_cast %13 : vector<1x2x32xf32> to vector<2x32xf32>
    %15 = vector.extract_strided_slice %0 {offsets = [7, 0, 0], sizes = [1, 2, 32], strides = [1, 1, 1]} : vector<8x2x32xf32> to vector<1x2x32xf32>
    %16 = vector.shape_cast %15 : vector<1x2x32xf32> to vector<2x32xf32>
    %c0_2 = arith.constant 0 : index
    %c0_3 = arith.constant 0 : index
    %c0_4 = arith.constant 0 : index
    %17 = vector.load %arg3[%c0_2, %c0_3, %c0_4] : memref<2x32x128xf32, #tpu.memory_space<vmem>>, vector<1x32x128xf32>
    %18 = vector.shape_cast %17 : vector<1x32x128xf32> to vector<32x128xf32>
    %c0_5 = arith.constant 0 : index
    %c0_6 = arith.constant 0 : index
    %c0_7 = arith.constant 0 : index
    %19 = vector.load %arg4[%c0_5, %c0_6, %c0_7] : memref<2x32x128xf32, #tpu.memory_space<vmem>>, vector<1x32x128xf32>
    %20 = vector.shape_cast %19 : vector<1x32x128xf32> to vector<32x128xf32>
    %c0_8 = arith.constant 0 : index
    %c0_9 = arith.constant 0 : index
    %c0_10 = arith.constant 0 : index
    %21 = vector.load %arg5[%c0_8, %c0_9, %c0_10] : memref<2x1x128xf32, #tpu.memory_space<vmem>>, vector<1x1x128xf32>
    %22 = vector.shape_cast %21 : vector<1x1x128xf32> to vector<1x128xf32>
    %cst = arith.constant dense<0.000000e+00> : vector<2x128xf32>
    %23 = tpu.matmul %2, %18, %cst {dimension_numbers = #tpu.dot_dimension_numbers<[1], [0], [0], [1], [0, 0, 1, 1], [], []>} : vector<2x32xf32>, vector<32x128xf32>, vector<2x128xf32> -> vector<2x128xf32>
    %24 = vector.broadcast %22 : vector<1x128xf32> to vector<2x128xf32>
    %25 = arith.addf %23, %24 : vector<2x128xf32>
    %cst_11 = arith.constant dense<0.000000e+00> : vector<2x128xf32>
    %26 = tpu.matmul %4, %18, %cst_11 {dimension_numbers = #tpu.dot_dimension_numbers<[1], [0], [0], [1], [0, 0, 1, 1], [], []>} : vector<2x32xf32>, vector<32x128xf32>, vector<2x128xf32> -> vector<2x128xf32>
    %27 = vector.broadcast %22 : vector<1x128xf32> to vector<2x128xf32>
    %28 = arith.addf %26, %27 : vector<2x128xf32>
    %cst_12 = arith.constant dense<0.000000e+00> : vector<2x128xf32>
    %29 = tpu.matmul %6, %18, %cst_12 {dimension_numbers = #tpu.dot_dimension_numbers<[1], [0], [0], [1], [0, 0, 1, 1], [], []>} : vector<2x32xf32>, vector<32x128xf32>, vector<2x128xf32> -> vector<2x128xf32>
    %30 = vector.broadcast %22 : vector<1x128xf32> to vector<2x128xf32>
    %31 = arith.addf %29, %30 : vector<2x128xf32>
    %cst_13 = arith.constant dense<0.000000e+00> : vector<2x128xf32>
    %32 = tpu.matmul %8, %18, %cst_13 {dimension_numbers = #tpu.dot_dimension_numbers<[1], [0], [0], [1], [0, 0, 1, 1], [], []>} : vector<2x32xf32>, vector<32x128xf32>, vector<2x128xf32> -> vector<2x128xf32>
    %33 = vector.broadcast %22 : vector<1x128xf32> to vector<2x128xf32>
    %34 = arith.addf %32, %33 : vector<2x128xf32>
    %cst_14 = arith.constant dense<0.000000e+00> : vector<2x128xf32>
    %35 = tpu.matmul %10, %18, %cst_14 {dimension_numbers = #tpu.dot_dimension_numbers<[1], [0], [0], [1], [0, 0, 1, 1], [], []>} : vector<2x32xf32>, vector<32x128xf32>, vector<2x128xf32> -> vector<2x128xf32>
    %36 = vector.broadcast %22 : vector<1x128xf32> to vector<2x128xf32>
    %37 = arith.addf %35, %36 : vector<2x128xf32>
    %cst_15 = arith.constant dense<0.000000e+00> : vector<2x128xf32>
    %38 = tpu.matmul %12, %18, %cst_15 {dimension_numbers = #tpu.dot_dimension_numbers<[1], [0], [0], [1], [0, 0, 1, 1], [], []>} : vector<2x32xf32>, vector<32x128xf32>, vector<2x128xf32> -> vector<2x128xf32>
    %39 = vector.broadcast %22 : vector<1x128xf32> to vector<2x128xf32>
    %40 = arith.addf %38, %39 : vector<2x128xf32>
    %cst_16 = arith.constant dense<0.000000e+00> : vector<2x128xf32>
    %41 = tpu.matmul %14, %18, %cst_16 {dimension_numbers = #tpu.dot_dimension_numbers<[1], [0], [0], [1], [0, 0, 1, 1], [], []>} : vector<2x32xf32>, vector<32x128xf32>, vector<2x128xf32> -> vector<2x128xf32>
    %42 = vector.broadcast %22 : vector<1x128xf32> to vector<2x128xf32>
    %43 = arith.addf %41, %42 : vector<2x128xf32>
    %cst_17 = arith.constant dense<0.000000e+00> : vector<2x128xf32>
    %44 = tpu.matmul %16, %18, %cst_17 {dimension_numbers = #tpu.dot_dimension_numbers<[1], [0], [0], [1], [0, 0, 1, 1], [], []>} : vector<2x32xf32>, vector<32x128xf32>, vector<2x128xf32> -> vector<2x128xf32>
    %45 = vector.broadcast %22 : vector<1x128xf32> to vector<2x128xf32>
    %46 = arith.addf %44, %45 : vector<2x128xf32>
    %c0_18 = arith.constant 0 : index
    %c0_19 = arith.constant 0 : index
    %c0_20 = arith.constant 0 : index
    %47 = vector.load %arg1[%c0_18, %c0_19, %c0_20] : memref<2x2x32xf32, #tpu.memory_space<vmem>>, vector<1x2x32xf32>
    %48 = vector.shape_cast %47 : vector<1x2x32xf32> to vector<2x32xf32>
    %c0_21 = arith.constant 0 : index
    %c0_22 = arith.constant 0 : index
    %c0_23 = arith.constant 0 : index
    %49 = vector.load %arg2[%c0_21, %c0_22, %c0_23] : memref<2x2x32xf32, #tpu.memory_space<vmem>>, vector<1x2x32xf32>
    %50 = vector.shape_cast %49 : vector<1x2x32xf32> to vector<2x32xf32>
    %cst_24 = arith.constant dense<0.000000e+00> : vector<2x128xf32>
    %51 = tpu.matmul %48, %20, %cst_24 {dimension_numbers = #tpu.dot_dimension_numbers<[1], [0], [0], [1], [0, 0, 1, 1], [], []>} : vector<2x32xf32>, vector<32x128xf32>, vector<2x128xf32> -> vector<2x128xf32>
    %52 = arith.addf %25, %51 : vector<2x128xf32>
    %53 = arith.negf %52 : vector<2x128xf32>
    %54 = math.exp %53 : vector<2x128xf32>
    %cst_25 = arith.constant 1.000000e+00 : f32
    %55 = vector.broadcast %cst_25 : f32 to vector<2x128xf32>
    %56 = arith.addf %55, %54 : vector<2x128xf32>
    %57 = arith.divf %55, %56 : vector<2x128xf32>
    %58 = math.tanh %52 : vector<2x128xf32>
    %59 = vector.extract_strided_slice %57 {offsets = [0, 32], sizes = [2, 32], strides = [1, 1]} : vector<2x128xf32> to vector<2x32xf32>
    %60 = arith.mulf %59, %50 : vector<2x32xf32>
    %61 = vector.extract_strided_slice %57 {offsets = [0, 0], sizes = [2, 32], strides = [1, 1]} : vector<2x128xf32> to vector<2x32xf32>
    %62 = vector.extract_strided_slice %58 {offsets = [0, 64], sizes = [2, 32], strides = [1, 1]} : vector<2x128xf32> to vector<2x32xf32>
    %63 = arith.mulf %61, %62 : vector<2x32xf32>
    %64 = arith.addf %60, %63 : vector<2x32xf32>
    %65 = vector.extract_strided_slice %57 {offsets = [0, 96], sizes = [2, 32], strides = [1, 1]} : vector<2x128xf32> to vector<2x32xf32>
    %66 = math.tanh %64 : vector<2x32xf32>
    %67 = arith.mulf %65, %66 : vector<2x32xf32>
    %cst_26 = arith.constant dense<0.000000e+00> : vector<2x128xf32>
    %68 = tpu.matmul %67, %20, %cst_26 {dimension_numbers = #tpu.dot_dimension_numbers<[1], [0], [0], [1], [0, 0, 1, 1], [], []>} : vector<2x32xf32>, vector<32x128xf32>, vector<2x128xf32> -> vector<2x128xf32>
    %69 = arith.addf %28, %68 : vector<2x128xf32>
    %70 = arith.negf %69 : vector<2x128xf32>
    %71 = math.exp %70 : vector<2x128xf32>
    %cst_27 = arith.constant 1.000000e+00 : f32
    %72 = vector.broadcast %cst_27 : f32 to vector<2x128xf32>
    %73 = arith.addf %72, %71 : vector<2x128xf32>
    %74 = arith.divf %72, %73 : vector<2x128xf32>
    %75 = math.tanh %69 : vector<2x128xf32>
    %76 = vector.extract_strided_slice %74 {offsets = [0, 32], sizes = [2, 32], strides = [1, 1]} : vector<2x128xf32> to vector<2x32xf32>
    %77 = arith.mulf %76, %64 : vector<2x32xf32>
    %78 = vector.extract_strided_slice %74 {offsets = [0, 0], sizes = [2, 32], strides = [1, 1]} : vector<2x128xf32> to vector<2x32xf32>
    %79 = vector.extract_strided_slice %75 {offsets = [0, 64], sizes = [2, 32], strides = [1, 1]} : vector<2x128xf32> to vector<2x32xf32>
    %80 = arith.mulf %78, %79 : vector<2x32xf32>
    %81 = arith.addf %77, %80 : vector<2x32xf32>
    %82 = vector.extract_strided_slice %74 {offsets = [0, 96], sizes = [2, 32], strides = [1, 1]} : vector<2x128xf32> to vector<2x32xf32>
    %83 = math.tanh %81 : vector<2x32xf32>
    %84 = arith.mulf %82, %83 : vector<2x32xf32>
    %cst_28 = arith.constant dense<0.000000e+00> : vector<2x128xf32>
    %85 = tpu.matmul %84, %20, %cst_28 {dimension_numbers = #tpu.dot_dimension_numbers<[1], [0], [0], [1], [0, 0, 1, 1], [], []>} : vector<2x32xf32>, vector<32x128xf32>, vector<2x128xf32> -> vector<2x128xf32>
    %86 = arith.addf %31, %85 : vector<2x128xf32>
    %87 = arith.negf %86 : vector<2x128xf32>
    %88 = math.exp %87 : vector<2x128xf32>
    %cst_29 = arith.constant 1.000000e+00 : f32
    %89 = vector.broadcast %cst_29 : f32 to vector<2x128xf32>
    %90 = arith.addf %89, %88 : vector<2x128xf32>
    %91 = arith.divf %89, %90 : vector<2x128xf32>
    %92 = math.tanh %86 : vector<2x128xf32>
    %93 = vector.extract_strided_slice %91 {offsets = [0, 32], sizes = [2, 32], strides = [1, 1]} : vector<2x128xf32> to vector<2x32xf32>
    %94 = arith.mulf %93, %81 : vector<2x32xf32>
    %95 = vector.extract_strided_slice %91 {offsets = [0, 0], sizes = [2, 32], strides = [1, 1]} : vector<2x128xf32> to vector<2x32xf32>
    %96 = vector.extract_strided_slice %92 {offsets = [0, 64], sizes = [2, 32], strides = [1, 1]} : vector<2x128xf32> to vector<2x32xf32>
    %97 = arith.mulf %95, %96 : vector<2x32xf32>
    %98 = arith.addf %94, %97 : vector<2x32xf32>
    %99 = vector.extract_strided_slice %91 {offsets = [0, 96], sizes = [2, 32], strides = [1, 1]} : vector<2x128xf32> to vector<2x32xf32>
    %100 = math.tanh %98 : vector<2x32xf32>
    %101 = arith.mulf %99, %100 : vector<2x32xf32>
    %cst_30 = arith.constant dense<0.000000e+00> : vector<2x128xf32>
    %102 = tpu.matmul %101, %20, %cst_30 {dimension_numbers = #tpu.dot_dimension_numbers<[1], [0], [0], [1], [0, 0, 1, 1], [], []>} : vector<2x32xf32>, vector<32x128xf32>, vector<2x128xf32> -> vector<2x128xf32>
    %103 = arith.addf %34, %102 : vector<2x128xf32>
    %104 = arith.negf %103 : vector<2x128xf32>
    %105 = math.exp %104 : vector<2x128xf32>
    %cst_31 = arith.constant 1.000000e+00 : f32
    %106 = vector.broadcast %cst_31 : f32 to vector<2x128xf32>
    %107 = arith.addf %106, %105 : vector<2x128xf32>
    %108 = arith.divf %106, %107 : vector<2x128xf32>
    %109 = math.tanh %103 : vector<2x128xf32>
    %110 = vector.extract_strided_slice %108 {offsets = [0, 32], sizes = [2, 32], strides = [1, 1]} : vector<2x128xf32> to vector<2x32xf32>
    %111 = arith.mulf %110, %98 : vector<2x32xf32>
    %112 = vector.extract_strided_slice %108 {offsets = [0, 0], sizes = [2, 32], strides = [1, 1]} : vector<2x128xf32> to vector<2x32xf32>
    %113 = vector.extract_strided_slice %109 {offsets = [0, 64], sizes = [2, 32], strides = [1, 1]} : vector<2x128xf32> to vector<2x32xf32>
    %114 = arith.mulf %112, %113 : vector<2x32xf32>
    %115 = arith.addf %111, %114 : vector<2x32xf32>
    %116 = vector.extract_strided_slice %108 {offsets = [0, 96], sizes = [2, 32], strides = [1, 1]} : vector<2x128xf32> to vector<2x32xf32>
    %117 = math.tanh %115 : vector<2x32xf32>
    %118 = arith.mulf %116, %117 : vector<2x32xf32>
    %cst_32 = arith.constant dense<0.000000e+00> : vector<2x128xf32>
    %119 = tpu.matmul %118, %20, %cst_32 {dimension_numbers = #tpu.dot_dimension_numbers<[1], [0], [0], [1], [0, 0, 1, 1], [], []>} : vector<2x32xf32>, vector<32x128xf32>, vector<2x128xf32> -> vector<2x128xf32>
    %120 = arith.addf %37, %119 : vector<2x128xf32>
    %121 = arith.negf %120 : vector<2x128xf32>
    %122 = math.exp %121 : vector<2x128xf32>
    %cst_33 = arith.constant 1.000000e+00 : f32
    %123 = vector.broadcast %cst_33 : f32 to vector<2x128xf32>
    %124 = arith.addf %123, %122 : vector<2x128xf32>
    %125 = arith.divf %123, %124 : vector<2x128xf32>
    %126 = math.tanh %120 : vector<2x128xf32>
    %127 = vector.extract_strided_slice %125 {offsets = [0, 32], sizes = [2, 32], strides = [1, 1]} : vector<2x128xf32> to vector<2x32xf32>
    %128 = arith.mulf %127, %115 : vector<2x32xf32>
    %129 = vector.extract_strided_slice %125 {offsets = [0, 0], sizes = [2, 32], strides = [1, 1]} : vector<2x128xf32> to vector<2x32xf32>
    %130 = vector.extract_strided_slice %126 {offsets = [0, 64], sizes = [2, 32], strides = [1, 1]} : vector<2x128xf32> to vector<2x32xf32>
    %131 = arith.mulf %129, %130 : vector<2x32xf32>
    %132 = arith.addf %128, %131 : vector<2x32xf32>
    %133 = vector.extract_strided_slice %125 {offsets = [0, 96], sizes = [2, 32], strides = [1, 1]} : vector<2x128xf32> to vector<2x32xf32>
    %134 = math.tanh %132 : vector<2x32xf32>
    %135 = arith.mulf %133, %134 : vector<2x32xf32>
    %cst_34 = arith.constant dense<0.000000e+00> : vector<2x128xf32>
    %136 = tpu.matmul %135, %20, %cst_34 {dimension_numbers = #tpu.dot_dimension_numbers<[1], [0], [0], [1], [0, 0, 1, 1], [], []>} : vector<2x32xf32>, vector<32x128xf32>, vector<2x128xf32> -> vector<2x128xf32>
    %137 = arith.addf %40, %136 : vector<2x128xf32>
    %138 = arith.negf %137 : vector<2x128xf32>
    %139 = math.exp %138 : vector<2x128xf32>
    %cst_35 = arith.constant 1.000000e+00 : f32
    %140 = vector.broadcast %cst_35 : f32 to vector<2x128xf32>
    %141 = arith.addf %140, %139 : vector<2x128xf32>
    %142 = arith.divf %140, %141 : vector<2x128xf32>
    %143 = math.tanh %137 : vector<2x128xf32>
    %144 = vector.extract_strided_slice %142 {offsets = [0, 32], sizes = [2, 32], strides = [1, 1]} : vector<2x128xf32> to vector<2x32xf32>
    %145 = arith.mulf %144, %132 : vector<2x32xf32>
    %146 = vector.extract_strided_slice %142 {offsets = [0, 0], sizes = [2, 32], strides = [1, 1]} : vector<2x128xf32> to vector<2x32xf32>
    %147 = vector.extract_strided_slice %143 {offsets = [0, 64], sizes = [2, 32], strides = [1, 1]} : vector<2x128xf32> to vector<2x32xf32>
    %148 = arith.mulf %146, %147 : vector<2x32xf32>
    %149 = arith.addf %145, %148 : vector<2x32xf32>
    %150 = vector.extract_strided_slice %142 {offsets = [0, 96], sizes = [2, 32], strides = [1, 1]} : vector<2x128xf32> to vector<2x32xf32>
    %151 = math.tanh %149 : vector<2x32xf32>
    %152 = arith.mulf %150, %151 : vector<2x32xf32>
    %cst_36 = arith.constant dense<0.000000e+00> : vector<2x128xf32>
    %153 = tpu.matmul %152, %20, %cst_36 {dimension_numbers = #tpu.dot_dimension_numbers<[1], [0], [0], [1], [0, 0, 1, 1], [], []>} : vector<2x32xf32>, vector<32x128xf32>, vector<2x128xf32> -> vector<2x128xf32>
    %154 = arith.addf %43, %153 : vector<2x128xf32>
    %155 = arith.negf %154 : vector<2x128xf32>
    %156 = math.exp %155 : vector<2x128xf32>
    %cst_37 = arith.constant 1.000000e+00 : f32
    %157 = vector.broadcast %cst_37 : f32 to vector<2x128xf32>
    %158 = arith.addf %157, %156 : vector<2x128xf32>
    %159 = arith.divf %157, %158 : vector<2x128xf32>
    %160 = math.tanh %154 : vector<2x128xf32>
    %161 = vector.extract_strided_slice %159 {offsets = [0, 32], sizes = [2, 32], strides = [1, 1]} : vector<2x128xf32> to vector<2x32xf32>
    %162 = arith.mulf %161, %149 : vector<2x32xf32>
    %163 = vector.extract_strided_slice %159 {offsets = [0, 0], sizes = [2, 32], strides = [1, 1]} : vector<2x128xf32> to vector<2x32xf32>
    %164 = vector.extract_strided_slice %160 {offsets = [0, 64], sizes = [2, 32], strides = [1, 1]} : vector<2x128xf32> to vector<2x32xf32>
    %165 = arith.mulf %163, %164 : vector<2x32xf32>
    %166 = arith.addf %162, %165 : vector<2x32xf32>
    %167 = vector.extract_strided_slice %159 {offsets = [0, 96], sizes = [2, 32], strides = [1, 1]} : vector<2x128xf32> to vector<2x32xf32>
    %168 = math.tanh %166 : vector<2x32xf32>
    %169 = arith.mulf %167, %168 : vector<2x32xf32>
    %cst_38 = arith.constant dense<0.000000e+00> : vector<2x128xf32>
    %170 = tpu.matmul %169, %20, %cst_38 {dimension_numbers = #tpu.dot_dimension_numbers<[1], [0], [0], [1], [0, 0, 1, 1], [], []>} : vector<2x32xf32>, vector<32x128xf32>, vector<2x128xf32> -> vector<2x128xf32>
    %171 = arith.addf %46, %170 : vector<2x128xf32>
    %172 = arith.negf %171 : vector<2x128xf32>
    %173 = math.exp %172 : vector<2x128xf32>
    %cst_39 = arith.constant 1.000000e+00 : f32
    %174 = vector.broadcast %cst_39 : f32 to vector<2x128xf32>
    %175 = arith.addf %174, %173 : vector<2x128xf32>
    %176 = arith.divf %174, %175 : vector<2x128xf32>
    %177 = math.tanh %171 : vector<2x128xf32>
    %178 = vector.extract_strided_slice %176 {offsets = [0, 32], sizes = [2, 32], strides = [1, 1]} : vector<2x128xf32> to vector<2x32xf32>
    %179 = arith.mulf %178, %166 : vector<2x32xf32>
    %180 = vector.extract_strided_slice %176 {offsets = [0, 0], sizes = [2, 32], strides = [1, 1]} : vector<2x128xf32> to vector<2x32xf32>
    %181 = vector.extract_strided_slice %177 {offsets = [0, 64], sizes = [2, 32], strides = [1, 1]} : vector<2x128xf32> to vector<2x32xf32>
    %182 = arith.mulf %180, %181 : vector<2x32xf32>
    %183 = arith.addf %179, %182 : vector<2x32xf32>
    %184 = vector.extract_strided_slice %176 {offsets = [0, 96], sizes = [2, 32], strides = [1, 1]} : vector<2x128xf32> to vector<2x32xf32>
    %185 = math.tanh %183 : vector<2x32xf32>
    %186 = arith.mulf %184, %185 : vector<2x32xf32>
    %c1 = arith.constant 1 : index
    %c0_40 = arith.constant 0 : index
    %c0_41 = arith.constant 0 : index
    %187 = vector.load %arg3[%c1, %c0_40, %c0_41] : memref<2x32x128xf32, #tpu.memory_space<vmem>>, vector<1x32x128xf32>
    %188 = vector.shape_cast %187 : vector<1x32x128xf32> to vector<32x128xf32>
    %c1_42 = arith.constant 1 : index
    %c0_43 = arith.constant 0 : index
    %c0_44 = arith.constant 0 : index
    %189 = vector.load %arg4[%c1_42, %c0_43, %c0_44] : memref<2x32x128xf32, #tpu.memory_space<vmem>>, vector<1x32x128xf32>
    %190 = vector.shape_cast %189 : vector<1x32x128xf32> to vector<32x128xf32>
    %c1_45 = arith.constant 1 : index
    %c0_46 = arith.constant 0 : index
    %c0_47 = arith.constant 0 : index
    %191 = vector.load %arg5[%c1_45, %c0_46, %c0_47] : memref<2x1x128xf32, #tpu.memory_space<vmem>>, vector<1x1x128xf32>
    %192 = vector.shape_cast %191 : vector<1x1x128xf32> to vector<1x128xf32>
    %cst_48 = arith.constant dense<0.000000e+00> : vector<2x128xf32>
    %193 = tpu.matmul %67, %188, %cst_48 {dimension_numbers = #tpu.dot_dimension_numbers<[1], [0], [0], [1], [0, 0, 1, 1], [], []>} : vector<2x32xf32>, vector<32x128xf32>, vector<2x128xf32> -> vector<2x128xf32>
    %194 = vector.broadcast %192 : vector<1x128xf32> to vector<2x128xf32>
    %195 = arith.addf %193, %194 : vector<2x128xf32>
    %cst_49 = arith.constant dense<0.000000e+00> : vector<2x128xf32>
    %196 = tpu.matmul %84, %188, %cst_49 {dimension_numbers = #tpu.dot_dimension_numbers<[1], [0], [0], [1], [0, 0, 1, 1], [], []>} : vector<2x32xf32>, vector<32x128xf32>, vector<2x128xf32> -> vector<2x128xf32>
    %197 = vector.broadcast %192 : vector<1x128xf32> to vector<2x128xf32>
    %198 = arith.addf %196, %197 : vector<2x128xf32>
    %cst_50 = arith.constant dense<0.000000e+00> : vector<2x128xf32>
    %199 = tpu.matmul %101, %188, %cst_50 {dimension_numbers = #tpu.dot_dimension_numbers<[1], [0], [0], [1], [0, 0, 1, 1], [], []>} : vector<2x32xf32>, vector<32x128xf32>, vector<2x128xf32> -> vector<2x128xf32>
    %200 = vector.broadcast %192 : vector<1x128xf32> to vector<2x128xf32>
    %201 = arith.addf %199, %200 : vector<2x128xf32>
    %cst_51 = arith.constant dense<0.000000e+00> : vector<2x128xf32>
    %202 = tpu.matmul %118, %188, %cst_51 {dimension_numbers = #tpu.dot_dimension_numbers<[1], [0], [0], [1], [0, 0, 1, 1], [], []>} : vector<2x32xf32>, vector<32x128xf32>, vector<2x128xf32> -> vector<2x128xf32>
    %203 = vector.broadcast %192 : vector<1x128xf32> to vector<2x128xf32>
    %204 = arith.addf %202, %203 : vector<2x128xf32>
    %cst_52 = arith.constant dense<0.000000e+00> : vector<2x128xf32>
    %205 = tpu.matmul %135, %188, %cst_52 {dimension_numbers = #tpu.dot_dimension_numbers<[1], [0], [0], [1], [0, 0, 1, 1], [], []>} : vector<2x32xf32>, vector<32x128xf32>, vector<2x128xf32> -> vector<2x128xf32>
    %206 = vector.broadcast %192 : vector<1x128xf32> to vector<2x128xf32>
    %207 = arith.addf %205, %206 : vector<2x128xf32>
    %cst_53 = arith.constant dense<0.000000e+00> : vector<2x128xf32>
    %208 = tpu.matmul %152, %188, %cst_53 {dimension_numbers = #tpu.dot_dimension_numbers<[1], [0], [0], [1], [0, 0, 1, 1], [], []>} : vector<2x32xf32>, vector<32x128xf32>, vector<2x128xf32> -> vector<2x128xf32>
    %209 = vector.broadcast %192 : vector<1x128xf32> to vector<2x128xf32>
    %210 = arith.addf %208, %209 : vector<2x128xf32>
    %cst_54 = arith.constant dense<0.000000e+00> : vector<2x128xf32>
    %211 = tpu.matmul %169, %188, %cst_54 {dimension_numbers = #tpu.dot_dimension_numbers<[1], [0], [0], [1], [0, 0, 1, 1], [], []>} : vector<2x32xf32>, vector<32x128xf32>, vector<2x128xf32> -> vector<2x128xf32>
    %212 = vector.broadcast %192 : vector<1x128xf32> to vector<2x128xf32>
    %213 = arith.addf %211, %212 : vector<2x128xf32>
    %cst_55 = arith.constant dense<0.000000e+00> : vector<2x128xf32>
    %214 = tpu.matmul %186, %188, %cst_55 {dimension_numbers = #tpu.dot_dimension_numbers<[1], [0], [0], [1], [0, 0, 1, 1], [], []>} : vector<2x32xf32>, vector<32x128xf32>, vector<2x128xf32> -> vector<2x128xf32>
    %215 = vector.broadcast %192 : vector<1x128xf32> to vector<2x128xf32>
    %216 = arith.addf %214, %215 : vector<2x128xf32>
    %c1_56 = arith.constant 1 : index
    %c0_57 = arith.constant 0 : index
    %c0_58 = arith.constant 0 : index
    %217 = vector.load %arg1[%c1_56, %c0_57, %c0_58] : memref<2x2x32xf32, #tpu.memory_space<vmem>>, vector<1x2x32xf32>
    %218 = vector.shape_cast %217 : vector<1x2x32xf32> to vector<2x32xf32>
    %c1_59 = arith.constant 1 : index
    %c0_60 = arith.constant 0 : index
    %c0_61 = arith.constant 0 : index
    %219 = vector.load %arg2[%c1_59, %c0_60, %c0_61] : memref<2x2x32xf32, #tpu.memory_space<vmem>>, vector<1x2x32xf32>
    %220 = vector.shape_cast %219 : vector<1x2x32xf32> to vector<2x32xf32>
    %cst_62 = arith.constant dense<0.000000e+00> : vector<2x128xf32>
    %221 = tpu.matmul %218, %190, %cst_62 {dimension_numbers = #tpu.dot_dimension_numbers<[1], [0], [0], [1], [0, 0, 1, 1], [], []>} : vector<2x32xf32>, vector<32x128xf32>, vector<2x128xf32> -> vector<2x128xf32>
    %222 = arith.addf %195, %221 : vector<2x128xf32>
    %223 = arith.negf %222 : vector<2x128xf32>
    %224 = math.exp %223 : vector<2x128xf32>
    %cst_63 = arith.constant 1.000000e+00 : f32
    %225 = vector.broadcast %cst_63 : f32 to vector<2x128xf32>
    %226 = arith.addf %225, %224 : vector<2x128xf32>
    %227 = arith.divf %225, %226 : vector<2x128xf32>
    %228 = math.tanh %222 : vector<2x128xf32>
    %229 = vector.extract_strided_slice %227 {offsets = [0, 32], sizes = [2, 32], strides = [1, 1]} : vector<2x128xf32> to vector<2x32xf32>
    %230 = arith.mulf %229, %220 : vector<2x32xf32>
    %231 = vector.extract_strided_slice %227 {offsets = [0, 0], sizes = [2, 32], strides = [1, 1]} : vector<2x128xf32> to vector<2x32xf32>
    %232 = vector.extract_strided_slice %228 {offsets = [0, 64], sizes = [2, 32], strides = [1, 1]} : vector<2x128xf32> to vector<2x32xf32>
    %233 = arith.mulf %231, %232 : vector<2x32xf32>
    %234 = arith.addf %230, %233 : vector<2x32xf32>
    %235 = vector.extract_strided_slice %227 {offsets = [0, 96], sizes = [2, 32], strides = [1, 1]} : vector<2x128xf32> to vector<2x32xf32>
    %236 = math.tanh %234 : vector<2x32xf32>
    %237 = arith.mulf %235, %236 : vector<2x32xf32>
    %cst_64 = arith.constant dense<0.000000e+00> : vector<2x128xf32>
    %238 = tpu.matmul %237, %190, %cst_64 {dimension_numbers = #tpu.dot_dimension_numbers<[1], [0], [0], [1], [0, 0, 1, 1], [], []>} : vector<2x32xf32>, vector<32x128xf32>, vector<2x128xf32> -> vector<2x128xf32>
    %239 = arith.addf %198, %238 : vector<2x128xf32>
    %240 = arith.negf %239 : vector<2x128xf32>
    %241 = math.exp %240 : vector<2x128xf32>
    %cst_65 = arith.constant 1.000000e+00 : f32
    %242 = vector.broadcast %cst_65 : f32 to vector<2x128xf32>
    %243 = arith.addf %242, %241 : vector<2x128xf32>
    %244 = arith.divf %242, %243 : vector<2x128xf32>
    %245 = math.tanh %239 : vector<2x128xf32>
    %246 = vector.extract_strided_slice %244 {offsets = [0, 32], sizes = [2, 32], strides = [1, 1]} : vector<2x128xf32> to vector<2x32xf32>
    %247 = arith.mulf %246, %234 : vector<2x32xf32>
    %248 = vector.extract_strided_slice %244 {offsets = [0, 0], sizes = [2, 32], strides = [1, 1]} : vector<2x128xf32> to vector<2x32xf32>
    %249 = vector.extract_strided_slice %245 {offsets = [0, 64], sizes = [2, 32], strides = [1, 1]} : vector<2x128xf32> to vector<2x32xf32>
    %250 = arith.mulf %248, %249 : vector<2x32xf32>
    %251 = arith.addf %247, %250 : vector<2x32xf32>
    %252 = vector.extract_strided_slice %244 {offsets = [0, 96], sizes = [2, 32], strides = [1, 1]} : vector<2x128xf32> to vector<2x32xf32>
    %253 = math.tanh %251 : vector<2x32xf32>
    %254 = arith.mulf %252, %253 : vector<2x32xf32>
    %cst_66 = arith.constant dense<0.000000e+00> : vector<2x128xf32>
    %255 = tpu.matmul %254, %190, %cst_66 {dimension_numbers = #tpu.dot_dimension_numbers<[1], [0], [0], [1], [0, 0, 1, 1], [], []>} : vector<2x32xf32>, vector<32x128xf32>, vector<2x128xf32> -> vector<2x128xf32>
    %256 = arith.addf %201, %255 : vector<2x128xf32>
    %257 = arith.negf %256 : vector<2x128xf32>
    %258 = math.exp %257 : vector<2x128xf32>
    %cst_67 = arith.constant 1.000000e+00 : f32
    %259 = vector.broadcast %cst_67 : f32 to vector<2x128xf32>
    %260 = arith.addf %259, %258 : vector<2x128xf32>
    %261 = arith.divf %259, %260 : vector<2x128xf32>
    %262 = math.tanh %256 : vector<2x128xf32>
    %263 = vector.extract_strided_slice %261 {offsets = [0, 32], sizes = [2, 32], strides = [1, 1]} : vector<2x128xf32> to vector<2x32xf32>
    %264 = arith.mulf %263, %251 : vector<2x32xf32>
    %265 = vector.extract_strided_slice %261 {offsets = [0, 0], sizes = [2, 32], strides = [1, 1]} : vector<2x128xf32> to vector<2x32xf32>
    %266 = vector.extract_strided_slice %262 {offsets = [0, 64], sizes = [2, 32], strides = [1, 1]} : vector<2x128xf32> to vector<2x32xf32>
    %267 = arith.mulf %265, %266 : vector<2x32xf32>
    %268 = arith.addf %264, %267 : vector<2x32xf32>
    %269 = vector.extract_strided_slice %261 {offsets = [0, 96], sizes = [2, 32], strides = [1, 1]} : vector<2x128xf32> to vector<2x32xf32>
    %270 = math.tanh %268 : vector<2x32xf32>
    %271 = arith.mulf %269, %270 : vector<2x32xf32>
    %cst_68 = arith.constant dense<0.000000e+00> : vector<2x128xf32>
    %272 = tpu.matmul %271, %190, %cst_68 {dimension_numbers = #tpu.dot_dimension_numbers<[1], [0], [0], [1], [0, 0, 1, 1], [], []>} : vector<2x32xf32>, vector<32x128xf32>, vector<2x128xf32> -> vector<2x128xf32>
    %273 = arith.addf %204, %272 : vector<2x128xf32>
    %274 = arith.negf %273 : vector<2x128xf32>
    %275 = math.exp %274 : vector<2x128xf32>
    %cst_69 = arith.constant 1.000000e+00 : f32
    %276 = vector.broadcast %cst_69 : f32 to vector<2x128xf32>
    %277 = arith.addf %276, %275 : vector<2x128xf32>
    %278 = arith.divf %276, %277 : vector<2x128xf32>
    %279 = math.tanh %273 : vector<2x128xf32>
    %280 = vector.extract_strided_slice %278 {offsets = [0, 32], sizes = [2, 32], strides = [1, 1]} : vector<2x128xf32> to vector<2x32xf32>
    %281 = arith.mulf %280, %268 : vector<2x32xf32>
    %282 = vector.extract_strided_slice %278 {offsets = [0, 0], sizes = [2, 32], strides = [1, 1]} : vector<2x128xf32> to vector<2x32xf32>
    %283 = vector.extract_strided_slice %279 {offsets = [0, 64], sizes = [2, 32], strides = [1, 1]} : vector<2x128xf32> to vector<2x32xf32>
    %284 = arith.mulf %282, %283 : vector<2x32xf32>
    %285 = arith.addf %281, %284 : vector<2x32xf32>
    %286 = vector.extract_strided_slice %278 {offsets = [0, 96], sizes = [2, 32], strides = [1, 1]} : vector<2x128xf32> to vector<2x32xf32>
    %287 = math.tanh %285 : vector<2x32xf32>
    %288 = arith.mulf %286, %287 : vector<2x32xf32>
    %cst_70 = arith.constant dense<0.000000e+00> : vector<2x128xf32>
    %289 = tpu.matmul %288, %190, %cst_70 {dimension_numbers = #tpu.dot_dimension_numbers<[1], [0], [0], [1], [0, 0, 1, 1], [], []>} : vector<2x32xf32>, vector<32x128xf32>, vector<2x128xf32> -> vector<2x128xf32>
    %290 = arith.addf %207, %289 : vector<2x128xf32>
    %291 = arith.negf %290 : vector<2x128xf32>
    %292 = math.exp %291 : vector<2x128xf32>
    %cst_71 = arith.constant 1.000000e+00 : f32
    %293 = vector.broadcast %cst_71 : f32 to vector<2x128xf32>
    %294 = arith.addf %293, %292 : vector<2x128xf32>
    %295 = arith.divf %293, %294 : vector<2x128xf32>
    %296 = math.tanh %290 : vector<2x128xf32>
    %297 = vector.extract_strided_slice %295 {offsets = [0, 32], sizes = [2, 32], strides = [1, 1]} : vector<2x128xf32> to vector<2x32xf32>
    %298 = arith.mulf %297, %285 : vector<2x32xf32>
    %299 = vector.extract_strided_slice %295 {offsets = [0, 0], sizes = [2, 32], strides = [1, 1]} : vector<2x128xf32> to vector<2x32xf32>
    %300 = vector.extract_strided_slice %296 {offsets = [0, 64], sizes = [2, 32], strides = [1, 1]} : vector<2x128xf32> to vector<2x32xf32>
    %301 = arith.mulf %299, %300 : vector<2x32xf32>
    %302 = arith.addf %298, %301 : vector<2x32xf32>
    %303 = vector.extract_strided_slice %295 {offsets = [0, 96], sizes = [2, 32], strides = [1, 1]} : vector<2x128xf32> to vector<2x32xf32>
    %304 = math.tanh %302 : vector<2x32xf32>
    %305 = arith.mulf %303, %304 : vector<2x32xf32>
    %cst_72 = arith.constant dense<0.000000e+00> : vector<2x128xf32>
    %306 = tpu.matmul %305, %190, %cst_72 {dimension_numbers = #tpu.dot_dimension_numbers<[1], [0], [0], [1], [0, 0, 1, 1], [], []>} : vector<2x32xf32>, vector<32x128xf32>, vector<2x128xf32> -> vector<2x128xf32>
    %307 = arith.addf %210, %306 : vector<2x128xf32>
    %308 = arith.negf %307 : vector<2x128xf32>
    %309 = math.exp %308 : vector<2x128xf32>
    %cst_73 = arith.constant 1.000000e+00 : f32
    %310 = vector.broadcast %cst_73 : f32 to vector<2x128xf32>
    %311 = arith.addf %310, %309 : vector<2x128xf32>
    %312 = arith.divf %310, %311 : vector<2x128xf32>
    %313 = math.tanh %307 : vector<2x128xf32>
    %314 = vector.extract_strided_slice %312 {offsets = [0, 32], sizes = [2, 32], strides = [1, 1]} : vector<2x128xf32> to vector<2x32xf32>
    %315 = arith.mulf %314, %302 : vector<2x32xf32>
    %316 = vector.extract_strided_slice %312 {offsets = [0, 0], sizes = [2, 32], strides = [1, 1]} : vector<2x128xf32> to vector<2x32xf32>
    %317 = vector.extract_strided_slice %313 {offsets = [0, 64], sizes = [2, 32], strides = [1, 1]} : vector<2x128xf32> to vector<2x32xf32>
    %318 = arith.mulf %316, %317 : vector<2x32xf32>
    %319 = arith.addf %315, %318 : vector<2x32xf32>
    %320 = vector.extract_strided_slice %312 {offsets = [0, 96], sizes = [2, 32], strides = [1, 1]} : vector<2x128xf32> to vector<2x32xf32>
    %321 = math.tanh %319 : vector<2x32xf32>
    %322 = arith.mulf %320, %321 : vector<2x32xf32>
    %cst_74 = arith.constant dense<0.000000e+00> : vector<2x128xf32>
    %323 = tpu.matmul %322, %190, %cst_74 {dimension_numbers = #tpu.dot_dimension_numbers<[1], [0], [0], [1], [0, 0, 1, 1], [], []>} : vector<2x32xf32>, vector<32x128xf32>, vector<2x128xf32> -> vector<2x128xf32>
    %324 = arith.addf %213, %323 : vector<2x128xf32>
    %325 = arith.negf %324 : vector<2x128xf32>
    %326 = math.exp %325 : vector<2x128xf32>
    %cst_75 = arith.constant 1.000000e+00 : f32
    %327 = vector.broadcast %cst_75 : f32 to vector<2x128xf32>
    %328 = arith.addf %327, %326 : vector<2x128xf32>
    %329 = arith.divf %327, %328 : vector<2x128xf32>
    %330 = math.tanh %324 : vector<2x128xf32>
    %331 = vector.extract_strided_slice %329 {offsets = [0, 32], sizes = [2, 32], strides = [1, 1]} : vector<2x128xf32> to vector<2x32xf32>
    %332 = arith.mulf %331, %319 : vector<2x32xf32>
    %333 = vector.extract_strided_slice %329 {offsets = [0, 0], sizes = [2, 32], strides = [1, 1]} : vector<2x128xf32> to vector<2x32xf32>
    %334 = vector.extract_strided_slice %330 {offsets = [0, 64], sizes = [2, 32], strides = [1, 1]} : vector<2x128xf32> to vector<2x32xf32>
    %335 = arith.mulf %333, %334 : vector<2x32xf32>
    %336 = arith.addf %332, %335 : vector<2x32xf32>
    %337 = vector.extract_strided_slice %329 {offsets = [0, 96], sizes = [2, 32], strides = [1, 1]} : vector<2x128xf32> to vector<2x32xf32>
    %338 = math.tanh %336 : vector<2x32xf32>
    %339 = arith.mulf %337, %338 : vector<2x32xf32>
    %cst_76 = arith.constant dense<0.000000e+00> : vector<2x128xf32>
    %340 = tpu.matmul %339, %190, %cst_76 {dimension_numbers = #tpu.dot_dimension_numbers<[1], [0], [0], [1], [0, 0, 1, 1], [], []>} : vector<2x32xf32>, vector<32x128xf32>, vector<2x128xf32> -> vector<2x128xf32>
    %341 = arith.addf %216, %340 : vector<2x128xf32>
    %342 = arith.negf %341 : vector<2x128xf32>
    %343 = math.exp %342 : vector<2x128xf32>
    %cst_77 = arith.constant 1.000000e+00 : f32
    %344 = vector.broadcast %cst_77 : f32 to vector<2x128xf32>
    %345 = arith.addf %344, %343 : vector<2x128xf32>
    %346 = arith.divf %344, %345 : vector<2x128xf32>
    %347 = math.tanh %341 : vector<2x128xf32>
    %348 = vector.extract_strided_slice %346 {offsets = [0, 32], sizes = [2, 32], strides = [1, 1]} : vector<2x128xf32> to vector<2x32xf32>
    %349 = arith.mulf %348, %336 : vector<2x32xf32>
    %350 = vector.extract_strided_slice %346 {offsets = [0, 0], sizes = [2, 32], strides = [1, 1]} : vector<2x128xf32> to vector<2x32xf32>
    %351 = vector.extract_strided_slice %347 {offsets = [0, 64], sizes = [2, 32], strides = [1, 1]} : vector<2x128xf32> to vector<2x32xf32>
    %352 = arith.mulf %350, %351 : vector<2x32xf32>
    %353 = arith.addf %349, %352 : vector<2x32xf32>
    %354 = vector.extract_strided_slice %346 {offsets = [0, 96], sizes = [2, 32], strides = [1, 1]} : vector<2x128xf32> to vector<2x32xf32>
    %355 = math.tanh %353 : vector<2x32xf32>
    %356 = arith.mulf %354, %355 : vector<2x32xf32>
    %357 = vector.extract_strided_slice %237 {offsets = [0, 0], sizes = [1, 32], strides = [1, 1]} : vector<2x32xf32> to vector<1x32xf32>
    %c0_78 = arith.constant 0 : index
    %c0_79 = arith.constant 0 : index
    %358 = vector.load %arg33[%c0_78, %c0_79] : memref<16x32xf32, #tpu.memory_space<vmem>>, vector<1x32xf32>
    tpu.vector_store %arg33[%c0_78, %c0_79], %357 {strides = array<i32>} : memref<16x32xf32, #tpu.memory_space<vmem>>, vector<1x32xf32>,
    %359 = vector.extract_strided_slice %237 {offsets = [1, 0], sizes = [1, 32], strides = [1, 1]} : vector<2x32xf32> to vector<1x32xf32>
    %c8 = arith.constant 8 : index
    %c0_80 = arith.constant 0 : index
    %360 = vector.load %arg33[%c8, %c0_80] : memref<16x32xf32, #tpu.memory_space<vmem>>, vector<1x32xf32>
    tpu.vector_store %arg33[%c8, %c0_80], %359 {strides = array<i32>} : memref<16x32xf32, #tpu.memory_space<vmem>>, vector<1x32xf32>,
    %361 = vector.extract_strided_slice %254 {offsets = [0, 0], sizes = [1, 32], strides = [1, 1]} : vector<2x32xf32> to vector<1x32xf32>
    %c1_81 = arith.constant 1 : index
    %c0_82 = arith.constant 0 : index
    %362 = vector.load %arg33[%c1_81, %c0_82] : memref<16x32xf32, #tpu.memory_space<vmem>>, vector<1x32xf32>
    tpu.vector_store %arg33[%c1_81, %c0_82], %361 {strides = array<i32>} : memref<16x32xf32, #tpu.memory_space<vmem>>, vector<1x32xf32>,
    %363 = vector.extract_strided_slice %254 {offsets = [1, 0], sizes = [1, 32], strides = [1, 1]} : vector<2x32xf32> to vector<1x32xf32>
    %c9 = arith.constant 9 : index
    %c0_83 = arith.constant 0 : index
    %364 = vector.load %arg33[%c9, %c0_83] : memref<16x32xf32, #tpu.memory_space<vmem>>, vector<1x32xf32>
    tpu.vector_store %arg33[%c9, %c0_83], %363 {strides = array<i32>} : memref<16x32xf32, #tpu.memory_space<vmem>>, vector<1x32xf32>,
    %365 = vector.extract_strided_slice %271 {offsets = [0, 0], sizes = [1, 32], strides = [1, 1]} : vector<2x32xf32> to vector<1x32xf32>
    %c2 = arith.constant 2 : index
    %c0_84 = arith.constant 0 : index
    %366 = vector.load %arg33[%c2, %c0_84] : memref<16x32xf32, #tpu.memory_space<vmem>>, vector<1x32xf32>
    tpu.vector_store %arg33[%c2, %c0_84], %365 {strides = array<i32>} : memref<16x32xf32, #tpu.memory_space<vmem>>, vector<1x32xf32>,
    %367 = vector.extract_strided_slice %271 {offsets = [1, 0], sizes = [1, 32], strides = [1, 1]} : vector<2x32xf32> to vector<1x32xf32>
    %c10 = arith.constant 10 : index
    %c0_85 = arith.constant 0 : index
    %368 = vector.load %arg33[%c10, %c0_85] : memref<16x32xf32, #tpu.memory_space<vmem>>, vector<1x32xf32>
    tpu.vector_store %arg33[%c10, %c0_85], %367 {strides = array<i32>} : memref<16x32xf32, #tpu.memory_space<vmem>>, vector<1x32xf32>,
    %369 = vector.extract_strided_slice %288 {offsets = [0, 0], sizes = [1, 32], strides = [1, 1]} : vector<2x32xf32> to vector<1x32xf32>
    %c3 = arith.constant 3 : index
    %c0_86 = arith.constant 0 : index
    %370 = vector.load %arg33[%c3, %c0_86] : memref<16x32xf32, #tpu.memory_space<vmem>>, vector<1x32xf32>
    tpu.vector_store %arg33[%c3, %c0_86], %369 {strides = array<i32>} : memref<16x32xf32, #tpu.memory_space<vmem>>, vector<1x32xf32>,
    %371 = vector.extract_strided_slice %288 {offsets = [1, 0], sizes = [1, 32], strides = [1, 1]} : vector<2x32xf32> to vector<1x32xf32>
    %c11 = arith.constant 11 : index
    %c0_87 = arith.constant 0 : index
    %372 = vector.load %arg33[%c11, %c0_87] : memref<16x32xf32, #tpu.memory_space<vmem>>, vector<1x32xf32>
    tpu.vector_store %arg33[%c11, %c0_87], %371 {strides = array<i32>} : memref<16x32xf32, #tpu.memory_space<vmem>>, vector<1x32xf32>,
    %373 = vector.extract_strided_slice %305 {offsets = [0, 0], sizes = [1, 32], strides = [1, 1]} : vector<2x32xf32> to vector<1x32xf32>
    %c4 = arith.constant 4 : index
    %c0_88 = arith.constant 0 : index
    %374 = vector.load %arg33[%c4, %c0_88] : memref<16x32xf32, #tpu.memory_space<vmem>>, vector<1x32xf32>
    tpu.vector_store %arg33[%c4, %c0_88], %373 {strides = array<i32>} : memref<16x32xf32, #tpu.memory_space<vmem>>, vector<1x32xf32>,
    %375 = vector.extract_strided_slice %305 {offsets = [1, 0], sizes = [1, 32], strides = [1, 1]} : vector<2x32xf32> to vector<1x32xf32>
    %c12 = arith.constant 12 : index
    %c0_89 = arith.constant 0 : index
    %376 = vector.load %arg33[%c12, %c0_89] : memref<16x32xf32, #tpu.memory_space<vmem>>, vector<1x32xf32>
    tpu.vector_store %arg33[%c12, %c0_89], %375 {strides = array<i32>} : memref<16x32xf32, #tpu.memory_space<vmem>>, vector<1x32xf32>,
    %377 = vector.extract_strided_slice %322 {offsets = [0, 0], sizes = [1, 32], strides = [1, 1]} : vector<2x32xf32> to vector<1x32xf32>
    %c5 = arith.constant 5 : index
    %c0_90 = arith.constant 0 : index
    %378 = vector.load %arg33[%c5, %c0_90] : memref<16x32xf32, #tpu.memory_space<vmem>>, vector<1x32xf32>
    tpu.vector_store %arg33[%c5, %c0_90], %377 {strides = array<i32>} : memref<16x32xf32, #tpu.memory_space<vmem>>, vector<1x32xf32>,
    %379 = vector.extract_strided_slice %322 {offsets = [1, 0], sizes = [1, 32], strides = [1, 1]} : vector<2x32xf32> to vector<1x32xf32>
    %c13 = arith.constant 13 : index
    %c0_91 = arith.constant 0 : index
    %380 = vector.load %arg33[%c13, %c0_91] : memref<16x32xf32, #tpu.memory_space<vmem>>, vector<1x32xf32>
    tpu.vector_store %arg33[%c13, %c0_91], %379 {strides = array<i32>} : memref<16x32xf32, #tpu.memory_space<vmem>>, vector<1x32xf32>,
    %381 = vector.extract_strided_slice %339 {offsets = [0, 0], sizes = [1, 32], strides = [1, 1]} : vector<2x32xf32> to vector<1x32xf32>
    %c6 = arith.constant 6 : index
    %c0_92 = arith.constant 0 : index
    %382 = vector.load %arg33[%c6, %c0_92] : memref<16x32xf32, #tpu.memory_space<vmem>>, vector<1x32xf32>
    tpu.vector_store %arg33[%c6, %c0_92], %381 {strides = array<i32>} : memref<16x32xf32, #tpu.memory_space<vmem>>, vector<1x32xf32>,
    %383 = vector.extract_strided_slice %339 {offsets = [1, 0], sizes = [1, 32], strides = [1, 1]} : vector<2x32xf32> to vector<1x32xf32>
    %c14 = arith.constant 14 : index
    %c0_93 = arith.constant 0 : index
    %384 = vector.load %arg33[%c14, %c0_93] : memref<16x32xf32, #tpu.memory_space<vmem>>, vector<1x32xf32>
    tpu.vector_store %arg33[%c14, %c0_93], %383 {strides = array<i32>} : memref<16x32xf32, #tpu.memory_space<vmem>>, vector<1x32xf32>,
    %385 = vector.extract_strided_slice %356 {offsets = [0, 0], sizes = [1, 32], strides = [1, 1]} : vector<2x32xf32> to vector<1x32xf32>
    %c7 = arith.constant 7 : index
    %c0_94 = arith.constant 0 : index
    %386 = vector.load %arg33[%c7, %c0_94] : memref<16x32xf32, #tpu.memory_space<vmem>>, vector<1x32xf32>
    tpu.vector_store %arg33[%c7, %c0_94], %385 {strides = array<i32>} : memref<16x32xf32, #tpu.memory_space<vmem>>, vector<1x32xf32>,
    %387 = vector.extract_strided_slice %356 {offsets = [1, 0], sizes = [1, 32], strides = [1, 1]} : vector<2x32xf32> to vector<1x32xf32>
    %c15 = arith.constant 15 : index
    %c0_95 = arith.constant 0 : index
    %388 = vector.load %arg33[%c15, %c0_95] : memref<16x32xf32, #tpu.memory_space<vmem>>, vector<1x32xf32>
    tpu.vector_store %arg33[%c15, %c0_95], %387 {strides = array<i32>} : memref<16x32xf32, #tpu.memory_space<vmem>>, vector<1x32xf32>,
    %c0_96 = arith.constant 0 : index
    %c0_97 = arith.constant 0 : index
    %389 = vector.load %arg33[%c0_96, %c0_97] : memref<16x32xf32, #tpu.memory_space<vmem>>, vector<16x32xf32>
    %c0_98 = arith.constant 0 : index
    %c0_99 = arith.constant 0 : index
    %390 = vector.load %arg6[%c0_98, %c0_99] : memref<32x32xf32, #tpu.memory_space<vmem>>, vector<32x32xf32>
    %cst_100 = arith.constant dense<0.000000e+00> : vector<16x32xf32>
    %391 = tpu.matmul %389, %390, %cst_100 {dimension_numbers = #tpu.dot_dimension_numbers<[1], [0], [0], [1], [0, 0, 1, 1], [], []>} : vector<16x32xf32>, vector<32x32xf32>, vector<16x32xf32> -> vector<16x32xf32>
    %c0_101 = arith.constant 0 : index
    %c0_102 = arith.constant 0 : index
    %392 = vector.load %arg7[%c0_101, %c0_102] : memref<1x32xf32, #tpu.memory_space<vmem>>, vector<1x32xf32>
    %393 = vector.broadcast %392 : vector<1x32xf32> to vector<16x32xf32>
    %394 = arith.addf %391, %393 : vector<16x32xf32>
    %395 = tpu.iota {dimensions = array<i32: 0>} : vector<16x8xi32>
    %396 = tpu.iota {dimensions = array<i32: 1>} : vector<16x8xi32>
    %c2_i32 = arith.constant 2 : i32
    %397 = vector.broadcast %c2_i32 : i32 to vector<16x8xi32>
    %398 = arith.muli %397, %396 : vector<16x8xi32>
    %399 = arith.cmpi sle, %398, %395 : vector<16x8xi32>
    %c2_i32_103 = arith.constant 2 : i32
    %400 = vector.broadcast %c2_i32_103 : i32 to vector<16x8xi32>
    %401 = arith.muli %400, %396 : vector<16x8xi32>
    %c1_i32 = arith.constant 1 : i32
    %402 = vector.broadcast %c1_i32 : i32 to vector<16x8xi32>
    %403 = arith.addi %401, %402 : vector<16x8xi32>
    %404 = arith.cmpi sle, %395, %403 : vector<16x8xi32>
    %405 = arith.andi %399, %404 : vector<16x8xi1>
    %406 = arith.extui %405 : vector<16x8xi1> to vector<16x8xi32>
    %407 = arith.sitofp %406 : vector<16x8xi32> to vector<16x8xf32>
    %408 = tpu.iota {dimensions = array<i32: 0>} : vector<32x16xi32>
    %409 = tpu.iota {dimensions = array<i32: 1>} : vector<32x16xi32>
    %c2_i32_104 = arith.constant 2 : i32
    %410 = vector.broadcast %c2_i32_104 : i32 to vector<32x16xi32>
    %411 = arith.muli %410, %409 : vector<32x16xi32>
    %412 = arith.cmpi sle, %411, %408 : vector<32x16xi32>
    %c2_i32_105 = arith.constant 2 : i32
    %413 = vector.broadcast %c2_i32_105 : i32 to vector<32x16xi32>
    %414 = arith.muli %413, %409 : vector<32x16xi32>
    %c1_i32_106 = arith.constant 1 : i32
    %415 = vector.broadcast %c1_i32_106 : i32 to vector<32x16xi32>
    %416 = arith.addi %414, %415 : vector<32x16xi32>
    %417 = arith.cmpi sle, %408, %416 : vector<32x16xi32>
    %418 = arith.andi %412, %417 : vector<32x16xi1>
    %419 = arith.extui %418 : vector<32x16xi1> to vector<32x16xi32>
    %420 = arith.sitofp %419 : vector<32x16xi32> to vector<32x16xf32>
    %421 = tpu.iota {dimensions = array<i32: 0>} : vector<64x32xi32>
    %422 = tpu.iota {dimensions = array<i32: 1>} : vector<64x32xi32>
    %c2_i32_107 = arith.constant 2 : i32
    %423 = vector.broadcast %c2_i32_107 : i32 to vector<64x32xi32>
    %424 = arith.muli %423, %422 : vector<64x32xi32>
    %425 = arith.cmpi sle, %424, %421 : vector<64x32xi32>
    %c2_i32_108 = arith.constant 2 : i32
    %426 = vector.broadcast %c2_i32_108 : i32 to vector<64x32xi32>
    %427 = arith.muli %426, %422 : vector<64x32xi32>
    %c1_i32_109 = arith.constant 1 : i32
    %428 = vector.broadcast %c1_i32_109 : i32 to vector<64x32xi32>
    %429 = arith.addi %427, %428 : vector<64x32xi32>
    %430 = arith.cmpi sle, %421, %429 : vector<64x32xi32>
    %431 = arith.andi %425, %430 : vector<64x32xi1>
    %432 = arith.extui %431 : vector<64x32xi1> to vector<64x32xi32>
    %433 = arith.sitofp %432 : vector<64x32xi32> to vector<64x32xf32>
    %434 = tpu.iota {dimensions = array<i32: 0>} : vector<16x16xi32>
    %435 = tpu.iota {dimensions = array<i32: 1>} : vector<16x16xi32>
    %c1_i32_110 = arith.constant 1 : i32
    %436 = vector.broadcast %c1_i32_110 : i32 to vector<16x16xi32>
    %437 = arith.subi %434, %436 : vector<16x16xi32>
    %438 = arith.cmpi eq, %435, %437 : vector<16x16xi32>
    %439 = arith.extui %438 : vector<16x16xi1> to vector<16x16xi32>
    %440 = arith.sitofp %439 : vector<16x16xi32> to vector<16x16xf32>
    %c1_i32_111 = arith.constant 1 : i32
    %441 = vector.broadcast %c1_i32_111 : i32 to vector<16x16xi32>
    %442 = arith.addi %434, %441 : vector<16x16xi32>
    %443 = arith.cmpi eq, %435, %442 : vector<16x16xi32>
    %444 = arith.extui %443 : vector<16x16xi1> to vector<16x16xi32>
    %445 = arith.sitofp %444 : vector<16x16xi32> to vector<16x16xf32>
    %446 = tpu.iota {dimensions = array<i32: 0>} : vector<32x32xi32>
    %447 = tpu.iota {dimensions = array<i32: 1>} : vector<32x32xi32>
    %c1_i32_112 = arith.constant 1 : i32
    %448 = vector.broadcast %c1_i32_112 : i32 to vector<32x32xi32>
    %449 = arith.subi %446, %448 : vector<32x32xi32>
    %450 = arith.cmpi eq, %447, %449 : vector<32x32xi32>
    %451 = arith.extui %450 : vector<32x32xi1> to vector<32x32xi32>
    %452 = arith.sitofp %451 : vector<32x32xi32> to vector<32x32xf32>
    %c1_i32_113 = arith.constant 1 : i32
    %453 = vector.broadcast %c1_i32_113 : i32 to vector<32x32xi32>
    %454 = arith.addi %446, %453 : vector<32x32xi32>
    %455 = arith.cmpi eq, %447, %454 : vector<32x32xi32>
    %456 = arith.extui %455 : vector<32x32xi1> to vector<32x32xi32>
    %457 = arith.sitofp %456 : vector<32x32xi32> to vector<32x32xf32>
    %458 = tpu.iota {dimensions = array<i32: 0>} : vector<64x64xi32>
    %459 = tpu.iota {dimensions = array<i32: 1>} : vector<64x64xi32>
    %c1_i32_114 = arith.constant 1 : i32
    %460 = vector.broadcast %c1_i32_114 : i32 to vector<64x64xi32>
    %461 = arith.subi %458, %460 : vector<64x64xi32>
    %462 = arith.cmpi eq, %459, %461 : vector<64x64xi32>
    %463 = arith.extui %462 : vector<64x64xi1> to vector<64x64xi32>
    %464 = arith.sitofp %463 : vector<64x64xi32> to vector<64x64xf32>
    %c1_i32_115 = arith.constant 1 : i32
    %465 = vector.broadcast %c1_i32_115 : i32 to vector<64x64xi32>
    %466 = arith.addi %458, %465 : vector<64x64xi32>
    %467 = arith.cmpi eq, %459, %466 : vector<64x64xi32>
    %468 = arith.extui %467 : vector<64x64xi1> to vector<64x64xi32>
    %469 = arith.sitofp %468 : vector<64x64xi32> to vector<64x64xf32>
    %470 = vector.extract_strided_slice %394 {offsets = [0, 0], sizes = [8, 32], strides = [1, 1]} : vector<16x32xf32> to vector<8x32xf32>
    %cst_116 = arith.constant dense<0.000000e+00> : vector<16x32xf32>
    %471 = tpu.matmul %407, %470, %cst_116 {dimension_numbers = #tpu.dot_dimension_numbers<[1], [0], [0], [1], [0, 0, 1, 1], [], []>} : vector<16x8xf32>, vector<8x32xf32>, vector<16x32xf32> -> vector<16x32xf32>
    %c0_117 = arith.constant 0 : index
    %c0_118 = arith.constant 0 : index
    %472 = vector.load %arg9[%c0_117, %c0_118] : memref<1x16xf32, #tpu.memory_space<vmem>>, vector<1x16xf32>
    %c0_119 = arith.constant 0 : index
    %c0_120 = arith.constant 0 : index
    %473 = vector.load %arg10[%c0_119, %c0_120] : memref<1x16xf32, #tpu.memory_space<vmem>>, vector<1x16xf32>
    %c0_121 = arith.constant 0 : index
    %c0_122 = arith.constant 0 : index
    %474 = vector.load %arg11[%c0_121, %c0_122] : memref<1x16xf32, #tpu.memory_space<vmem>>, vector<1x16xf32>
    %cst_123 = arith.constant dense<0.000000e+00> : vector<16x32xf32>
    %475 = tpu.matmul %440, %471, %cst_123 {dimension_numbers = #tpu.dot_dimension_numbers<[1], [0], [0], [1], [0, 0, 1, 1], [], []>} : vector<16x16xf32>, vector<16x32xf32>, vector<16x32xf32> -> vector<16x32xf32>
    %c0_124 = arith.constant 0 : index
    %c0_125 = arith.constant 0 : index
    %c0_126 = arith.constant 0 : index
    %476 = vector.load %arg8[%c0_124, %c0_125, %c0_126] : memref<3x32x16xf32, #tpu.memory_space<vmem>>, vector<1x32x16xf32>
    %477 = vector.shape_cast %476 : vector<1x32x16xf32> to vector<32x16xf32>
    %cst_127 = arith.constant dense<0.000000e+00> : vector<16x16xf32>
    %478 = tpu.matmul %475, %477, %cst_127 {dimension_numbers = #tpu.dot_dimension_numbers<[1], [0], [0], [1], [0, 0, 1, 1], [], []>} : vector<16x32xf32>, vector<32x16xf32>, vector<16x16xf32> -> vector<16x16xf32>
    %c1_128 = arith.constant 1 : index
    %c0_129 = arith.constant 0 : index
    %c0_130 = arith.constant 0 : index
    %479 = vector.load %arg8[%c1_128, %c0_129, %c0_130] : memref<3x32x16xf32, #tpu.memory_space<vmem>>, vector<1x32x16xf32>
    %480 = vector.shape_cast %479 : vector<1x32x16xf32> to vector<32x16xf32>
    %cst_131 = arith.constant dense<0.000000e+00> : vector<16x16xf32>
    %481 = tpu.matmul %471, %480, %cst_131 {dimension_numbers = #tpu.dot_dimension_numbers<[1], [0], [0], [1], [0, 0, 1, 1], [], []>} : vector<16x32xf32>, vector<32x16xf32>, vector<16x16xf32> -> vector<16x16xf32>
    %482 = arith.addf %478, %481 : vector<16x16xf32>
    %cst_132 = arith.constant dense<0.000000e+00> : vector<16x32xf32>
    %483 = tpu.matmul %445, %471, %cst_132 {dimension_numbers = #tpu.dot_dimension_numbers<[1], [0], [0], [1], [0, 0, 1, 1], [], []>} : vector<16x16xf32>, vector<16x32xf32>, vector<16x32xf32> -> vector<16x32xf32>
    %c2_133 = arith.constant 2 : index
    %c0_134 = arith.constant 0 : index
    %c0_135 = arith.constant 0 : index
    %484 = vector.load %arg8[%c2_133, %c0_134, %c0_135] : memref<3x32x16xf32, #tpu.memory_space<vmem>>, vector<1x32x16xf32>
    %485 = vector.shape_cast %484 : vector<1x32x16xf32> to vector<32x16xf32>
    %cst_136 = arith.constant dense<0.000000e+00> : vector<16x16xf32>
    %486 = tpu.matmul %483, %485, %cst_136 {dimension_numbers = #tpu.dot_dimension_numbers<[1], [0], [0], [1], [0, 0, 1, 1], [], []>} : vector<16x32xf32>, vector<32x16xf32>, vector<16x16xf32> -> vector<16x16xf32>
    %487 = arith.addf %482, %486 : vector<16x16xf32>
    %488 = vector.broadcast %472 : vector<1x16xf32> to vector<16x16xf32>
    %489 = arith.addf %487, %488 : vector<16x16xf32>
    %490 = vector.broadcast %473 : vector<1x16xf32> to vector<16x16xf32>
    %491 = arith.mulf %489, %490 : vector<16x16xf32>
    %492 = vector.broadcast %474 : vector<1x16xf32> to vector<16x16xf32>
    %493 = arith.addf %491, %492 : vector<16x16xf32>
    %cst_137 = arith.constant 0.000000e+00 : f32
    %494 = vector.broadcast %cst_137 : f32 to vector<16x16xf32>
    %495 = arith.maximumf %493, %494 : vector<16x16xf32>
    %c0_138 = arith.constant 0 : index
    %c0_139 = arith.constant 0 : index
    %496 = vector.load %arg13[%c0_138, %c0_139] : memref<1x16xf32, #tpu.memory_space<vmem>>, vector<1x16xf32>
    %c0_140 = arith.constant 0 : index
    %c0_141 = arith.constant 0 : index
    %497 = vector.load %arg14[%c0_140, %c0_141] : memref<1x16xf32, #tpu.memory_space<vmem>>, vector<1x16xf32>
    %c0_142 = arith.constant 0 : index
    %c0_143 = arith.constant 0 : index
    %498 = vector.load %arg15[%c0_142, %c0_143] : memref<1x16xf32, #tpu.memory_space<vmem>>, vector<1x16xf32>
    %cst_144 = arith.constant dense<0.000000e+00> : vector<16x16xf32>
    %499 = tpu.matmul %440, %495, %cst_144 {dimension_numbers = #tpu.dot_dimension_numbers<[1], [0], [0], [1], [0, 0, 1, 1], [], []>} : vector<16x16xf32>, vector<16x16xf32>, vector<16x16xf32> -> vector<16x16xf32>
    %c0_145 = arith.constant 0 : index
    %c0_146 = arith.constant 0 : index
    %c0_147 = arith.constant 0 : index
    %500 = vector.load %arg12[%c0_145, %c0_146, %c0_147] : memref<3x16x16xf32, #tpu.memory_space<vmem>>, vector<1x16x16xf32>
    %501 = vector.shape_cast %500 : vector<1x16x16xf32> to vector<16x16xf32>
    %cst_148 = arith.constant dense<0.000000e+00> : vector<16x16xf32>
    %502 = tpu.matmul %499, %501, %cst_148 {dimension_numbers = #tpu.dot_dimension_numbers<[1], [0], [0], [1], [0, 0, 1, 1], [], []>} : vector<16x16xf32>, vector<16x16xf32>, vector<16x16xf32> -> vector<16x16xf32>
    %c1_149 = arith.constant 1 : index
    %c0_150 = arith.constant 0 : index
    %c0_151 = arith.constant 0 : index
    %503 = vector.load %arg12[%c1_149, %c0_150, %c0_151] : memref<3x16x16xf32, #tpu.memory_space<vmem>>, vector<1x16x16xf32>
    %504 = vector.shape_cast %503 : vector<1x16x16xf32> to vector<16x16xf32>
    %cst_152 = arith.constant dense<0.000000e+00> : vector<16x16xf32>
    %505 = tpu.matmul %495, %504, %cst_152 {dimension_numbers = #tpu.dot_dimension_numbers<[1], [0], [0], [1], [0, 0, 1, 1], [], []>} : vector<16x16xf32>, vector<16x16xf32>, vector<16x16xf32> -> vector<16x16xf32>
    %506 = arith.addf %502, %505 : vector<16x16xf32>
    %cst_153 = arith.constant dense<0.000000e+00> : vector<16x16xf32>
    %507 = tpu.matmul %445, %495, %cst_153 {dimension_numbers = #tpu.dot_dimension_numbers<[1], [0], [0], [1], [0, 0, 1, 1], [], []>} : vector<16x16xf32>, vector<16x16xf32>, vector<16x16xf32> -> vector<16x16xf32>
    %c2_154 = arith.constant 2 : index
    %c0_155 = arith.constant 0 : index
    %c0_156 = arith.constant 0 : index
    %508 = vector.load %arg12[%c2_154, %c0_155, %c0_156] : memref<3x16x16xf32, #tpu.memory_space<vmem>>, vector<1x16x16xf32>
    %509 = vector.shape_cast %508 : vector<1x16x16xf32> to vector<16x16xf32>
    %cst_157 = arith.constant dense<0.000000e+00> : vector<16x16xf32>
    %510 = tpu.matmul %507, %509, %cst_157 {dimension_numbers = #tpu.dot_dimension_numbers<[1], [0], [0], [1], [0, 0, 1, 1], [], []>} : vector<16x16xf32>, vector<16x16xf32>, vector<16x16xf32> -> vector<16x16xf32>
    %511 = arith.addf %506, %510 : vector<16x16xf32>
    %512 = vector.broadcast %496 : vector<1x16xf32> to vector<16x16xf32>
    %513 = arith.addf %511, %512 : vector<16x16xf32>
    %514 = vector.broadcast %497 : vector<1x16xf32> to vector<16x16xf32>
    %515 = arith.mulf %513, %514 : vector<16x16xf32>
    %516 = vector.broadcast %498 : vector<1x16xf32> to vector<16x16xf32>
    %517 = arith.addf %515, %516 : vector<16x16xf32>
    %cst_158 = arith.constant dense<0.000000e+00> : vector<32x16xf32>
    %518 = tpu.matmul %420, %517, %cst_158 {dimension_numbers = #tpu.dot_dimension_numbers<[1], [0], [0], [1], [0, 0, 1, 1], [], []>} : vector<32x16xf32>, vector<16x16xf32>, vector<32x16xf32> -> vector<32x16xf32>
    %c0_159 = arith.constant 0 : index
    %c0_160 = arith.constant 0 : index
    %519 = vector.load %arg17[%c0_159, %c0_160] : memref<1x8xf32, #tpu.memory_space<vmem>>, vector<1x8xf32>
    %c0_161 = arith.constant 0 : index
    %c0_162 = arith.constant 0 : index
    %520 = vector.load %arg18[%c0_161, %c0_162] : memref<1x8xf32, #tpu.memory_space<vmem>>, vector<1x8xf32>
    %c0_163 = arith.constant 0 : index
    %c0_164 = arith.constant 0 : index
    %521 = vector.load %arg19[%c0_163, %c0_164] : memref<1x8xf32, #tpu.memory_space<vmem>>, vector<1x8xf32>
    %cst_165 = arith.constant dense<0.000000e+00> : vector<32x16xf32>
    %522 = tpu.matmul %452, %518, %cst_165 {dimension_numbers = #tpu.dot_dimension_numbers<[1], [0], [0], [1], [0, 0, 1, 1], [], []>} : vector<32x32xf32>, vector<32x16xf32>, vector<32x16xf32> -> vector<32x16xf32>
    %c0_166 = arith.constant 0 : index
    %c0_167 = arith.constant 0 : index
    %c0_168 = arith.constant 0 : index
    %523 = vector.load %arg16[%c0_166, %c0_167, %c0_168] : memref<3x16x8xf32, #tpu.memory_space<vmem>>, vector<1x16x8xf32>
    %524 = vector.shape_cast %523 : vector<1x16x8xf32> to vector<16x8xf32>
    %cst_169 = arith.constant dense<0.000000e+00> : vector<32x8xf32>
    %525 = tpu.matmul %522, %524, %cst_169 {dimension_numbers = #tpu.dot_dimension_numbers<[1], [0], [0], [1], [0, 0, 1, 1], [], []>} : vector<32x16xf32>, vector<16x8xf32>, vector<32x8xf32> -> vector<32x8xf32>
    %c1_170 = arith.constant 1 : index
    %c0_171 = arith.constant 0 : index
    %c0_172 = arith.constant 0 : index
    %526 = vector.load %arg16[%c1_170, %c0_171, %c0_172] : memref<3x16x8xf32, #tpu.memory_space<vmem>>, vector<1x16x8xf32>
    %527 = vector.shape_cast %526 : vector<1x16x8xf32> to vector<16x8xf32>
    %cst_173 = arith.constant dense<0.000000e+00> : vector<32x8xf32>
    %528 = tpu.matmul %518, %527, %cst_173 {dimension_numbers = #tpu.dot_dimension_numbers<[1], [0], [0], [1], [0, 0, 1, 1], [], []>} : vector<32x16xf32>, vector<16x8xf32>, vector<32x8xf32> -> vector<32x8xf32>
    %529 = arith.addf %525, %528 : vector<32x8xf32>
    %cst_174 = arith.constant dense<0.000000e+00> : vector<32x16xf32>
    %530 = tpu.matmul %457, %518, %cst_174 {dimension_numbers = #tpu.dot_dimension_numbers<[1], [0], [0], [1], [0, 0, 1, 1], [], []>} : vector<32x32xf32>, vector<32x16xf32>, vector<32x16xf32> -> vector<32x16xf32>
    %c2_175 = arith.constant 2 : index
    %c0_176 = arith.constant 0 : index
    %c0_177 = arith.constant 0 : index
    %531 = vector.load %arg16[%c2_175, %c0_176, %c0_177] : memref<3x16x8xf32, #tpu.memory_space<vmem>>, vector<1x16x8xf32>
    %532 = vector.shape_cast %531 : vector<1x16x8xf32> to vector<16x8xf32>
    %cst_178 = arith.constant dense<0.000000e+00> : vector<32x8xf32>
    %533 = tpu.matmul %530, %532, %cst_178 {dimension_numbers = #tpu.dot_dimension_numbers<[1], [0], [0], [1], [0, 0, 1, 1], [], []>} : vector<32x16xf32>, vector<16x8xf32>, vector<32x8xf32> -> vector<32x8xf32>
    %534 = arith.addf %529, %533 : vector<32x8xf32>
    %535 = vector.broadcast %519 : vector<1x8xf32> to vector<32x8xf32>
    %536 = arith.addf %534, %535 : vector<32x8xf32>
    %537 = vector.broadcast %520 : vector<1x8xf32> to vector<32x8xf32>
    %538 = arith.mulf %536, %537 : vector<32x8xf32>
    %539 = vector.broadcast %521 : vector<1x8xf32> to vector<32x8xf32>
    %540 = arith.addf %538, %539 : vector<32x8xf32>
    %cst_179 = arith.constant 0.000000e+00 : f32
    %541 = vector.broadcast %cst_179 : f32 to vector<32x8xf32>
    %542 = arith.maximumf %540, %541 : vector<32x8xf32>
    %c0_180 = arith.constant 0 : index
    %c0_181 = arith.constant 0 : index
    %543 = vector.load %arg21[%c0_180, %c0_181] : memref<1x8xf32, #tpu.memory_space<vmem>>, vector<1x8xf32>
    %c0_182 = arith.constant 0 : index
    %c0_183 = arith.constant 0 : index
    %544 = vector.load %arg22[%c0_182, %c0_183] : memref<1x8xf32, #tpu.memory_space<vmem>>, vector<1x8xf32>
    %c0_184 = arith.constant 0 : index
    %c0_185 = arith.constant 0 : index
    %545 = vector.load %arg23[%c0_184, %c0_185] : memref<1x8xf32, #tpu.memory_space<vmem>>, vector<1x8xf32>
    %cst_186 = arith.constant dense<0.000000e+00> : vector<32x8xf32>
    %546 = tpu.matmul %452, %542, %cst_186 {dimension_numbers = #tpu.dot_dimension_numbers<[1], [0], [0], [1], [0, 0, 1, 1], [], []>} : vector<32x32xf32>, vector<32x8xf32>, vector<32x8xf32> -> vector<32x8xf32>
    %c0_187 = arith.constant 0 : index
    %c0_188 = arith.constant 0 : index
    %c0_189 = arith.constant 0 : index
    %547 = vector.load %arg20[%c0_187, %c0_188, %c0_189] : memref<3x8x8xf32, #tpu.memory_space<vmem>>, vector<1x8x8xf32>
    %548 = vector.shape_cast %547 : vector<1x8x8xf32> to vector<8x8xf32>
    %cst_190 = arith.constant dense<0.000000e+00> : vector<32x8xf32>
    %549 = tpu.matmul %546, %548, %cst_190 {dimension_numbers = #tpu.dot_dimension_numbers<[1], [0], [0], [1], [0, 0, 1, 1], [], []>} : vector<32x8xf32>, vector<8x8xf32>, vector<32x8xf32> -> vector<32x8xf32>
    %c1_191 = arith.constant 1 : index
    %c0_192 = arith.constant 0 : index
    %c0_193 = arith.constant 0 : index
    %550 = vector.load %arg20[%c1_191, %c0_192, %c0_193] : memref<3x8x8xf32, #tpu.memory_space<vmem>>, vector<1x8x8xf32>
    %551 = vector.shape_cast %550 : vector<1x8x8xf32> to vector<8x8xf32>
    %cst_194 = arith.constant dense<0.000000e+00> : vector<32x8xf32>
    %552 = tpu.matmul %542, %551, %cst_194 {dimension_numbers = #tpu.dot_dimension_numbers<[1], [0], [0], [1], [0, 0, 1, 1], [], []>} : vector<32x8xf32>, vector<8x8xf32>, vector<32x8xf32> -> vector<32x8xf32>
    %553 = arith.addf %549, %552 : vector<32x8xf32>
    %cst_195 = arith.constant dense<0.000000e+00> : vector<32x8xf32>
    %554 = tpu.matmul %457, %542, %cst_195 {dimension_numbers = #tpu.dot_dimension_numbers<[1], [0], [0], [1], [0, 0, 1, 1], [], []>} : vector<32x32xf32>, vector<32x8xf32>, vector<32x8xf32> -> vector<32x8xf32>
    %c2_196 = arith.constant 2 : index
    %c0_197 = arith.constant 0 : index
    %c0_198 = arith.constant 0 : index
    %555 = vector.load %arg20[%c2_196, %c0_197, %c0_198] : memref<3x8x8xf32, #tpu.memory_space<vmem>>, vector<1x8x8xf32>
    %556 = vector.shape_cast %555 : vector<1x8x8xf32> to vector<8x8xf32>
    %cst_199 = arith.constant dense<0.000000e+00> : vector<32x8xf32>
    %557 = tpu.matmul %554, %556, %cst_199 {dimension_numbers = #tpu.dot_dimension_numbers<[1], [0], [0], [1], [0, 0, 1, 1], [], []>} : vector<32x8xf32>, vector<8x8xf32>, vector<32x8xf32> -> vector<32x8xf32>
    %558 = arith.addf %553, %557 : vector<32x8xf32>
    %559 = vector.broadcast %543 : vector<1x8xf32> to vector<32x8xf32>
    %560 = arith.addf %558, %559 : vector<32x8xf32>
    %561 = vector.broadcast %544 : vector<1x8xf32> to vector<32x8xf32>
    %562 = arith.mulf %560, %561 : vector<32x8xf32>
    %563 = vector.broadcast %545 : vector<1x8xf32> to vector<32x8xf32>
    %564 = arith.addf %562, %563 : vector<32x8xf32>
    %cst_200 = arith.constant dense<0.000000e+00> : vector<64x8xf32>
    %565 = tpu.matmul %433, %564, %cst_200 {dimension_numbers = #tpu.dot_dimension_numbers<[1], [0], [0], [1], [0, 0, 1, 1], [], []>} : vector<64x32xf32>, vector<32x8xf32>, vector<64x8xf32> -> vector<64x8xf32>
    %c0_201 = arith.constant 0 : index
    %c0_202 = arith.constant 0 : index
    %566 = vector.load %arg25[%c0_201, %c0_202] : memref<1x4xf32, #tpu.memory_space<vmem>>, vector<1x4xf32>
    %c0_203 = arith.constant 0 : index
    %c0_204 = arith.constant 0 : index
    %567 = vector.load %arg26[%c0_203, %c0_204] : memref<1x4xf32, #tpu.memory_space<vmem>>, vector<1x4xf32>
    %c0_205 = arith.constant 0 : index
    %c0_206 = arith.constant 0 : index
    %568 = vector.load %arg27[%c0_205, %c0_206] : memref<1x4xf32, #tpu.memory_space<vmem>>, vector<1x4xf32>
    %cst_207 = arith.constant dense<0.000000e+00> : vector<64x8xf32>
    %569 = tpu.matmul %464, %565, %cst_207 {dimension_numbers = #tpu.dot_dimension_numbers<[1], [0], [0], [1], [0, 0, 1, 1], [], []>} : vector<64x64xf32>, vector<64x8xf32>, vector<64x8xf32> -> vector<64x8xf32>
    %c0_208 = arith.constant 0 : index
    %c0_209 = arith.constant 0 : index
    %c0_210 = arith.constant 0 : index
    %570 = vector.load %arg24[%c0_208, %c0_209, %c0_210] : memref<3x8x4xf32, #tpu.memory_space<vmem>>, vector<1x8x4xf32>
    %571 = vector.shape_cast %570 : vector<1x8x4xf32> to vector<8x4xf32>
    %cst_211 = arith.constant dense<0.000000e+00> : vector<64x4xf32>
    %572 = tpu.matmul %569, %571, %cst_211 {dimension_numbers = #tpu.dot_dimension_numbers<[1], [0], [0], [1], [0, 0, 1, 1], [], []>} : vector<64x8xf32>, vector<8x4xf32>, vector<64x4xf32> -> vector<64x4xf32>
    %c1_212 = arith.constant 1 : index
    %c0_213 = arith.constant 0 : index
    %c0_214 = arith.constant 0 : index
    %573 = vector.load %arg24[%c1_212, %c0_213, %c0_214] : memref<3x8x4xf32, #tpu.memory_space<vmem>>, vector<1x8x4xf32>
    %574 = vector.shape_cast %573 : vector<1x8x4xf32> to vector<8x4xf32>
    %cst_215 = arith.constant dense<0.000000e+00> : vector<64x4xf32>
    %575 = tpu.matmul %565, %574, %cst_215 {dimension_numbers = #tpu.dot_dimension_numbers<[1], [0], [0], [1], [0, 0, 1, 1], [], []>} : vector<64x8xf32>, vector<8x4xf32>, vector<64x4xf32> -> vector<64x4xf32>
    %576 = arith.addf %572, %575 : vector<64x4xf32>
    %cst_216 = arith.constant dense<0.000000e+00> : vector<64x8xf32>
    %577 = tpu.matmul %469, %565, %cst_216 {dimension_numbers = #tpu.dot_dimension_numbers<[1], [0], [0], [1], [0, 0, 1, 1], [], []>} : vector<64x64xf32>, vector<64x8xf32>, vector<64x8xf32> -> vector<64x8xf32>
    %c2_217 = arith.constant 2 : index
    %c0_218 = arith.constant 0 : index
    %c0_219 = arith.constant 0 : index
    %578 = vector.load %arg24[%c2_217, %c0_218, %c0_219] : memref<3x8x4xf32, #tpu.memory_space<vmem>>, vector<1x8x4xf32>
    %579 = vector.shape_cast %578 : vector<1x8x4xf32> to vector<8x4xf32>
    %cst_220 = arith.constant dense<0.000000e+00> : vector<64x4xf32>
    %580 = tpu.matmul %577, %579, %cst_220 {dimension_numbers = #tpu.dot_dimension_numbers<[1], [0], [0], [1], [0, 0, 1, 1], [], []>} : vector<64x8xf32>, vector<8x4xf32>, vector<64x4xf32> -> vector<64x4xf32>
    %581 = arith.addf %576, %580 : vector<64x4xf32>
    %582 = vector.broadcast %566 : vector<1x4xf32> to vector<64x4xf32>
    %583 = arith.addf %581, %582 : vector<64x4xf32>
    %584 = vector.broadcast %567 : vector<1x4xf32> to vector<64x4xf32>
    %585 = arith.mulf %583, %584 : vector<64x4xf32>
    %586 = vector.broadcast %568 : vector<1x4xf32> to vector<64x4xf32>
    %587 = arith.addf %585, %586 : vector<64x4xf32>
    %cst_221 = arith.constant 0.000000e+00 : f32
    %588 = vector.broadcast %cst_221 : f32 to vector<64x4xf32>
    %589 = arith.maximumf %587, %588 : vector<64x4xf32>
    %c0_222 = arith.constant 0 : index
    %c0_223 = arith.constant 0 : index
    %590 = vector.load %arg29[%c0_222, %c0_223] : memref<1x4xf32, #tpu.memory_space<vmem>>, vector<1x4xf32>
    %c0_224 = arith.constant 0 : index
    %c0_225 = arith.constant 0 : index
    %591 = vector.load %arg30[%c0_224, %c0_225] : memref<1x4xf32, #tpu.memory_space<vmem>>, vector<1x4xf32>
    %c0_226 = arith.constant 0 : index
    %c0_227 = arith.constant 0 : index
    %592 = vector.load %arg31[%c0_226, %c0_227] : memref<1x4xf32, #tpu.memory_space<vmem>>, vector<1x4xf32>
    %cst_228 = arith.constant dense<0.000000e+00> : vector<64x4xf32>
    %593 = tpu.matmul %464, %589, %cst_228 {dimension_numbers = #tpu.dot_dimension_numbers<[1], [0], [0], [1], [0, 0, 1, 1], [], []>} : vector<64x64xf32>, vector<64x4xf32>, vector<64x4xf32> -> vector<64x4xf32>
    %c0_229 = arith.constant 0 : index
    %c0_230 = arith.constant 0 : index
    %c0_231 = arith.constant 0 : index
    %594 = vector.load %arg28[%c0_229, %c0_230, %c0_231] : memref<3x4x4xf32, #tpu.memory_space<vmem>>, vector<1x4x4xf32>
    %595 = vector.shape_cast %594 : vector<1x4x4xf32> to vector<4x4xf32>
    %cst_232 = arith.constant dense<0.000000e+00> : vector<64x4xf32>
    %596 = tpu.matmul %593, %595, %cst_232 {dimension_numbers = #tpu.dot_dimension_numbers<[1], [0], [0], [1], [0, 0, 1, 1], [], []>} : vector<64x4xf32>, vector<4x4xf32>, vector<64x4xf32> -> vector<64x4xf32>
    %c1_233 = arith.constant 1 : index
    %c0_234 = arith.constant 0 : index
    %c0_235 = arith.constant 0 : index
    %597 = vector.load %arg28[%c1_233, %c0_234, %c0_235] : memref<3x4x4xf32, #tpu.memory_space<vmem>>, vector<1x4x4xf32>
    %598 = vector.shape_cast %597 : vector<1x4x4xf32> to vector<4x4xf32>
    %cst_236 = arith.constant dense<0.000000e+00> : vector<64x4xf32>
    %599 = tpu.matmul %589, %598, %cst_236 {dimension_numbers = #tpu.dot_dimension_numbers<[1], [0], [0], [1], [0, 0, 1, 1], [], []>} : vector<64x4xf32>, vector<4x4xf32>, vector<64x4xf32> -> vector<64x4xf32>
    %600 = arith.addf %596, %599 : vector<64x4xf32>
    %cst_237 = arith.constant dense<0.000000e+00> : vector<64x4xf32>
    %601 = tpu.matmul %469, %589, %cst_237 {dimension_numbers = #tpu.dot_dimension_numbers<[1], [0], [0], [1], [0, 0, 1, 1], [], []>} : vector<64x64xf32>, vector<64x4xf32>, vector<64x4xf32> -> vector<64x4xf32>
    %c2_238 = arith.constant 2 : index
    %c0_239 = arith.constant 0 : index
    %c0_240 = arith.constant 0 : index
    %602 = vector.load %arg28[%c2_238, %c0_239, %c0_240] : memref<3x4x4xf32, #tpu.memory_space<vmem>>, vector<1x4x4xf32>
    %603 = vector.shape_cast %602 : vector<1x4x4xf32> to vector<4x4xf32>
    %cst_241 = arith.constant dense<0.000000e+00> : vector<64x4xf32>
    %604 = tpu.matmul %601, %603, %cst_241 {dimension_numbers = #tpu.dot_dimension_numbers<[1], [0], [0], [1], [0, 0, 1, 1], [], []>} : vector<64x4xf32>, vector<4x4xf32>, vector<64x4xf32> -> vector<64x4xf32>
    %605 = arith.addf %600, %604 : vector<64x4xf32>
    %606 = vector.broadcast %590 : vector<1x4xf32> to vector<64x4xf32>
    %607 = arith.addf %605, %606 : vector<64x4xf32>
    %608 = vector.broadcast %591 : vector<1x4xf32> to vector<64x4xf32>
    %609 = arith.mulf %607, %608 : vector<64x4xf32>
    %610 = vector.broadcast %592 : vector<1x4xf32> to vector<64x4xf32>
    %611 = arith.addf %609, %610 : vector<64x4xf32>
    %c0_242 = arith.constant 0 : index
    %c0_243 = arith.constant 0 : index
    %c0_244 = arith.constant 0 : index
    %612 = vector.load %arg32[%c0_242, %c0_243, %c0_244] : memref<2x64x4xf32, #tpu.memory_space<vmem>>, vector<1x64x4xf32>
    %613 = vector.shape_cast %612 : vector<1x64x4xf32> to vector<64x4xf32>
    %614 = vector.shape_cast %611 : vector<64x4xf32> to vector<1x64x4xf32>
    tpu.vector_store %arg32[%c0_242, %c0_243, %c0_244], %614 {strides = array<i32>} : memref<2x64x4xf32, #tpu.memory_space<vmem>>, vector<1x64x4xf32>,
    %615 = vector.extract_strided_slice %394 {offsets = [8, 0], sizes = [8, 32], strides = [1, 1]} : vector<16x32xf32> to vector<8x32xf32>
    %cst_245 = arith.constant dense<0.000000e+00> : vector<16x32xf32>
    %616 = tpu.matmul %407, %615, %cst_245 {dimension_numbers = #tpu.dot_dimension_numbers<[1], [0], [0], [1], [0, 0, 1, 1], [], []>} : vector<16x8xf32>, vector<8x32xf32>, vector<16x32xf32> -> vector<16x32xf32>
    %c0_246 = arith.constant 0 : index
    %c0_247 = arith.constant 0 : index
    %617 = vector.load %arg9[%c0_246, %c0_247] : memref<1x16xf32, #tpu.memory_space<vmem>>, vector<1x16xf32>
    %c0_248 = arith.constant 0 : index
    %c0_249 = arith.constant 0 : index
    %618 = vector.load %arg10[%c0_248, %c0_249] : memref<1x16xf32, #tpu.memory_space<vmem>>, vector<1x16xf32>
    %c0_250 = arith.constant 0 : index
    %c0_251 = arith.constant 0 : index
    %619 = vector.load %arg11[%c0_250, %c0_251] : memref<1x16xf32, #tpu.memory_space<vmem>>, vector<1x16xf32>
    %cst_252 = arith.constant dense<0.000000e+00> : vector<16x32xf32>
    %620 = tpu.matmul %440, %616, %cst_252 {dimension_numbers = #tpu.dot_dimension_numbers<[1], [0], [0], [1], [0, 0, 1, 1], [], []>} : vector<16x16xf32>, vector<16x32xf32>, vector<16x32xf32> -> vector<16x32xf32>
    %c0_253 = arith.constant 0 : index
    %c0_254 = arith.constant 0 : index
    %c0_255 = arith.constant 0 : index
    %621 = vector.load %arg8[%c0_253, %c0_254, %c0_255] : memref<3x32x16xf32, #tpu.memory_space<vmem>>, vector<1x32x16xf32>
    %622 = vector.shape_cast %621 : vector<1x32x16xf32> to vector<32x16xf32>
    %cst_256 = arith.constant dense<0.000000e+00> : vector<16x16xf32>
    %623 = tpu.matmul %620, %622, %cst_256 {dimension_numbers = #tpu.dot_dimension_numbers<[1], [0], [0], [1], [0, 0, 1, 1], [], []>} : vector<16x32xf32>, vector<32x16xf32>, vector<16x16xf32> -> vector<16x16xf32>
    %c1_257 = arith.constant 1 : index
    %c0_258 = arith.constant 0 : index
    %c0_259 = arith.constant 0 : index
    %624 = vector.load %arg8[%c1_257, %c0_258, %c0_259] : memref<3x32x16xf32, #tpu.memory_space<vmem>>, vector<1x32x16xf32>
    %625 = vector.shape_cast %624 : vector<1x32x16xf32> to vector<32x16xf32>
    %cst_260 = arith.constant dense<0.000000e+00> : vector<16x16xf32>
    %626 = tpu.matmul %616, %625, %cst_260 {dimension_numbers = #tpu.dot_dimension_numbers<[1], [0], [0], [1], [0, 0, 1, 1], [], []>} : vector<16x32xf32>, vector<32x16xf32>, vector<16x16xf32> -> vector<16x16xf32>
    %627 = arith.addf %623, %626 : vector<16x16xf32>
    %cst_261 = arith.constant dense<0.000000e+00> : vector<16x32xf32>
    %628 = tpu.matmul %445, %616, %cst_261 {dimension_numbers = #tpu.dot_dimension_numbers<[1], [0], [0], [1], [0, 0, 1, 1], [], []>} : vector<16x16xf32>, vector<16x32xf32>, vector<16x32xf32> -> vector<16x32xf32>
    %c2_262 = arith.constant 2 : index
    %c0_263 = arith.constant 0 : index
    %c0_264 = arith.constant 0 : index
    %629 = vector.load %arg8[%c2_262, %c0_263, %c0_264] : memref<3x32x16xf32, #tpu.memory_space<vmem>>, vector<1x32x16xf32>
    %630 = vector.shape_cast %629 : vector<1x32x16xf32> to vector<32x16xf32>
    %cst_265 = arith.constant dense<0.000000e+00> : vector<16x16xf32>
    %631 = tpu.matmul %628, %630, %cst_265 {dimension_numbers = #tpu.dot_dimension_numbers<[1], [0], [0], [1], [0, 0, 1, 1], [], []>} : vector<16x32xf32>, vector<32x16xf32>, vector<16x16xf32> -> vector<16x16xf32>
    %632 = arith.addf %627, %631 : vector<16x16xf32>
    %633 = vector.broadcast %617 : vector<1x16xf32> to vector<16x16xf32>
    %634 = arith.addf %632, %633 : vector<16x16xf32>
    %635 = vector.broadcast %618 : vector<1x16xf32> to vector<16x16xf32>
    %636 = arith.mulf %634, %635 : vector<16x16xf32>
    %637 = vector.broadcast %619 : vector<1x16xf32> to vector<16x16xf32>
    %638 = arith.addf %636, %637 : vector<16x16xf32>
    %cst_266 = arith.constant 0.000000e+00 : f32
    %639 = vector.broadcast %cst_266 : f32 to vector<16x16xf32>
    %640 = arith.maximumf %638, %639 : vector<16x16xf32>
    %c0_267 = arith.constant 0 : index
    %c0_268 = arith.constant 0 : index
    %641 = vector.load %arg13[%c0_267, %c0_268] : memref<1x16xf32, #tpu.memory_space<vmem>>, vector<1x16xf32>
    %c0_269 = arith.constant 0 : index
    %c0_270 = arith.constant 0 : index
    %642 = vector.load %arg14[%c0_269, %c0_270] : memref<1x16xf32, #tpu.memory_space<vmem>>, vector<1x16xf32>
    %c0_271 = arith.constant 0 : index
    %c0_272 = arith.constant 0 : index
    %643 = vector.load %arg15[%c0_271, %c0_272] : memref<1x16xf32, #tpu.memory_space<vmem>>, vector<1x16xf32>
    %cst_273 = arith.constant dense<0.000000e+00> : vector<16x16xf32>
    %644 = tpu.matmul %440, %640, %cst_273 {dimension_numbers = #tpu.dot_dimension_numbers<[1], [0], [0], [1], [0, 0, 1, 1], [], []>} : vector<16x16xf32>, vector<16x16xf32>, vector<16x16xf32> -> vector<16x16xf32>
    %c0_274 = arith.constant 0 : index
    %c0_275 = arith.constant 0 : index
    %c0_276 = arith.constant 0 : index
    %645 = vector.load %arg12[%c0_274, %c0_275, %c0_276] : memref<3x16x16xf32, #tpu.memory_space<vmem>>, vector<1x16x16xf32>
    %646 = vector.shape_cast %645 : vector<1x16x16xf32> to vector<16x16xf32>
    %cst_277 = arith.constant dense<0.000000e+00> : vector<16x16xf32>
    %647 = tpu.matmul %644, %646, %cst_277 {dimension_numbers = #tpu.dot_dimension_numbers<[1], [0], [0], [1], [0, 0, 1, 1], [], []>} : vector<16x16xf32>, vector<16x16xf32>, vector<16x16xf32> -> vector<16x16xf32>
    %c1_278 = arith.constant 1 : index
    %c0_279 = arith.constant 0 : index
    %c0_280 = arith.constant 0 : index
    %648 = vector.load %arg12[%c1_278, %c0_279, %c0_280] : memref<3x16x16xf32, #tpu.memory_space<vmem>>, vector<1x16x16xf32>
    %649 = vector.shape_cast %648 : vector<1x16x16xf32> to vector<16x16xf32>
    %cst_281 = arith.constant dense<0.000000e+00> : vector<16x16xf32>
    %650 = tpu.matmul %640, %649, %cst_281 {dimension_numbers = #tpu.dot_dimension_numbers<[1], [0], [0], [1], [0, 0, 1, 1], [], []>} : vector<16x16xf32>, vector<16x16xf32>, vector<16x16xf32> -> vector<16x16xf32>
    %651 = arith.addf %647, %650 : vector<16x16xf32>
    %cst_282 = arith.constant dense<0.000000e+00> : vector<16x16xf32>
    %652 = tpu.matmul %445, %640, %cst_282 {dimension_numbers = #tpu.dot_dimension_numbers<[1], [0], [0], [1], [0, 0, 1, 1], [], []>} : vector<16x16xf32>, vector<16x16xf32>, vector<16x16xf32> -> vector<16x16xf32>
    %c2_283 = arith.constant 2 : index
    %c0_284 = arith.constant 0 : index
    %c0_285 = arith.constant 0 : index
    %653 = vector.load %arg12[%c2_283, %c0_284, %c0_285] : memref<3x16x16xf32, #tpu.memory_space<vmem>>, vector<1x16x16xf32>
    %654 = vector.shape_cast %653 : vector<1x16x16xf32> to vector<16x16xf32>
    %cst_286 = arith.constant dense<0.000000e+00> : vector<16x16xf32>
    %655 = tpu.matmul %652, %654, %cst_286 {dimension_numbers = #tpu.dot_dimension_numbers<[1], [0], [0], [1], [0, 0, 1, 1], [], []>} : vector<16x16xf32>, vector<16x16xf32>, vector<16x16xf32> -> vector<16x16xf32>
    %656 = arith.addf %651, %655 : vector<16x16xf32>
    %657 = vector.broadcast %641 : vector<1x16xf32> to vector<16x16xf32>
    %658 = arith.addf %656, %657 : vector<16x16xf32>
    %659 = vector.broadcast %642 : vector<1x16xf32> to vector<16x16xf32>
    %660 = arith.mulf %658, %659 : vector<16x16xf32>
    %661 = vector.broadcast %643 : vector<1x16xf32> to vector<16x16xf32>
    %662 = arith.addf %660, %661 : vector<16x16xf32>
    %cst_287 = arith.constant dense<0.000000e+00> : vector<32x16xf32>
    %663 = tpu.matmul %420, %662, %cst_287 {dimension_numbers = #tpu.dot_dimension_numbers<[1], [0], [0], [1], [0, 0, 1, 1], [], []>} : vector<32x16xf32>, vector<16x16xf32>, vector<32x16xf32> -> vector<32x16xf32>
    %c0_288 = arith.constant 0 : index
    %c0_289 = arith.constant 0 : index
    %664 = vector.load %arg17[%c0_288, %c0_289] : memref<1x8xf32, #tpu.memory_space<vmem>>, vector<1x8xf32>
    %c0_290 = arith.constant 0 : index
    %c0_291 = arith.constant 0 : index
    %665 = vector.load %arg18[%c0_290, %c0_291] : memref<1x8xf32, #tpu.memory_space<vmem>>, vector<1x8xf32>
    %c0_292 = arith.constant 0 : index
    %c0_293 = arith.constant 0 : index
    %666 = vector.load %arg19[%c0_292, %c0_293] : memref<1x8xf32, #tpu.memory_space<vmem>>, vector<1x8xf32>
    %cst_294 = arith.constant dense<0.000000e+00> : vector<32x16xf32>
    %667 = tpu.matmul %452, %663, %cst_294 {dimension_numbers = #tpu.dot_dimension_numbers<[1], [0], [0], [1], [0, 0, 1, 1], [], []>} : vector<32x32xf32>, vector<32x16xf32>, vector<32x16xf32> -> vector<32x16xf32>
    %c0_295 = arith.constant 0 : index
    %c0_296 = arith.constant 0 : index
    %c0_297 = arith.constant 0 : index
    %668 = vector.load %arg16[%c0_295, %c0_296, %c0_297] : memref<3x16x8xf32, #tpu.memory_space<vmem>>, vector<1x16x8xf32>
    %669 = vector.shape_cast %668 : vector<1x16x8xf32> to vector<16x8xf32>
    %cst_298 = arith.constant dense<0.000000e+00> : vector<32x8xf32>
    %670 = tpu.matmul %667, %669, %cst_298 {dimension_numbers = #tpu.dot_dimension_numbers<[1], [0], [0], [1], [0, 0, 1, 1], [], []>} : vector<32x16xf32>, vector<16x8xf32>, vector<32x8xf32> -> vector<32x8xf32>
    %c1_299 = arith.constant 1 : index
    %c0_300 = arith.constant 0 : index
    %c0_301 = arith.constant 0 : index
    %671 = vector.load %arg16[%c1_299, %c0_300, %c0_301] : memref<3x16x8xf32, #tpu.memory_space<vmem>>, vector<1x16x8xf32>
    %672 = vector.shape_cast %671 : vector<1x16x8xf32> to vector<16x8xf32>
    %cst_302 = arith.constant dense<0.000000e+00> : vector<32x8xf32>
    %673 = tpu.matmul %663, %672, %cst_302 {dimension_numbers = #tpu.dot_dimension_numbers<[1], [0], [0], [1], [0, 0, 1, 1], [], []>} : vector<32x16xf32>, vector<16x8xf32>, vector<32x8xf32> -> vector<32x8xf32>
    %674 = arith.addf %670, %673 : vector<32x8xf32>
    %cst_303 = arith.constant dense<0.000000e+00> : vector<32x16xf32>
    %675 = tpu.matmul %457, %663, %cst_303 {dimension_numbers = #tpu.dot_dimension_numbers<[1], [0], [0], [1], [0, 0, 1, 1], [], []>} : vector<32x32xf32>, vector<32x16xf32>, vector<32x16xf32> -> vector<32x16xf32>
    %c2_304 = arith.constant 2 : index
    %c0_305 = arith.constant 0 : index
    %c0_306 = arith.constant 0 : index
    %676 = vector.load %arg16[%c2_304, %c0_305, %c0_306] : memref<3x16x8xf32, #tpu.memory_space<vmem>>, vector<1x16x8xf32>
    %677 = vector.shape_cast %676 : vector<1x16x8xf32> to vector<16x8xf32>
    %cst_307 = arith.constant dense<0.000000e+00> : vector<32x8xf32>
    %678 = tpu.matmul %675, %677, %cst_307 {dimension_numbers = #tpu.dot_dimension_numbers<[1], [0], [0], [1], [0, 0, 1, 1], [], []>} : vector<32x16xf32>, vector<16x8xf32>, vector<32x8xf32> -> vector<32x8xf32>
    %679 = arith.addf %674, %678 : vector<32x8xf32>
    %680 = vector.broadcast %664 : vector<1x8xf32> to vector<32x8xf32>
    %681 = arith.addf %679, %680 : vector<32x8xf32>
    %682 = vector.broadcast %665 : vector<1x8xf32> to vector<32x8xf32>
    %683 = arith.mulf %681, %682 : vector<32x8xf32>
    %684 = vector.broadcast %666 : vector<1x8xf32> to vector<32x8xf32>
    %685 = arith.addf %683, %684 : vector<32x8xf32>
    %cst_308 = arith.constant 0.000000e+00 : f32
    %686 = vector.broadcast %cst_308 : f32 to vector<32x8xf32>
    %687 = arith.maximumf %685, %686 : vector<32x8xf32>
    %c0_309 = arith.constant 0 : index
    %c0_310 = arith.constant 0 : index
    %688 = vector.load %arg21[%c0_309, %c0_310] : memref<1x8xf32, #tpu.memory_space<vmem>>, vector<1x8xf32>
    %c0_311 = arith.constant 0 : index
    %c0_312 = arith.constant 0 : index
    %689 = vector.load %arg22[%c0_311, %c0_312] : memref<1x8xf32, #tpu.memory_space<vmem>>, vector<1x8xf32>
    %c0_313 = arith.constant 0 : index
    %c0_314 = arith.constant 0 : index
    %690 = vector.load %arg23[%c0_313, %c0_314] : memref<1x8xf32, #tpu.memory_space<vmem>>, vector<1x8xf32>
    %cst_315 = arith.constant dense<0.000000e+00> : vector<32x8xf32>
    %691 = tpu.matmul %452, %687, %cst_315 {dimension_numbers = #tpu.dot_dimension_numbers<[1], [0], [0], [1], [0, 0, 1, 1], [], []>} : vector<32x32xf32>, vector<32x8xf32>, vector<32x8xf32> -> vector<32x8xf32>
    %c0_316 = arith.constant 0 : index
    %c0_317 = arith.constant 0 : index
    %c0_318 = arith.constant 0 : index
    %692 = vector.load %arg20[%c0_316, %c0_317, %c0_318] : memref<3x8x8xf32, #tpu.memory_space<vmem>>, vector<1x8x8xf32>
    %693 = vector.shape_cast %692 : vector<1x8x8xf32> to vector<8x8xf32>
    %cst_319 = arith.constant dense<0.000000e+00> : vector<32x8xf32>
    %694 = tpu.matmul %691, %693, %cst_319 {dimension_numbers = #tpu.dot_dimension_numbers<[1], [0], [0], [1], [0, 0, 1, 1], [], []>} : vector<32x8xf32>, vector<8x8xf32>, vector<32x8xf32> -> vector<32x8xf32>
    %c1_320 = arith.constant 1 : index
    %c0_321 = arith.constant 0 : index
    %c0_322 = arith.constant 0 : index
    %695 = vector.load %arg20[%c1_320, %c0_321, %c0_322] : memref<3x8x8xf32, #tpu.memory_space<vmem>>, vector<1x8x8xf32>
    %696 = vector.shape_cast %695 : vector<1x8x8xf32> to vector<8x8xf32>
    %cst_323 = arith.constant dense<0.000000e+00> : vector<32x8xf32>
    %697 = tpu.matmul %687, %696, %cst_323 {dimension_numbers = #tpu.dot_dimension_numbers<[1], [0], [0], [1], [0, 0, 1, 1], [], []>} : vector<32x8xf32>, vector<8x8xf32>, vector<32x8xf32> -> vector<32x8xf32>
    %698 = arith.addf %694, %697 : vector<32x8xf32>
    %cst_324 = arith.constant dense<0.000000e+00> : vector<32x8xf32>
    %699 = tpu.matmul %457, %687, %cst_324 {dimension_numbers = #tpu.dot_dimension_numbers<[1], [0], [0], [1], [0, 0, 1, 1], [], []>} : vector<32x32xf32>, vector<32x8xf32>, vector<32x8xf32> -> vector<32x8xf32>
    %c2_325 = arith.constant 2 : index
    %c0_326 = arith.constant 0 : index
    %c0_327 = arith.constant 0 : index
    %700 = vector.load %arg20[%c2_325, %c0_326, %c0_327] : memref<3x8x8xf32, #tpu.memory_space<vmem>>, vector<1x8x8xf32>
    %701 = vector.shape_cast %700 : vector<1x8x8xf32> to vector<8x8xf32>
    %cst_328 = arith.constant dense<0.000000e+00> : vector<32x8xf32>
    %702 = tpu.matmul %699, %701, %cst_328 {dimension_numbers = #tpu.dot_dimension_numbers<[1], [0], [0], [1], [0, 0, 1, 1], [], []>} : vector<32x8xf32>, vector<8x8xf32>, vector<32x8xf32> -> vector<32x8xf32>
    %703 = arith.addf %698, %702 : vector<32x8xf32>
    %704 = vector.broadcast %688 : vector<1x8xf32> to vector<32x8xf32>
    %705 = arith.addf %703, %704 : vector<32x8xf32>
    %706 = vector.broadcast %689 : vector<1x8xf32> to vector<32x8xf32>
    %707 = arith.mulf %705, %706 : vector<32x8xf32>
    %708 = vector.broadcast %690 : vector<1x8xf32> to vector<32x8xf32>
    %709 = arith.addf %707, %708 : vector<32x8xf32>
    %cst_329 = arith.constant dense<0.000000e+00> : vector<64x8xf32>
    %710 = tpu.matmul %433, %709, %cst_329 {dimension_numbers = #tpu.dot_dimension_numbers<[1], [0], [0], [1], [0, 0, 1, 1], [], []>} : vector<64x32xf32>, vector<32x8xf32>, vector<64x8xf32> -> vector<64x8xf32>
    %c0_330 = arith.constant 0 : index
    %c0_331 = arith.constant 0 : index
    %711 = vector.load %arg25[%c0_330, %c0_331] : memref<1x4xf32, #tpu.memory_space<vmem>>, vector<1x4xf32>
    %c0_332 = arith.constant 0 : index
    %c0_333 = arith.constant 0 : index
    %712 = vector.load %arg26[%c0_332, %c0_333] : memref<1x4xf32, #tpu.memory_space<vmem>>, vector<1x4xf32>
    %c0_334 = arith.constant 0 : index
    %c0_335 = arith.constant 0 : index
    %713 = vector.load %arg27[%c0_334, %c0_335] : memref<1x4xf32, #tpu.memory_space<vmem>>, vector<1x4xf32>
    %cst_336 = arith.constant dense<0.000000e+00> : vector<64x8xf32>
    %714 = tpu.matmul %464, %710, %cst_336 {dimension_numbers = #tpu.dot_dimension_numbers<[1], [0], [0], [1], [0, 0, 1, 1], [], []>} : vector<64x64xf32>, vector<64x8xf32>, vector<64x8xf32> -> vector<64x8xf32>
    %c0_337 = arith.constant 0 : index
    %c0_338 = arith.constant 0 : index
    %c0_339 = arith.constant 0 : index
    %715 = vector.load %arg24[%c0_337, %c0_338, %c0_339] : memref<3x8x4xf32, #tpu.memory_space<vmem>>, vector<1x8x4xf32>
    %716 = vector.shape_cast %715 : vector<1x8x4xf32> to vector<8x4xf32>
    %cst_340 = arith.constant dense<0.000000e+00> : vector<64x4xf32>
    %717 = tpu.matmul %714, %716, %cst_340 {dimension_numbers = #tpu.dot_dimension_numbers<[1], [0], [0], [1], [0, 0, 1, 1], [], []>} : vector<64x8xf32>, vector<8x4xf32>, vector<64x4xf32> -> vector<64x4xf32>
    %c1_341 = arith.constant 1 : index
    %c0_342 = arith.constant 0 : index
    %c0_343 = arith.constant 0 : index
    %718 = vector.load %arg24[%c1_341, %c0_342, %c0_343] : memref<3x8x4xf32, #tpu.memory_space<vmem>>, vector<1x8x4xf32>
    %719 = vector.shape_cast %718 : vector<1x8x4xf32> to vector<8x4xf32>
    %cst_344 = arith.constant dense<0.000000e+00> : vector<64x4xf32>
    %720 = tpu.matmul %710, %719, %cst_344 {dimension_numbers = #tpu.dot_dimension_numbers<[1], [0], [0], [1], [0, 0, 1, 1], [], []>} : vector<64x8xf32>, vector<8x4xf32>, vector<64x4xf32> -> vector<64x4xf32>
    %721 = arith.addf %717, %720 : vector<64x4xf32>
    %cst_345 = arith.constant dense<0.000000e+00> : vector<64x8xf32>
    %722 = tpu.matmul %469, %710, %cst_345 {dimension_numbers = #tpu.dot_dimension_numbers<[1], [0], [0], [1], [0, 0, 1, 1], [], []>} : vector<64x64xf32>, vector<64x8xf32>, vector<64x8xf32> -> vector<64x8xf32>
    %c2_346 = arith.constant 2 : index
    %c0_347 = arith.constant 0 : index
    %c0_348 = arith.constant 0 : index
    %723 = vector.load %arg24[%c2_346, %c0_347, %c0_348] : memref<3x8x4xf32, #tpu.memory_space<vmem>>, vector<1x8x4xf32>
    %724 = vector.shape_cast %723 : vector<1x8x4xf32> to vector<8x4xf32>
    %cst_349 = arith.constant dense<0.000000e+00> : vector<64x4xf32>
    %725 = tpu.matmul %722, %724, %cst_349 {dimension_numbers = #tpu.dot_dimension_numbers<[1], [0], [0], [1], [0, 0, 1, 1], [], []>} : vector<64x8xf32>, vector<8x4xf32>, vector<64x4xf32> -> vector<64x4xf32>
    %726 = arith.addf %721, %725 : vector<64x4xf32>
    %727 = vector.broadcast %711 : vector<1x4xf32> to vector<64x4xf32>
    %728 = arith.addf %726, %727 : vector<64x4xf32>
    %729 = vector.broadcast %712 : vector<1x4xf32> to vector<64x4xf32>
    %730 = arith.mulf %728, %729 : vector<64x4xf32>
    %731 = vector.broadcast %713 : vector<1x4xf32> to vector<64x4xf32>
    %732 = arith.addf %730, %731 : vector<64x4xf32>
    %cst_350 = arith.constant 0.000000e+00 : f32
    %733 = vector.broadcast %cst_350 : f32 to vector<64x4xf32>
    %734 = arith.maximumf %732, %733 : vector<64x4xf32>
    %c0_351 = arith.constant 0 : index
    %c0_352 = arith.constant 0 : index
    %735 = vector.load %arg29[%c0_351, %c0_352] : memref<1x4xf32, #tpu.memory_space<vmem>>, vector<1x4xf32>
    %c0_353 = arith.constant 0 : index
    %c0_354 = arith.constant 0 : index
    %736 = vector.load %arg30[%c0_353, %c0_354] : memref<1x4xf32, #tpu.memory_space<vmem>>, vector<1x4xf32>
    %c0_355 = arith.constant 0 : index
    %c0_356 = arith.constant 0 : index
    %737 = vector.load %arg31[%c0_355, %c0_356] : memref<1x4xf32, #tpu.memory_space<vmem>>, vector<1x4xf32>
    %cst_357 = arith.constant dense<0.000000e+00> : vector<64x4xf32>
    %738 = tpu.matmul %464, %734, %cst_357 {dimension_numbers = #tpu.dot_dimension_numbers<[1], [0], [0], [1], [0, 0, 1, 1], [], []>} : vector<64x64xf32>, vector<64x4xf32>, vector<64x4xf32> -> vector<64x4xf32>
    %c0_358 = arith.constant 0 : index
    %c0_359 = arith.constant 0 : index
    %c0_360 = arith.constant 0 : index
    %739 = vector.load %arg28[%c0_358, %c0_359, %c0_360] : memref<3x4x4xf32, #tpu.memory_space<vmem>>, vector<1x4x4xf32>
    %740 = vector.shape_cast %739 : vector<1x4x4xf32> to vector<4x4xf32>
    %cst_361 = arith.constant dense<0.000000e+00> : vector<64x4xf32>
    %741 = tpu.matmul %738, %740, %cst_361 {dimension_numbers = #tpu.dot_dimension_numbers<[1], [0], [0], [1], [0, 0, 1, 1], [], []>} : vector<64x4xf32>, vector<4x4xf32>, vector<64x4xf32> -> vector<64x4xf32>
    %c1_362 = arith.constant 1 : index
    %c0_363 = arith.constant 0 : index
    %c0_364 = arith.constant 0 : index
    %742 = vector.load %arg28[%c1_362, %c0_363, %c0_364] : memref<3x4x4xf32, #tpu.memory_space<vmem>>, vector<1x4x4xf32>
    %743 = vector.shape_cast %742 : vector<1x4x4xf32> to vector<4x4xf32>
    %cst_365 = arith.constant dense<0.000000e+00> : vector<64x4xf32>
    %744 = tpu.matmul %734, %743, %cst_365 {dimension_numbers = #tpu.dot_dimension_numbers<[1], [0], [0], [1], [0, 0, 1, 1], [], []>} : vector<64x4xf32>, vector<4x4xf32>, vector<64x4xf32> -> vector<64x4xf32>
    %745 = arith.addf %741, %744 : vector<64x4xf32>
    %cst_366 = arith.constant dense<0.000000e+00> : vector<64x4xf32>
    %746 = tpu.matmul %469, %734, %cst_366 {dimension_numbers = #tpu.dot_dimension_numbers<[1], [0], [0], [1], [0, 0, 1, 1], [], []>} : vector<64x64xf32>, vector<64x4xf32>, vector<64x4xf32> -> vector<64x4xf32>
    %c2_367 = arith.constant 2 : index
    %c0_368 = arith.constant 0 : index
    %c0_369 = arith.constant 0 : index
    %747 = vector.load %arg28[%c2_367, %c0_368, %c0_369] : memref<3x4x4xf32, #tpu.memory_space<vmem>>, vector<1x4x4xf32>
    %748 = vector.shape_cast %747 : vector<1x4x4xf32> to vector<4x4xf32>
    %cst_370 = arith.constant dense<0.000000e+00> : vector<64x4xf32>
    %749 = tpu.matmul %746, %748, %cst_370 {dimension_numbers = #tpu.dot_dimension_numbers<[1], [0], [0], [1], [0, 0, 1, 1], [], []>} : vector<64x4xf32>, vector<4x4xf32>, vector<64x4xf32> -> vector<64x4xf32>
    %750 = arith.addf %745, %749 : vector<64x4xf32>
    %751 = vector.broadcast %735 : vector<1x4xf32> to vector<64x4xf32>
    %752 = arith.addf %750, %751 : vector<64x4xf32>
    %753 = vector.broadcast %736 : vector<1x4xf32> to vector<64x4xf32>
    %754 = arith.mulf %752, %753 : vector<64x4xf32>
    %755 = vector.broadcast %737 : vector<1x4xf32> to vector<64x4xf32>
    %756 = arith.addf %754, %755 : vector<64x4xf32>
    %c1_371 = arith.constant 1 : index
    %c0_372 = arith.constant 0 : index
    %c0_373 = arith.constant 0 : index
    %757 = vector.load %arg32[%c1_371, %c0_372, %c0_373] : memref<2x64x4xf32, #tpu.memory_space<vmem>>, vector<1x64x4xf32>
    %758 = vector.shape_cast %757 : vector<1x64x4xf32> to vector<64x4xf32>
    %759 = vector.shape_cast %756 : vector<64x4xf32> to vector<1x64x4xf32>
    tpu.vector_store %arg32[%c1_371, %c0_372, %c0_373], %759 {strides = array<i32>} : memref<2x64x4xf32, #tpu.memory_space<vmem>>, vector<1x64x4xf32>,
    return
  }
}

</mosaic_0001>

<bundles_post_ra>
// kernel: conv_rec_decoder_forward.1
= control target key start
LH: loop header
LB: loop body
LE: loop exit
PB: predicated region body
PF: predicated region fallthrough
CT: control target
= control target key end

     0   :  { %s13849_s6 = smov 1   ;;  %s13850_s10 = smov 2   ;;  %s15279_s0 = inlined_call_operand.smem [shape: u32[33], index: -1, kind: input, shape index: {}] }
   0x1   :  { %s13904_s5 = sld [smem:[%s15279_s0]]   ;;  %s13851_s14 = smov 3  }
   0x2   :  { %s13909_s9 = sld [smem:[%s15279_s0 + %s13849_s6]]   ;;  %s13852_s18 = smov 4  }
   0x3   :  { %s13914_s13 = sld [smem:[%s15279_s0 + %s13850_s10]]   ;;  %s13853_s22 = smov 5  }
   0x4   :  { %s13919_s17 = sld [smem:[%s15279_s0 + %s13851_s14]]   ;;  %s13854_s26 = smov 6  }
   0x5   :  { %s13924_s21 = sld [smem:[%s15279_s0 + %s13852_s18]]   ;;  %s13855_s30 = smov 7  }
   0x6   :  { %s13929_s25 = sld [smem:[%s15279_s0 + %s13853_s22]]   ;;  %s13856_s4 = smov 8  }
   0x7   :  { %s13934_s29 = sld [smem:[%s15279_s0 + %s13854_s26]]   ;;  %s13857_s10 = smov 9  }
   0x8   :  { %s13939_s3 = sld [smem:[%s15279_s0 + %s13855_s30]]   ;;  %s13858_s15 = smov 10  }
   0x9   :  { %s13944_s8 = sld [smem:[%s15279_s0 + %s13856_s4]]   ;;  %s13859_s20 = smov 11  }
   0xa   :  { %s13949_s14 = sld [smem:[%s15279_s0 + %s13857_s10]]   ;;  %s13860_s26 = smov 12  }
   0xb   :  { %s13954_s19 = sld [smem:[%s15279_s0 + %s13858_s15]]   ;;  %s13861_s1 = smov 13  }
   0xc   :  { %s13959_s24 = sld [smem:[%s15279_s0 + %s13859_s20]]   ;;  %s13862_s7 = smov 14  }
   0xd   :  { %s13964_s30 = sld [smem:[%s15279_s0 + %s13860_s26]]   ;;  %s13863_s15 = smov 15  }
   0xe   :  { %15294 = sst [smem:[#allocation22_spill]] %s13939_s3  ;;  %s13864_s22 = smov 16  }
   0xf   :  { %15295 = sst [smem:[#allocation23_spill]] %s13944_s8  ;;  %s13865_s28 = smov 17  }
  0x10   :  { %s13969_s6 = sld [smem:[%s15279_s0 + %s13861_s1]]  }
  0x11   :  { %s13974_s12 = sld [smem:[%s15279_s0 + %s13862_s7]]   ;;  %s13866_s7 = smov 18  }
  0x12   :  { %s13979_s20 = sld [smem:[%s15279_s0 + %s13863_s15]]   ;;  %s13867_s15 = smov 19  }
  0x13   :  { %15296 = sst [smem:[#allocation24_spill]] %s13964_s30 }
  0x14   :  { %s13984_s27 = sld [smem:[%s15279_s0 + %s13864_s22]]   ;;  %s13868_s22 = smov 20  }
  0x15   :  { %s13989_s4 = sld [smem:[%s15279_s0 + %s13865_s28]]   ;;  %s13869_s28 = smov 21  }
  0x16   :  { %s13994_s30 = sld [smem:[%s15279_s0 + %s13866_s7]]   ;;  %s13870_s7 = smov 22  }
  0x17   :  { %s13999_s3 = sld [smem:[%s15279_s0 + %s13867_s15]]   ;;  %s13871_s15 = smov 23  }
  0x18   :  { %s14009_s8 = sld [smem:[%s15279_s0 + %s13869_s28]]   ;;  %s13873_s28 = smov 25  }
  0x1a   :  { %15297 = sst [smem:[#allocation25_spill]] %s13984_s27 }
  0x1b   :  { %s14004_s27 = sld [smem:[%s15279_s0 + %s13868_s22]]   ;;  %s13872_s22 = smov 24  }
  0x1c   :  { %15298 = sst [smem:[#allocation26_spill]] %s13994_s30 }
  0x1d   :  { %15299 = sst [smem:[#allocation27_spill]] %s13999_s3 }
  0x1e   :  { %15301 = sst [smem:[#allocation29_spill]] %s14009_s8 }
  0x1f   :  { %s14014_s30 = sld [smem:[%s15279_s0 + %s13870_s7]]   ;;  %s13874_s7 = smov 26  }
  0x20   :  { %s14019_s3 = sld [smem:[%s15279_s0 + %s13871_s15]]   ;;  %s13875_s15 = smov 27  }
  0x21   :  { %15300 = sst [smem:[#allocation28_spill]] %s14004_s27 }
  0x22   :  { %s14024_s27 = sld [smem:[%s15279_s0 + %s13872_s22]]   ;;  %s13876_s22 = smov 28  }
  0x23   :  { %s14029_s8 = sld [smem:[%s15279_s0 + %s13873_s28]]   ;;  %s13877_s28 = smov 29  }
  0x25   :  { %15302 = sst [smem:[#allocation30_spill]] %s14014_s30 }
  0x26   :  { %15303 = sst [smem:[#allocation31_spill]] %s14019_s3 }
  0x27   :  { %s14034_s30 = sld [smem:[%s15279_s0 + %s13874_s7]]   ;;  %s13878_s7 = smov 30  }
  0x28   :  { %15304 = sst [smem:[#allocation32_spill]] %s14024_s27 }
  0x29   :  { %15305 = sst [smem:[#allocation33_spill]] %s14029_s8 }
  0x2a   :  { %s14039_s3 = sld [smem:[%s15279_s0 + %s13875_s15]]   ;;  %s13879_s15 = smov 31  }
  0x2b   :  { %s14044_s27 = sld [smem:[%s15279_s0 + %s13876_s22]]   ;;  %s13880_s22 = smov 32  }
  0x2c   :  { %s14049_s8 = sld [smem:[%s15279_s0 + %s13877_s28]]  }
  0x2d   :  { %15306 = sst [smem:[#allocation34_spill]] %s14034_s30 }
  0x2e   :  { %s14054_s30 = sld [smem:[%s15279_s0 + %s13878_s7]]  }
  0x30   :  { %15307 = sst [smem:[#allocation35_spill]] %s14039_s3 }
  0x31   :  { %15308 = sst [smem:[#allocation36_spill]] %s14044_s27 }
  0x32   :  { %s14059_s3 = sld [smem:[%s15279_s0 + %s13879_s15]]  }
  0x33   :  { %s14064_s27 = sld [smem:[%s15279_s0 + %s13880_s22]]  }
  0x34   :  { %70 = vsyncpa [#allocation4], 0 }
  0x35   :  { %71 = vsyncpa [#allocation6], 0 }
  0x36   :  { %72 = vsyncpa [#allocation9], 0 }
  0x37   :  { %73 = vsyncpa [#allocation12], 0 }
  0x38   :  { %74 = vsyncpa [#allocation15], 0  ;;  %s13881_s28 = smov [#allocation5]   ;;  %s13882_s2 = smov [#allocation8]  }
  0x39   :  { %s94_s1 = sshll.u32 %s13881_s28, 4  ;;  %s129_s7 = sshll.u32 %s13882_s2, 4  ;;  %s95_s1 = int_to_ptr.vmem [resolvable:$true] %s94_s1  ;;  %s14066_s7 = int_to_ptr.vmem [resolvable:$true] %s129_s7 }
  0x3a   :  { %s13641_s10 = scalar_lea.hbm %s13914_s13, 64 }
  0x3b   :  { %p13642_p0 = scmp.ne.s32.totalorder %s13914_s13, %s13641_s10  ;;  %p13645_p1 = scmp.lt.u32.totalorder %s13641_s10, %s13914_s13 }
  0x3d   :  { %p13647_p2 = pnand %p13645_p1, %p13642_p0 }
  0x3f   :  { %13650 = shalt.err (!%p13647_p2)
}
  0x40   :  { %s13651_s0 = scalar_lea.vmem %s95_s1, 64  ;;  %p13656_p4 = scmp.lt.s32.totalorder %s95_s1, %s95_s1 }
  0x41   :  { %p13652_p3 = scmp.ne.s32.totalorder %s95_s1, %s13651_s0  ;;  %p13657_p5 = scmp.lt.s32.totalorder %s13651_s0, %s13651_s0 }
  0x43   :  { %p13658_p6 = por %p13657_p5, %p13656_p4 }
  0x45   :  { %p13659_p7 = pnand %p13658_p6, %p13652_p3 }
  0x47   :  { %13662 = shalt.err (!%p13659_p7)
}
  0x48   :  { %s13883_s11 = smov 32   ;;  %s13884_s15 = smov 2  }
  0x49   :  { %100 = dma.hbm_to_vmem [thread:$0]  %s13914_s13, 64, %s95_s1, [#allocation6], %s13883_s11, %s13883_s11, %s13884_s15  }
  0x4a   :  { %s13663_s16 = scalar_lea.hbm %s13954_s19, 16 }
  0x4b   :  { %p13664_p8 = scmp.ne.s32.totalorder %s13954_s19, %s13663_s16  ;;  %p13667_p9 = scmp.lt.u32.totalorder %s13663_s16, %s13954_s19 }
  0x4d   :  { %p13669_p10 = pnand %p13667_p9, %p13664_p8 }
  0x4f   :  { %13672 = shalt.err (!%p13669_p10)
}
  0x50   :  { %s13673_s18 = scalar_lea.vmem %s14066_s7, 16  ;;  %s13677_s22 = scalar_lea.vmem %s14066_s7, 32 }
  0x51   :  { %p13674_p11 = scmp.ne.s32.totalorder %s14066_s7, %s13673_s18  ;;  %p13678_p12 = scmp.lt.s32.totalorder %s14066_s7, %s14066_s7 }
  0x52   :  { %p13679_p13 = scmp.lt.s32.totalorder %s13677_s22, %s13673_s18 }
  0x54   :  { %p13680_p0 = por %p13679_p13, %p13678_p12 }
  0x56   :  { %p13681_p1 = pnand %p13680_p0, %p13674_p11 }
  0x58   :  { %13684 = shalt.err (!%p13681_p1)
}
  0x59   :  { %132 = dma.hbm_to_vmem [thread:$0]  %s13954_s19, 16, %s14066_s7, [#allocation9]  }
  0x5a   :  { %s13885_s13 = smov [#allocation11]   ;;  %s13886_s26 = smov [#allocation14]  }
  0x5b   :  { %s151_s23 = sshll.u32 %s13885_s13, 4  ;;  %s171_s28 = sshll.u32 %s13886_s26, 4  ;;  %s152_s23 = int_to_ptr.vmem [resolvable:$true] %s151_s23  ;;  %s172_s28 = int_to_ptr.vmem [resolvable:$true] %s171_s28 }
  0x5c   :  { %s13685_s1 = scalar_lea.hbm %s13969_s6, 16 }
  0x5d   :  { %p13686_p2 = scmp.ne.s32.totalorder %s13969_s6, %s13685_s1  ;;  %p13689_p3 = scmp.lt.u32.totalorder %s13685_s1, %s13969_s6 }
  0x5f   :  { %p13691_p4 = pnand %p13689_p3, %p13686_p2 }
  0x61   :  { %13694 = shalt.err (!%p13691_p4)
}
  0x62   :  { %s13695_s2 = scalar_lea.vmem %s152_s23, 16  ;;  %s13699_s10 = scalar_lea.vmem %s152_s23, 32 }
  0x63   :  { %p13696_p5 = scmp.ne.s32.totalorder %s152_s23, %s13695_s2  ;;  %p13700_p6 = scmp.lt.s32.totalorder %s152_s23, %s152_s23 }
  0x64   :  { %p13701_p7 = scmp.lt.s32.totalorder %s13699_s10, %s13695_s2 }
  0x66   :  { %p13702_p8 = por %p13701_p7, %p13700_p6 }
  0x68   :  { %p13703_p9 = pnand %p13702_p8, %p13696_p5 }
  0x6a   :  { %13706 = shalt.err (!%p13703_p9)
}
  0x6b   :  { %154 = dma.hbm_to_vmem [thread:$0]  %s13969_s6, 16, %s152_s23, [#allocation12]  }
  0x6c   :  { %s13707_s19 = scalar_lea.hbm %s13979_s20, 16 }
  0x6d   :  { %p13708_p10 = scmp.ne.s32.totalorder %s13979_s20, %s13707_s19  ;;  %p13711_p11 = scmp.lt.u32.totalorder %s13707_s19, %s13979_s20 }
  0x6f   :  { %p13713_p12 = pnand %p13711_p11, %p13708_p10 }
  0x71   :  { %13716 = shalt.err (!%p13713_p12)
}
  0x72   :  { %s13717_s7 = scalar_lea.vmem %s172_s28, 16  ;;  %s13721_s0 = scalar_lea.vmem %s172_s28, 32 }
  0x73   :  { %p13718_p13 = scmp.ne.s32.totalorder %s172_s28, %s13717_s7  ;;  %p13722_p0 = scmp.lt.s32.totalorder %s172_s28, %s172_s28 }
  0x74   :  { %p13723_p1 = scmp.lt.s32.totalorder %s13721_s0, %s13717_s7 }
  0x76   :  { %p13724_p2 = por %p13723_p1, %p13722_p0 }
  0x78   :  { %p13725_p3 = pnand %p13724_p2, %p13718_p13 }
  0x7a   :  { %13728 = shalt.err (!%p13725_p3)
}
  0x7b   :  { %174 = dma.hbm_to_vmem [thread:$0]  %s13979_s20, 16, %s172_s28, [#allocation15]  }
  0x7c   :  { %s13887_s16 = smov [#allocation3]   ;;  %s13888_s18 = smov [#allocation7]  }
  0x7d   :  { %s82_s6 = sshll.u32 %s13887_s16, 4  ;;  %s119_s22 = sshll.u32 %s13888_s18, 4  ;;  %s83_s6 = int_to_ptr.vmem [resolvable:$true] %s82_s6  ;;  %s120_s22 = int_to_ptr.vmem [resolvable:$true] %s119_s22 }
  0x7e   :  { %s13729_s13 = scalar_lea.hbm %s13909_s9, 64 }
  0x7f   :  { %p13730_p4 = scmp.ne.s32.totalorder %s13909_s9, %s13729_s13  ;;  %p13733_p5 = scmp.lt.u32.totalorder %s13729_s13, %s13909_s9 }
  0x81   :  { %p13735_p6 = pnand %p13733_p5, %p13730_p4 }
  0x83   :  { %13738 = shalt.err (!%p13735_p6)
}
  0x84   :  { %s13739_s23 = scalar_lea.vmem %s83_s6, 64  ;;  %p13744_p8 = scmp.lt.s32.totalorder %s83_s6, %s83_s6 }
  0x85   :  { %p13740_p7 = scmp.ne.s32.totalorder %s83_s6, %s13739_s23  ;;  %p13745_p9 = scmp.lt.s32.totalorder %s13739_s23, %s13739_s23 }
  0x87   :  { %p13746_p10 = por %p13745_p9, %p13744_p8 }
  0x89   :  { %p13747_p11 = pnand %p13746_p10, %p13740_p7 }
  0x8b   :  { %13750 = shalt.err (!%p13747_p11)
}
  0x8c   :  { %88 = dma.hbm_to_vmem [thread:$0]  %s13909_s9, 64, %s83_s6, [#allocation4], %s13883_s11, %s13883_s11, %s13884_s15  }
  0x8d   :  { %s13751_s20 = scalar_lea.hbm %s13949_s14, 16 }
  0x8e   :  { %p13752_p12 = scmp.ne.s32.totalorder %s13949_s14, %s13751_s20  ;;  %p13755_p13 = scmp.lt.u32.totalorder %s13751_s20, %s13949_s14 }
  0x90   :  { %p13757_p0 = pnand %p13755_p13, %p13752_p12 }
  0x92   :  { %13760 = shalt.err (!%p13757_p0)
}
  0x93   :  { %s13761_s26 = scalar_lea.vmem %s120_s22, 16  ;;  %s13765_s28 = scalar_lea.vmem %s120_s22, 32 }
  0x94   :  { %p13762_p1 = scmp.ne.s32.totalorder %s120_s22, %s13761_s26  ;;  %p13766_p2 = scmp.lt.s32.totalorder %s120_s22, %s120_s22 }
  0x95   :  { %p13767_p3 = scmp.lt.s32.totalorder %s13765_s28, %s13761_s26 }
  0x97   :  { %p13768_p4 = por %p13767_p3, %p13766_p2 }
  0x99   :  { %p13769_p5 = pnand %p13768_p4, %p13762_p1 }
  0x9b   :  { %13772 = shalt.err (!%p13769_p5)
}
  0x9c   :  { %122 = dma.hbm_to_vmem [thread:$0]  %s13949_s14, 16, %s120_s22, [#allocation6]  }
  0x9d   :  { %s13889_s1 = smov [#allocation10]   ;;  %s13890_s15 = smov [#allocation13]  }
  0x9e   :  { %s139_s9 = sshll.u32 %s13889_s1, 4  ;;  %s161_s2 = sshll.u32 %s13890_s15, 4  ;;  %s140_s9 = int_to_ptr.vmem [resolvable:$true] %s139_s9  ;;  %s162_s2 = int_to_ptr.vmem [resolvable:$true] %s161_s2 }
  0x9f   :  { %s13773_s10 = scalar_lea.hbm %s13959_s24, 16 }
  0xa0   :  { %p13774_p6 = scmp.ne.s32.totalorder %s13959_s24, %s13773_s10  ;;  %p13777_p7 = scmp.lt.u32.totalorder %s13773_s10, %s13959_s24 }
  0xa2   :  { %p13779_p8 = pnand %p13777_p7, %p13774_p6 }
  0xa4   :  { %13782 = shalt.err (!%p13779_p8)
}
  0xa5   :  { %s13783_s19 = scalar_lea.vmem %s140_s9, 16  ;;  %s13787_s7 = scalar_lea.vmem %s140_s9, 32 }
  0xa6   :  { %p13784_p9 = scmp.ne.s32.totalorder %s140_s9, %s13783_s19  ;;  %p13788_p10 = scmp.lt.s32.totalorder %s140_s9, %s140_s9 }
  0xa7   :  { %p13789_p11 = scmp.lt.s32.totalorder %s13787_s7, %s13783_s19 }
  0xa9   :  { %p13790_p12 = por %p13789_p11, %p13788_p10 }
  0xab   :  { %p13791_p13 = pnand %p13790_p12, %p13784_p9 }
  0xad   :  { %13794 = shalt.err (!%p13791_p13)
}
  0xae   :  { %142 = dma.hbm_to_vmem [thread:$0]  %s13959_s24, 16, %s140_s9, [#allocation9]  }
  0xaf   :  { %s13795_s14 = scalar_lea.hbm %s13974_s12, 16 }
  0xb0   :  { %p13796_p0 = scmp.ne.s32.totalorder %s13974_s12, %s13795_s14  ;;  %p13799_p1 = scmp.lt.u32.totalorder %s13795_s14, %s13974_s12 }
  0xb2   :  { %p13801_p2 = pnand %p13799_p1, %p13796_p0 }
  0xb4   :  { %13804 = shalt.err (!%p13801_p2)
}
  0xb5   :  { %s13805_s0 = scalar_lea.vmem %s162_s2, 16  ;;  %s13809_s16 = scalar_lea.vmem %s162_s2, 32 }
  0xb6   :  { %p13806_p3 = scmp.ne.s32.totalorder %s162_s2, %s13805_s0  ;;  %p13810_p4 = scmp.lt.s32.totalorder %s162_s2, %s162_s2 }
  0xb7   :  { %p13811_p5 = scmp.lt.s32.totalorder %s13809_s16, %s13805_s0 }
  0xb9   :  { %p13812_p6 = por %p13811_p5, %p13810_p4 }
  0xbb   :  { %p13813_p7 = pnand %p13812_p6, %p13806_p3 }
  0xbd   :  { %13816 = shalt.err (!%p13813_p7)
}
  0xbe   :  { %164 = dma.hbm_to_vmem [thread:$0]  %s13974_s12, 16, %s162_s2, [#allocation12]  }
  0xbf   :  { %s13891_s6 = smov [#allocation16]   ;;  %s13817_s18 = scalar_lea.hbm %s13989_s4, 16 }
  0xc0   :  { %s183_s24 = sshll.u32 %s13891_s6, 4  ;;  %p13818_p8 = scmp.ne.s32.totalorder %s13989_s4, %s13817_s18  ;;  %s184_s24 = int_to_ptr.vmem [resolvable:$true] %s183_s24 }
  0xc1   :  { %p13821_p9 = scmp.lt.u32.totalorder %s13817_s18, %s13989_s4 }
  0xc3   :  { %p13823_p10 = pnand %p13821_p9, %p13818_p8 }
  0xc5   :  { %13826 = shalt.err (!%p13823_p10)
}
  0xc6   :  { %s13827_s22 = scalar_lea.vmem %s184_s24, 16  ;;  %s13831_s13 = scalar_lea.vmem %s184_s24, 32 }
  0xc7   :  { %p13828_p11 = scmp.ne.s32.totalorder %s184_s24, %s13827_s22  ;;  %p13832_p12 = scmp.lt.s32.totalorder %s184_s24, %s184_s24 }
  0xc8   :  { %p13833_p13 = scmp.lt.s32.totalorder %s13831_s13, %s13827_s22 }
  0xca   :  { %p13834_p0 = por %p13833_p13, %p13832_p12 }
  0xcc   :  { %p13835_p1 = pnand %p13834_p0, %p13828_p11 }
  0xce   :  { %13838 = shalt.err (!%p13835_p1)
}
  0xcf   :  { %186 = dma.hbm_to_vmem [thread:$0]  %s13989_s4, 16, %s184_s24, [#allocation15]  }
  0xd0   :  { %13839 = dma.done.wait [#allocation4], 64  }
  0xd1   :  { %13840 = vsyncadd [#allocation4], 4294967232 }
  0xd2   :  { %13841 = dma.done.wait [#allocation6], 80  }
  0xd3   :  { %13842 = vsyncadd [#allocation6], 4294967216 }
  0xd4   :  { %13843 = dma.done.wait [#allocation9], 32  }
  0xd5   :  { %13844 = vsyncadd [#allocation9], 4294967264 }
  0xd6   :  { %13845 = dma.done.wait [#allocation12], 32  }
  0xd7   :  { %13846 = vsyncadd [#allocation12], 4294967264 }
  0xd8   :  { %13847 = dma.done.wait [#allocation15], 32  }
  0xd9   :  { %13848 = vsyncadd [#allocation15], 4294967264  ;;  %v13892_v0 = vmov 0.0|0.0   ;;  %vm13893_vm0 = vmmov 0   ;;  %v13894_v1 = vmov 0.0   ;;  %v250_v2 = vld [vmem:[%s13919_s17] sm:$0xff] }
  0xda   :  { %12759 = vmatprep.subr.bf16.mxu0 %v13892_v0  ;;  %11558 = vmatprep.mubr.msk.f32.mxu0 %vm13893_vm0, %v13894_v1  ;;  %v251_v3 = vld [vmem:[%s13919_s17 + $0x8] sm:$0xff]  ;;  %v252_v4 = vld [vmem:[%s13919_s17 + $0x10] sm:$0xff]  ;;  %v253_v6 = vld [vmem:[%s13919_s17 + $0x18] sm:$0xff]  ;;  %vm265_vm1 = vcmask 261120   ;;  %s13895_s12 = smov 64   ;;  %vm3044_vm2 = vcmask 253952  }
  0xdb   :  { %12765 = vmatprep.subr.bf16.mxu1 %v13892_v0  ;;  %11569 = vmatprep.mubr.msk.f32.mxu1 %vm13893_vm0, %v13894_v1  ;;  %v14125_v5 = vpack.c.bf16 %v251_v3, %v250_v2  ;;  %v14129_v7 = vpack.c.bf16 %v253_v6, %v252_v4  ;;  %v242_v8 = vld [vmem:[%s13904_s5] sm:$0x3]  ;;  %v244_v9 = vld [vmem:[%s13904_s5 + $0x4] sm:$0x3]  ;;  %v246_v10 = vld [vmem:[%s13904_s5 + $0x8] sm:$0x3] }
  0xdc   :  { %v254_v11 = vld [vmem:[%s13924_s21] sm:$0xff]  ;;  %v255_v12 = vld [vmem:[%s13924_s21 + $0x8] sm:$0xff]  ;;  %v256_v15 = vld [vmem:[%s13924_s21 + $0x10] sm:$0xff]  ;;  %vm3046_vm3 = vcmask 254977   ;;  %vm3283_vm7 = vcmask 64512   ;;  %vm3368_vm12 = vcmask 130048  }
  0xdd   :  { %12761 = vmatpush3.bf16.msra.mxu0 %v14125_v5  ;;  %12767 = vmatpush3.bf16.msra.mxu1 %v14125_v5  ;;  %v248_v13 = vld [vmem:[%s13904_s5 + $0xc] sm:$0x3]  ;;  %v14164_v14 = vpack.c.bf16 %v255_v12, %v254_v11  ;;  %v257_v16 = vld [vmem:[%s13924_s21 + $0x18] sm:$0xff]  ;;  %v14186_v19 = vld [vmem:[%s13929_s25] ss:$0 sm:$0xff]  ;;  %s15314_s4 = sld [smem:[#allocation27_spill]] }
  0xde   :  { %12762 = vmatprep.subr.bf16.mxu0 %v13892_v0  ;;  %12768 = vmatprep.subr.bf16.mxu1 %v13892_v0  ;;  %v14171_v17 = vpack.c.bf16 %v257_v16, %v256_v15  ;;  %v850_v18 = vld [vmem:[#allocation3] sm:$0x3]  ;;  %v851_v24 = vld [vmem:[#allocation5] sm:$0x3]  ;;  %v243_v35 = vld [vmem:[%s13904_s5 + $0x2] sm:$0x3] }
  0xdf   :  { %v245_v36 = vld [vmem:[%s13904_s5 + $0x6] sm:$0x3]  ;;  %v247_v38 = vld [vmem:[%s13904_s5 + $0xa] sm:$0x3]  ;;  %v249_v39 = vld [vmem:[%s13904_s5 + $0xe] sm:$0x3] }
  0xe0   :  { %s15309_s5 = sld [smem:[#allocation23_spill]]  ;;  %s15316_s23 = sld [smem:[#allocation29_spill]] }
  0xe1   :  { %12764 = vmatpush3.bf16.msra.mxu0 %v14129_v7  ;;  %12770 = vmatpush3.bf16.msra.mxu1 %v14129_v7  ;;  %s15317_s20 = sld [smem:[#allocation30_spill]]  ;;  %s15318_s26 = sld [smem:[#allocation31_spill]] }
  0xe2   :  { %12771 = vmatprep.subr.bf16.mxu0 %v13892_v0  ;;  %12777 = vmatprep.subr.bf16.mxu1 %v13892_v0  ;;  %s15319_s28 = sld [smem:[#allocation32_spill]]  ;;  %s15320_s1 = sld [smem:[#allocation36_spill]] }
  0xe3   :  { %s15321_s9 = sld [smem:[#allocation33_spill]]  ;;  %s15322_s15 = sld [smem:[#allocation34_spill]] }
  0xe4   :  { %11559 = vmatmul.mubr.msk.f32.vlgmr.msra.gmra.mrb[0].mxu0 %vm265_vm1, %v242_v8  ;;  %11570 = vmatmul.mubr.msk.f32.vlgmr.msra.gmra.mrb[0].mxu1 %vm265_vm1, %v243_v35  ;;  %s15323_s2 = sld [smem:[#allocation35_spill]] }
  0xe5   :  { %12773 = vmatpush3.bf16.msra.mxu0 %v14125_v5  ;;  %11580 = vmatprep.mubr.msk.f32.mxu0 %vm13893_vm0, %v13894_v1 }
  0xe6   :  { %12774 = vmatprep.subr.bf16.mxu0 %v13892_v0  ;;  %12779 = vmatpush3.bf16.msra.mxu1 %v14125_v5 }
  0xe7   :  { %11591 = vmatprep.mubr.msk.f32.mxu1 %vm13893_vm0, %v13894_v1  ;;  %12780 = vmatprep.subr.bf16.mxu1 %v13892_v0 }
  0xe9   :  { %12776 = vmatpush3.bf16.msra.mxu0 %v14129_v7 }
  0xea   :  { %12783 = vmatprep.subr.bf16.mxu0 %v13892_v0  ;;  %12782 = vmatpush3.bf16.msra.mxu1 %v14129_v7 }
  0xeb   :  { %12789 = vmatprep.subr.bf16.mxu1 %v13892_v0 }
  0xec   :  { %11581 = vmatmul.mubr.msk.f32.vlgmr.msra.gmra.mrb[2].mxu0 %vm265_vm1, %v244_v9 }
  0xed   :  { %12785 = vmatpush3.bf16.msra.mxu0 %v14125_v5  ;;  %11602 = vmatprep.mubr.msk.f32.mxu0 %vm13893_vm0, %v13894_v1 }
  0xee   :  { %12786 = vmatprep.subr.bf16.mxu0 %v13892_v0  ;;  %11592 = vmatmul.mubr.msk.f32.vlgmr.msra.gmra.mrb[2].mxu1 %vm265_vm1, %v245_v36 }
  0xef   :  { %12791 = vmatpush3.bf16.msra.mxu1 %v14125_v5  ;;  %11613 = vmatprep.mubr.msk.f32.mxu1 %vm13893_vm0, %v13894_v1 }
  0xf0   :  { %12792 = vmatprep.subr.bf16.mxu1 %v13892_v0 }
  0xf1   :  { %12788 = vmatpush3.bf16.msra.mxu0 %v14129_v7 }
  0xf2   :  { %12795 = vmatprep.subr.bf16.mxu0 %v13892_v0 }
  0xf3   :  { %12794 = vmatpush3.bf16.msra.mxu1 %v14129_v7 }
  0xf4   :  { %11603 = vmatmul.mubr.msk.f32.vlgmr.msra.gmra.mrb[4].mxu0 %vm265_vm1, %v246_v10  ;;  %12801 = vmatprep.subr.bf16.mxu1 %v13892_v0 }
  0xf5   :  { %12797 = vmatpush3.bf16.msra.mxu0 %v14125_v5  ;;  %11624 = vmatprep.mubr.msk.f32.mxu0 %vm13893_vm0, %v13894_v1 }
  0xf6   :  { %12798 = vmatprep.subr.bf16.mxu0 %v13892_v0  ;;  %11614 = vmatmul.mubr.msk.f32.vlgmr.msra.gmra.mrb[4].mxu1 %vm265_vm1, %v247_v38 }
  0xf7   :  { %12803 = vmatpush3.bf16.msra.mxu1 %v14125_v5  ;;  %11635 = vmatprep.mubr.msk.f32.mxu1 %vm13893_vm0, %v13894_v1 }
  0xf8   :  { %12804 = vmatprep.subr.bf16.mxu1 %v13892_v0 }
  0xf9   :  { %12800 = vmatpush3.bf16.msra.mxu0 %v14129_v7 }
  0xfa   :  { %12807 = vmatprep.subr.bf16.mxu0 %v13892_v0 }
  0xfb   :  { %12806 = vmatpush3.bf16.msra.mxu1 %v14129_v7 }
  0xfc   :  { %11625 = vmatmul.mubr.msk.f32.vlgmr.msra.gmra.mrb[6].mxu0 %vm265_vm1, %v248_v13  ;;  %12813 = vmatprep.subr.bf16.mxu1 %v13892_v0 }
  0xfd   :  { %12809 = vmatpush3.bf16.msra.mxu0 %v14164_v14  ;;  %11646 = vmatprep.mubr.msk.f32.mxu0 %vm13893_vm0, %v13894_v1 }
  0xfe   :  { %12810 = vmatprep.subr.bf16.mxu0 %v13892_v0  ;;  %11636 = vmatmul.mubr.msk.f32.vlgmr.msra.gmra.mrb[6].mxu1 %vm265_vm1, %v249_v39 }
  0xff   :  { %12815 = vmatpush3.bf16.msra.mxu1 %v14164_v14  ;;  %11657 = vmatprep.mubr.msk.f32.mxu1 %vm13893_vm0, %v13894_v1 }
 0x100   :  { %12816 = vmatprep.subr.bf16.mxu1 %v13892_v0 }
 0x101   :  { %12812 = vmatpush3.bf16.msra.mxu0 %v14171_v17 }
 0x102   :  { %12819 = vmatprep.subr.bf16.mxu0 %v13892_v0 }
 0x103   :  { %12818 = vmatpush3.bf16.msra.mxu1 %v14171_v17 }
 0x104   :  { %11647 = vmatmul.mubr.msk.f32.vlgmr.msra.gmra.mrb[0].mxu0 %vm265_vm1, %v850_v18  ;;  %12825 = vmatprep.subr.bf16.mxu1 %v13892_v0 }
 0x105   :  { %12821 = vmatpush3.bf16.msra.mxu0 %v14164_v14  ;;  %11668 = vmatprep.mubr.msk.f32.mxu0 %vm13893_vm0, %v13894_v1 }
 0x106   :  { %12822 = vmatprep.subr.bf16.mxu0 %v13892_v0 }
 0x109   :  { %12824 = vmatpush3.bf16.msra.mxu0 %v14171_v17 }
 0x10a   :  { %12831 = vmatprep.subr.bf16.mxu0 %v13892_v0 }
 0x1d7   :  { %v921_v20 = vpop.f32.mrb[0].mxu0 }
 0x1d8   :  { %v13303_v21 = vadd.f32 %v14186_v19, %v921_v20  ;;  %v11648_v22 = vpop.f32.mrb[1].mxu0 }
 0x1da   :  { %13510 = vtanh.f32 %v13303_v21  ;;  %v10398_v25 = vmul.f32 -1.442695, %v13303_v21 }
 0x1dc   :  { %13512 = vpow2.f32 %v10398_v25 }
 0x1e4   :  { %v13511_v23 = vpop.eup %13510 }
 0x1e5   :  { %939 = vrot.lane.b32.xlu0 %v13511_v23, %s13895_s12 }
 0x1e6   :  { %v13513_v26 = vpop.eup %13512 }
 0x1e7   :  { %v929_v27 = vadd.f32 1.0, %v13513_v26 }
 0x1e9   :  { %934 = vrot.lane.b32.xlu0 %v851_v24, %s13883_s11  ;;  %13514 = vrcp.f32 %v929_v27 }
 0x1f3   :  { %v13515_v28 = vpop.eup %13514 }
 0x257   :  { %v940_v29 = vpop.permute.xlu0 %939 }
 0x258   :  { %v942_v30 = vmul.f32 %v13515_v28, %v940_v29 }
 0x25a   :  { %944 = vrot.lane.b32.xlu1 %v942_v30, %s13883_s11 }
 0x25b   :  { %v935_v31 = vpop.permute.xlu0 %934 }
 0x25c   :  { %v937_v32 = vmul.f32 %v13515_v28, %v935_v31 }
 0x2cc   :  { %v945_v33 = vpop.permute.xlu1 %944 }
 0x2cd   :  { %v947_v34 = vadd.f32 %v945_v33, %v937_v32 }
 0x2cf   :  { %13516 = vtanh.f32 %v947_v34 }
 0x2d9   :  { %v13517_v37 = vpop.eup %13516 }
 0x2da   :  { %950 = vrot.lane.b32.xlu1 %v13517_v37, %s13895_s12 }
 0x34c   :  { %v951_v40 = vpop.permute.xlu1 %950 }
 0x34d   :  { %v953_v41 = vmul.f32 %v13515_v28, %v951_v40 }
 0x34f   :  { %955 = vrot.lane.b32.xlu0 %v953_v41, %s13883_s11 }
 0x3c1   :  { %v14226_v42 = vpop.permute.xlu0 %955 }
 0x3c2   :  { %11658 = vmatmul.mubr.msk.f32.vlgmr.msra.gmra.mrb[0].mxu1 %vm265_vm1, %v14226_v42 }
 0x3c3   :  { %12827 = vmatpush3.bf16.msra.mxu1 %v14164_v14  ;;  %11679 = vmatprep.mubr.msk.f32.mxu1 %vm13893_vm0, %v13894_v1 }
 0x3c4   :  { %12828 = vmatprep.subr.bf16.mxu1 %v13892_v0 }
 0x3c7   :  { %12830 = vmatpush3.bf16.msra.mxu1 %v14171_v17 }
 0x3c8   :  { %12837 = vmatprep.subr.bf16.mxu1 %v13892_v0 }
 0x495   :  { %v1025_v43 = vpop.f32.mrb[0].mxu1 }
 0x496   :  { %v13304_v44 = vadd.f32 %v14186_v19, %v1025_v43  ;;  %v11659_v45 = vpop.f32.mrb[1].mxu1 }
 0x498   :  { %13518 = vtanh.f32 %v13304_v44  ;;  %v10400_v47 = vmul.f32 -1.442695, %v13304_v44 }
 0x49a   :  { %13520 = vpow2.f32 %v10400_v47 }
 0x4a2   :  { %v13519_v46 = vpop.eup %13518 }
 0x4a3   :  { %1039 = vrot.lane.b32.xlu1 %v13519_v46, %s13895_s12 }
 0x4a4   :  { %v13521_v48 = vpop.eup %13520 }
 0x4a5   :  { %v1033_v49 = vadd.f32 1.0, %v13521_v48 }
 0x4a7   :  { %13522 = vrcp.f32 %v1033_v49 }
 0x4b1   :  { %v13523_v50 = vpop.eup %13522 }
 0x4b2   :  { %v1037_v53 = vmul.f32 %v13523_v50, %v947_v34 }
 0x515   :  { %v1040_v51 = vpop.permute.xlu1 %1039 }
 0x516   :  { %v1042_v52 = vmul.f32 %v13523_v50, %v1040_v51 }
 0x518   :  { %1044 = vrot.lane.b32.xlu0 %v1042_v52, %s13883_s11 }
 0x58a   :  { %v1045_v54 = vpop.permute.xlu0 %1044 }
 0x58b   :  { %v1047_v55 = vadd.f32 %v1045_v54, %v1037_v53 }
 0x58d   :  { %13524 = vtanh.f32 %v1047_v55 }
 0x597   :  { %v13525_v56 = vpop.eup %13524 }
 0x598   :  { %1050 = vrot.lane.b32.xlu1 %v13525_v56, %s13895_s12 }
 0x60a   :  { %v1051_v57 = vpop.permute.xlu1 %1050 }
 0x60b   :  { %v1053_v58 = vmul.f32 %v13523_v50, %v1051_v57 }
 0x60d   :  { %1055 = vrot.lane.b32.xlu0 %v1053_v58, %s13883_s11 }
 0x67f   :  { %v14241_v59 = vpop.permute.xlu0 %1055 }
 0x680   :  { %11669 = vmatmul.mubr.msk.f32.vlgmr.msra.gmra.mrb[2].mxu0 %vm265_vm1, %v14241_v59 }
 0x681   :  { %12833 = vmatpush3.bf16.msra.mxu0 %v14164_v14  ;;  %11690 = vmatprep.mubr.msk.f32.mxu0 %vm13893_vm0, %v13894_v1 }
 0x682   :  { %12834 = vmatprep.subr.bf16.mxu0 %v13892_v0 }
 0x685   :  { %12836 = vmatpush3.bf16.msra.mxu0 %v14171_v17 }
 0x686   :  { %12843 = vmatprep.subr.bf16.mxu0 %v13892_v0 }
 0x753   :  { %v1125_v60 = vpop.f32.mrb[2].mxu0 }
 0x754   :  { %v13305_v61 = vadd.f32 %v14186_v19, %v1125_v60  ;;  %v11670_v62 = vpop.f32.mrb[3].mxu0 }
 0x756   :  { %13526 = vtanh.f32 %v13305_v61  ;;  %v10402_v2 = vmul.f32 -1.442695, %v13305_v61 }
 0x758   :  { %13528 = vpow2.f32 %v10402_v2 }
 0x760   :  { %v13527_v63 = vpop.eup %13526 }
 0x761   :  { %1139 = vrot.lane.b32.xlu1 %v13527_v63, %s13895_s12 }
 0x762   :  { %v13529_v3 = vpop.eup %13528 }
 0x763   :  { %v1133_v4 = vadd.f32 1.0, %v13529_v3 }
 0x765   :  { %13530 = vrcp.f32 %v1133_v4 }
 0x76f   :  { %v13531_v5 = vpop.eup %13530 }
 0x770   :  { %v1137_v8 = vmul.f32 %v13531_v5, %v1047_v55 }
 0x7d3   :  { %v1140_v6 = vpop.permute.xlu1 %1139 }
 0x7d4   :  { %v1142_v7 = vmul.f32 %v13531_v5, %v1140_v6  ;;  %v10413_v6 = vld [vmem:[%s13919_s17 + $0x20] sm:$0xff] }
 0x7d6   :  { %1144 = vrot.lane.b32.xlu0 %v1142_v7, %s13883_s11  ;;  %v10414_v7 = vld [vmem:[%s13919_s17 + $0x28] sm:$0xff] }
 0x848   :  { %v1145_v9 = vpop.permute.xlu0 %1144 }
 0x849   :  { %v1147_v10 = vadd.f32 %v1145_v9, %v1137_v8  ;;  %v14300_v8 = vpack.c.bf16 %v10414_v7, %v10413_v6  ;;  %v10415_v9 = vld [vmem:[%s13919_s17 + $0x30] sm:$0xff] }
 0x84b   :  { %13532 = vtanh.f32 %v1147_v10 }
 0x855   :  { %v13533_v11 = vpop.eup %13532 }
 0x856   :  { %1150 = vrot.lane.b32.xlu1 %v13533_v11, %s13895_s12 }
 0x8c8   :  { %v1151_v12 = vpop.permute.xlu1 %1150 }
 0x8c9   :  { %v1153_v13 = vmul.f32 %v13531_v5, %v1151_v12 }
 0x8cb   :  { %1155 = vrot.lane.b32.xlu0 %v1153_v13, %s13883_s11 }
 0x93d   :  { %v14256_v15 = vpop.permute.xlu0 %1155 }
 0x93e   :  { %11680 = vmatmul.mubr.msk.f32.vlgmr.msra.gmra.mrb[2].mxu1 %vm265_vm1, %v14256_v15 }
 0x93f   :  { %12839 = vmatpush3.bf16.msra.mxu1 %v14164_v14  ;;  %11701 = vmatprep.mubr.msk.f32.mxu1 %vm13893_vm0, %v13894_v1 }
 0x940   :  { %12840 = vmatprep.subr.bf16.mxu1 %v13892_v0 }
 0x943   :  { %12842 = vmatpush3.bf16.msra.mxu1 %v14171_v17 }
 0x944   :  { %12849 = vmatprep.subr.bf16.mxu1 %v13892_v0 }
 0xa11   :  { %v1225_v16 = vpop.f32.mrb[2].mxu1 }
 0xa12   :  { %v13306_v18 = vadd.f32 %v14186_v19, %v1225_v16  ;;  %v11681_v20 = vpop.f32.mrb[3].mxu1 }
 0xa14   :  { %13534 = vtanh.f32 %v13306_v18  ;;  %v10404_v22 = vmul.f32 -1.442695, %v13306_v18 }
 0xa16   :  { %13536 = vpow2.f32 %v10404_v22 }
 0xa1e   :  { %v13535_v21 = vpop.eup %13534 }
 0xa1f   :  { %1239 = vrot.lane.b32.xlu1 %v13535_v21, %s13895_s12 }
 0xa20   :  { %v13537_v23 = vpop.eup %13536 }
 0xa21   :  { %v1233_v24 = vadd.f32 1.0, %v13537_v23 }
 0xa23   :  { %13538 = vrcp.f32 %v1233_v24 }
 0xa2d   :  { %v13539_v25 = vpop.eup %13538 }
 0xa2e   :  { %v1237_v28 = vmul.f32 %v13539_v25, %v1147_v10  ;;  %v10416_v10 = vld [vmem:[%s13919_s17 + $0x38] sm:$0xff]  ;;  %s15310_s17 = sld [smem:[#allocation22_spill]] }
 0xa2f   :  { %v14309_v12 = vpack.c.bf16 %v10416_v10, %v10415_v9 }
 0xa91   :  { %v1240_v26 = vpop.permute.xlu1 %1239 }
 0xa92   :  { %v1242_v27 = vmul.f32 %v13539_v25, %v1240_v26 }
 0xa94   :  { %1244 = vrot.lane.b32.xlu0 %v1242_v27, %s13883_s11 }
 0xb06   :  { %v1245_v29 = vpop.permute.xlu0 %1244 }
 0xb07   :  { %v1247_v30 = vadd.f32 %v1245_v29, %v1237_v28 }
 0xb09   :  { %13540 = vtanh.f32 %v1247_v30 }
 0xb13   :  { %v13541_v31 = vpop.eup %13540 }
 0xb14   :  { %1250 = vrot.lane.b32.xlu1 %v13541_v31, %s13895_s12  ;;  %v10417_v31 = vld [vmem:[%s13924_s21 + $0x20] sm:$0xff] }
 0xb86   :  { %v1251_v32 = vpop.permute.xlu1 %1250 }
 0xb87   :  { %v1253_v33 = vmul.f32 %v13539_v25, %v1251_v32  ;;  %v10418_v32 = vld [vmem:[%s13924_s21 + $0x28] sm:$0xff] }
 0xb89   :  { %1255 = vrot.lane.b32.xlu0 %v1253_v33, %s13883_s11  ;;  %v14349_v33 = vpack.c.bf16 %v10418_v32, %v10417_v31 }
 0xbfb   :  { %v14271_v34 = vpop.permute.xlu0 %1255 }
 0xbfc   :  { %11691 = vmatmul.mubr.msk.f32.vlgmr.msra.gmra.mrb[4].mxu0 %vm265_vm1, %v14271_v34 }
 0xbfd   :  { %12845 = vmatpush3.bf16.msra.mxu0 %v14164_v14  ;;  %11712 = vmatprep.mubr.msk.f32.mxu0 %vm13893_vm0, %v13894_v1 }
 0xbfe   :  { %12846 = vmatprep.subr.bf16.mxu0 %v13892_v0 }
 0xc01   :  { %12848 = vmatpush3.bf16.msra.mxu0 %v14171_v17 }
 0xc02   :  { %12855 = vmatprep.subr.bf16.mxu0 %v13892_v0 }
 0xccf   :  { %v1325_v35 = vpop.f32.mrb[4].mxu0 }
 0xcd0   :  { %v13307_v36 = vadd.f32 %v14186_v19, %v1325_v35  ;;  %v11692_v37 = vpop.f32.mrb[5].mxu0  ;;  %v10419_v35 = vld [vmem:[%s13924_s21 + $0x30] sm:$0xff] }
 0xcd2   :  { %13542 = vtanh.f32 %v13307_v36  ;;  %v10406_v39 = vmul.f32 -1.442695, %v13307_v36  ;;  %v10420_v36 = vld [vmem:[%s13924_s21 + $0x38] sm:$0xff]  ;;  %s15311_s21 = sld [smem:[#allocation24_spill]] }
 0xcd4   :  { %13544 = vpow2.f32 %v10406_v39  ;;  %v2238_v39 = vld [vmem:[#allocation3 + $0x2] sm:$0x3] }
 0xcdc   :  { %v13543_v38 = vpop.eup %13542 }
 0xcdd   :  { %1339 = vrot.lane.b32.xlu1 %v13543_v38, %s13895_s12  ;;  %v14357_v38 = vpack.c.bf16 %v10420_v36, %v10419_v35 }
 0xcde   :  { %v13545_v40 = vpop.eup %13544 }
 0xcdf   :  { %v1333_v41 = vadd.f32 1.0, %v13545_v40 }
 0xce1   :  { %13546 = vrcp.f32 %v1333_v41  ;;  %v14402_v41 = vld [vmem:[%s13929_s25 + $0x1] ss:$0 sm:$0xff]  ;;  %s15312_s25 = sld [smem:[#allocation25_spill]] }
 0xceb   :  { %v13547_v43 = vpop.eup %13546 }
 0xcec   :  { %v1337_v46 = vmul.f32 %v13547_v43, %v1247_v30 }
 0xd4f   :  { %v1340_v44 = vpop.permute.xlu1 %1339 }
 0xd50   :  { %v1342_v45 = vmul.f32 %v13547_v43, %v1340_v44 }
 0xd52   :  { %1344 = vrot.lane.b32.xlu0 %v1342_v45, %s13883_s11 }
 0xdc4   :  { %v1345_v47 = vpop.permute.xlu0 %1344 }
 0xdc5   :  { %v1347_v48 = vadd.f32 %v1345_v47, %v1337_v46 }
 0xdc7   :  { %13548 = vtanh.f32 %v1347_v48 }
 0xdd1   :  { %v13549_v49 = vpop.eup %13548 }
 0xdd2   :  { %1350 = vrot.lane.b32.xlu1 %v13549_v49, %s13895_s12 }
 0xe44   :  { %v1351_v50 = vpop.permute.xlu1 %1350 }
 0xe45   :  { %v1353_v51 = vmul.f32 %v13547_v43, %v1351_v50 }
 0xe47   :  { %1355 = vrot.lane.b32.xlu0 %v1353_v51, %s13883_s11 }
 0xeb9   :  { %v1356_v52 = vpop.permute.xlu0 %1355 }
 0xeba   :  { %11702 = vmatmul.mubr.msk.f32.vlgmr.msra.gmra.mrb[4].mxu1 %vm265_vm1, %v1356_v52 }
 0xebb   :  { %12851 = vmatpush3.bf16.msra.mxu1 %v14164_v14  ;;  %11723 = vmatprep.mubr.msk.f32.mxu1 %vm13893_vm0, %v13894_v1 }
 0xebc   :  { %12852 = vmatprep.subr.bf16.mxu1 %v13892_v0 }
 0xebf   :  { %12854 = vmatpush3.bf16.msra.mxu1 %v14171_v17 }
 0xec0   :  { %12861 = vmatprep.subr.bf16.mxu1 %v13892_v0 }
 0xf8d   :  { %v1425_v53 = vpop.f32.mrb[4].mxu1 }
 0xf8e   :  { %v13308_v54 = vadd.f32 %v14186_v19, %v1425_v53  ;;  %v11703_v55 = vpop.f32.mrb[5].mxu1 }
 0xf90   :  { %13550 = vtanh.f32 %v13308_v54  ;;  %v10408_v57 = vmul.f32 -1.442695, %v13308_v54 }
 0xf92   :  { %13552 = vpow2.f32 %v10408_v57 }
 0xf9a   :  { %v13551_v56 = vpop.eup %13550 }
 0xf9b   :  { %1439 = vrot.lane.b32.xlu1 %v13551_v56, %s13895_s12 }
 0xf9c   :  { %v13553_v14 = vpop.eup %13552 }
 0xf9d   :  { %v1433_v58 = vadd.f32 1.0, %v13553_v14 }
 0xf9f   :  { %13554 = vrcp.f32 %v1433_v58 }
 0xfa9   :  { %v13555_v60 = vpop.eup %13554 }
 0xfaa   :  { %v1437_v62 = vmul.f32 %v13555_v60, %v1347_v48  ;;  %v2240_v48 = vld [vmem:[#allocation5 + $0x2] sm:$0x3] }
0x100d   :  { %v1440_v17 = vpop.permute.xlu1 %1439 }
0x100e   :  { %v1442_v61 = vmul.f32 %v13555_v60, %v1440_v17 }
0x1010   :  { %1444 = vrot.lane.b32.xlu0 %v1442_v61, %s13883_s11 }
0x1082   :  { %v1445_v63 = vpop.permute.xlu0 %1444 }
0x1083   :  { %v1447_v2 = vadd.f32 %v1445_v63, %v1437_v62 }
0x1085   :  { %13556 = vtanh.f32 %v1447_v2 }
0x108f   :  { %v13557_v3 = vpop.eup %13556 }
0x1090   :  { %1450 = vrot.lane.b32.xlu1 %v13557_v3, %s13895_s12 }
0x1102   :  { %v1451_v4 = vpop.permute.xlu1 %1450 }
0x1103   :  { %v1453_v5 = vmul.f32 %v13555_v60, %v1451_v4 }
0x1105   :  { %1455 = vrot.lane.b32.xlu0 %v1453_v5, %s13883_s11 }
0x1177   :  { %v14304_v11 = vpop.permute.xlu0 %1455 }
0x1178   :  { %11713 = vmatmul.mubr.msk.f32.vlgmr.msra.gmra.mrb[6].mxu0 %vm265_vm1, %v14304_v11 }
0x1179   :  { %12857 = vmatpush3.bf16.msra.mxu0 %v14300_v8  ;;  %11734 = vmatprep.mubr.msk.f32.mxu0 %vm13893_vm0, %v13894_v1 }
0x117a   :  { %12858 = vmatprep.subr.bf16.mxu0 %v13892_v0 }
0x117d   :  { %12860 = vmatpush3.bf16.msra.mxu0 %v14309_v12 }
0x117e   :  { %12867 = vmatprep.subr.bf16.mxu0 %v13892_v0 }
0x1180   :  { %11735 = vmatmul.mubr.msk.f32.vlgmr.msra.gmra.mrb[8].mxu0 %vm265_vm1, %v14226_v42 }
0x1181   :  { %12869 = vmatpush3.bf16.msra.mxu0 %v14300_v8  ;;  %11756 = vmatprep.mubr.msk.f32.mxu0 %vm13893_vm0, %v13894_v1 }
0x1182   :  { %12870 = vmatprep.subr.bf16.mxu0 %v13892_v0 }
0x1185   :  { %12872 = vmatpush3.bf16.msra.mxu0 %v14309_v12 }
0x1186   :  { %12879 = vmatprep.subr.bf16.mxu0 %v13892_v0 }
0x1188   :  { %11757 = vmatmul.mubr.msk.f32.vlgmr.msra.gmra.mrb[10].mxu0 %vm265_vm1, %v14256_v15 }
0x1189   :  { %12881 = vmatpush3.bf16.msra.mxu0 %v14300_v8  ;;  %11778 = vmatprep.mubr.msk.f32.mxu0 %vm13893_vm0, %v13894_v1 }
0x118a   :  { %12882 = vmatprep.subr.bf16.mxu0 %v13892_v0 }
0x118d   :  { %12884 = vmatpush3.bf16.msra.mxu0 %v14309_v12 }
0x118e   :  { %12891 = vmatprep.subr.bf16.mxu0 %v13892_v0 }
0x1190   :  { %11779 = vmatmul.mubr.msk.f32.vlgmr.msra.gmra.mrb[12].mxu0 %vm265_vm1, %v1356_v52 }
0x1191   :  { %12893 = vmatpush3.bf16.msra.mxu0 %v14300_v8  ;;  %11800 = vmatprep.mubr.msk.f32.mxu0 %vm13893_vm0, %v13894_v1 }
0x1192   :  { %12894 = vmatprep.subr.bf16.mxu0 %v13892_v0 }
0x1195   :  { %12896 = vmatpush3.bf16.msra.mxu0 %v14309_v12 }
0x1196   :  { %12903 = vmatprep.subr.bf16.mxu0 %v13892_v0 }
0x124b   :  { %v1525_v42 = vpop.f32.mrb[6].mxu0 }
0x124c   :  { %v13309_v13 = vadd.f32 %v14186_v19, %v1525_v42  ;;  %v11714_v15 = vpop.f32.mrb[7].mxu0 }
0x124e   :  { %13558 = vtanh.f32 %v13309_v13  ;;  %v10410_v18 = vmul.f32 -1.442695, %v13309_v13 }
0x1250   :  { %13560 = vpow2.f32 %v10410_v18 }
0x1258   :  { %v13559_v16 = vpop.eup %13558 }
0x1259   :  { %1539 = vrot.lane.b32.xlu1 %v13559_v16, %s13895_s12 }
0x125a   :  { %v13561_v20 = vpop.eup %13560 }
0x125b   :  { %v1533_v21 = vadd.f32 1.0, %v13561_v20 }
0x125d   :  { %13562 = vrcp.f32 %v1533_v21 }
0x1267   :  { %v13563_v22 = vpop.eup %13562 }
0x1268   :  { %v1537_v25 = vmul.f32 %v13563_v22, %v1447_v2 }
0x12cb   :  { %v1540_v23 = vpop.permute.xlu1 %1539 }
0x12cc   :  { %v1542_v24 = vmul.f32 %v13563_v22, %v1540_v23 }
0x12ce   :  { %1544 = vrot.lane.b32.xlu0 %v1542_v24, %s13883_s11 }
0x1340   :  { %v1545_v26 = vpop.permute.xlu0 %1544 }
0x1341   :  { %v14342_v27 = vadd.f32 %v1545_v26, %v1537_v25 }
0x1343   :  { %13564 = vtanh.f32 %v14342_v27 }
0x134d   :  { %v13565_v28 = vpop.eup %13564 }
0x134e   :  { %1550 = vrot.lane.b32.xlu1 %v13565_v28, %s13895_s12 }
0x13c0   :  { %v1551_v29 = vpop.permute.xlu1 %1550 }
0x13c1   :  { %v1553_v30 = vmul.f32 %v13563_v22, %v1551_v29 }
0x13c3   :  { %1555 = vrot.lane.b32.xlu0 %v1553_v30, %s13883_s11 }
0x1435   :  { %v1556_v37 = vpop.permute.xlu0 %1555 }
0x1436   :  { %11724 = vmatmul.mubr.msk.f32.vlgmr.msra.gmra.mrb[6].mxu1 %vm265_vm1, %v1556_v37  ;;  %11801 = vmatmul.mubr.msk.f32.vlgmr.msra.gmra.mrb[14].mxu0 %vm265_vm1, %v1556_v37 }
0x1437   :  { %12863 = vmatpush3.bf16.msra.mxu1 %v14300_v8  ;;  %12905 = vmatpush3.bf16.msra.mxu0 %v14349_v33 }
0x1438   :  { %12864 = vmatprep.subr.bf16.mxu1 %v13892_v0  ;;  %12906 = vmatprep.subr.bf16.mxu0 %v13892_v0 }
0x1439   :  { %11745 = vmatprep.mubr.msk.f32.mxu1 %vm13893_vm0, %v13894_v1  ;;  %11822 = vmatprep.mubr.msk.f32.mxu0 %vm13893_vm0, %v13894_v1 }
0x143b   :  { %12866 = vmatpush3.bf16.msra.mxu1 %v14309_v12  ;;  %12908 = vmatpush3.bf16.msra.mxu0 %v14357_v38 }
0x143c   :  { %12873 = vmatprep.subr.bf16.mxu1 %v13892_v0  ;;  %12915 = vmatprep.subr.bf16.mxu0 %v13892_v0 }
0x143e   :  { %11746 = vmatmul.mubr.msk.f32.vlgmr.msra.gmra.mrb[8].mxu1 %vm265_vm1, %v14241_v59  ;;  %11823 = vmatmul.mubr.msk.f32.vlgmr.msra.gmra.mrb[8].mxu0 %vm265_vm1, %v2238_v39 }
0x143f   :  { %12875 = vmatpush3.bf16.msra.mxu1 %v14300_v8  ;;  %11767 = vmatprep.mubr.msk.f32.mxu1 %vm13893_vm0, %v13894_v1 }
0x1440   :  { %12876 = vmatprep.subr.bf16.mxu1 %v13892_v0  ;;  %12917 = vmatpush3.bf16.msra.mxu0 %v14349_v33 }
0x1441   :  { %12918 = vmatprep.subr.bf16.mxu0 %v13892_v0  ;;  %11844 = vmatprep.mubr.msk.f32.mxu0 %vm13893_vm0, %v13894_v1 }
0x1443   :  { %12878 = vmatpush3.bf16.msra.mxu1 %v14309_v12 }
0x1444   :  { %12885 = vmatprep.subr.bf16.mxu1 %v13892_v0  ;;  %12920 = vmatpush3.bf16.msra.mxu0 %v14357_v38 }
0x1445   :  { %12927 = vmatprep.subr.bf16.mxu0 %v13892_v0 }
0x1446   :  { %11768 = vmatmul.mubr.msk.f32.vlgmr.msra.gmra.mrb[10].mxu1 %vm265_vm1, %v14271_v34 }
0x1447   :  { %12887 = vmatpush3.bf16.msra.mxu1 %v14300_v8  ;;  %11789 = vmatprep.mubr.msk.f32.mxu1 %vm13893_vm0, %v13894_v1 }
0x1448   :  { %12888 = vmatprep.subr.bf16.mxu1 %v13892_v0 }
0x144b   :  { %12890 = vmatpush3.bf16.msra.mxu1 %v14309_v12 }
0x144c   :  { %12897 = vmatprep.subr.bf16.mxu1 %v13892_v0 }
0x144e   :  { %11790 = vmatmul.mubr.msk.f32.vlgmr.msra.gmra.mrb[12].mxu1 %vm265_vm1, %v14304_v11 }
0x144f   :  { %12899 = vmatpush3.bf16.msra.mxu1 %v14300_v8  ;;  %11811 = vmatprep.mubr.msk.f32.mxu1 %vm13893_vm0, %v13894_v1 }
0x1450   :  { %12900 = vmatprep.subr.bf16.mxu1 %v13892_v0 }
0x1453   :  { %12902 = vmatpush3.bf16.msra.mxu1 %v14309_v12 }
0x1454   :  { %12909 = vmatprep.subr.bf16.mxu1 %v13892_v0 }
0x1509   :  { %v1625_v59 = vpop.f32.mrb[6].mxu1 }
0x150a   :  { %v13310_v34 = vadd.f32 %v14186_v19, %v1625_v59  ;;  %v11725_v40 = vpop.f32.mrb[7].mxu1 }
0x150c   :  { %13566 = vtanh.f32 %v13310_v34  ;;  %v10412_v49 = vmul.f32 -1.442695, %v13310_v34 }
0x1511   :  { %v2310_v43 = vpop.f32.mrb[8].mxu0 }
0x1512   :  { %v13311_v44 = vadd.f32 %v14402_v41, %v2310_v43  ;;  %v11824_v45 = vpop.f32.mrb[9].mxu0 }
0x1514   :  { %13568 = vtanh.f32 %v13311_v44  ;;  %v10432_v19 = vmul.f32 -1.442695, %v13311_v44 }
0x1515   :  { %13570 = vpow2.f32 %v10412_v49 }
0x1516   :  { %v13567_v46 = vpop.eup %13566  ;;  %13572 = vpow2.f32 %v10432_v19 }
0x1517   :  { %1639 = vrot.lane.b32.xlu1 %v13567_v46, %s13895_s12 }
0x151e   :  { %v13569_v47 = vpop.eup %13568 }
0x151f   :  { %2328 = vrot.lane.b32.xlu0 %v13569_v47, %s13895_s12  ;;  %v13571_v50 = vpop.eup %13570 }
0x1520   :  { %v1633_v51 = vadd.f32 1.0, %v13571_v50  ;;  %v13573_v52 = vpop.eup %13572 }
0x1521   :  { %v2318_v53 = vadd.f32 1.0, %v13573_v52 }
0x1522   :  { %13574 = vrcp.f32 %v1633_v51 }
0x1523   :  { %2323 = vrot.lane.b32.xlu0 %v2240_v48, %s13883_s11  ;;  %13576 = vrcp.f32 %v2318_v53 }
0x152c   :  { %v13575_v54 = vpop.eup %13574 }
0x152d   :  { %v13577_v57 = vpop.eup %13576  ;;  %v1637_v60 = vmul.f32 %v13575_v54, %v14342_v27 }
0x1589   :  { %v1640_v55 = vpop.permute.xlu1 %1639 }
0x158a   :  { %v1642_v56 = vmul.f32 %v13575_v54, %v1640_v55 }
0x158c   :  { %1644 = vrot.lane.b32.xlu1 %v1642_v56, %s13883_s11 }
0x1591   :  { %v2329_v14 = vpop.permute.xlu0 %2328 }
0x1592   :  { %v2331_v58 = vmul.f32 %v13577_v57, %v2329_v14 }
0x1594   :  { %2333 = vrot.lane.b32.xlu1 %v2331_v58, %s13883_s11 }
0x1595   :  { %v2324_v62 = vpop.permute.xlu0 %2323 }
0x1596   :  { %v2326_v63 = vmul.f32 %v13577_v57, %v2324_v62 }
0x15fe   :  { %v1645_v17 = vpop.permute.xlu1 %1644 }
0x15ff   :  { %v1647_v61 = vadd.f32 %v1645_v17, %v1637_v60 }
0x1601   :  { %13578 = vtanh.f32 %v1647_v61 }
0x1606   :  { %v2334_v2 = vpop.permute.xlu1 %2333 }
0x1607   :  { %v2336_v3 = vadd.f32 %v2334_v2, %v2326_v63 }
0x1609   :  { %13580 = vtanh.f32 %v2336_v3 }
0x160b   :  { %v13579_v4 = vpop.eup %13578 }
0x160c   :  { %1650 = vrot.lane.b32.xlu0 %v13579_v4, %s13895_s12 }
0x1613   :  { %v13581_v5 = vpop.eup %13580 }
0x1614   :  { %2339 = vrot.lane.b32.xlu1 %v13581_v5, %s13895_s12 }
0x167e   :  { %v1651_v6 = vpop.permute.xlu0 %1650 }
0x167f   :  { %v1653_v7 = vmul.f32 %v13575_v54, %v1651_v6 }
0x1681   :  { %2163 = vrot.lane.b32.xlu0 %v1653_v7, %s13883_s11 }
0x1686   :  { %v2340_v8 = vpop.permute.xlu1 %2339 }
0x1687   :  { %v2342_v9 = vmul.f32 %v13577_v57, %v2340_v8 }
0x1689   :  { %2344 = vrot.lane.b32.xlu1 %v2342_v9, %s13883_s11 }
0x16f3   :  { %v2164_v10 = vpop.permute.xlu0 %2163 }
0x16f4   :  { %11812 = vmatmul.mubr.msk.f32.vlgmr.msra.gmra.mrb[14].mxu1 %vm265_vm1, %v2164_v10 }
0x16f5   :  { %12911 = vmatpush3.bf16.msra.mxu1 %v14349_v33  ;;  %11833 = vmatprep.mubr.msk.f32.mxu1 %vm13893_vm0, %v13894_v1 }
0x16f6   :  { %12912 = vmatprep.subr.bf16.mxu1 %v13892_v0 }
0x16f9   :  { %12914 = vmatpush3.bf16.msra.mxu1 %v14357_v38 }
0x16fa   :  { %12921 = vmatprep.subr.bf16.mxu1 %v13892_v0 }
0x16fb   :  { %v2345_v11 = vpop.permute.xlu1 %2344 }
0x16fc   :  { %3045 = vst.msk [vmem:[#allocation2] sm:$0x1] %vm3044_vm2, %v2345_v11  ;;  %11834 = vmatmul.mubr.msk.f32.vlgmr.msra.gmra.mrb[8].mxu1 %vm265_vm1, %v2345_v11 }
0x16fd   :  { %3047 = vst.msk [vmem:[#allocation2 + $0x7] sm:$0x2] %vm3046_vm3, %v2345_v11  ;;  %12923 = vmatpush3.bf16.msra.mxu1 %v14349_v33  ;;  %11855 = vmatprep.mubr.msk.f32.mxu1 %vm13893_vm0, %v13894_v1 }
0x16fe   :  { %12924 = vmatprep.subr.bf16.mxu1 %v13892_v0 }
0x1701   :  { %12926 = vmatpush3.bf16.msra.mxu1 %v14357_v38 }
0x1702   :  { %12933 = vmatprep.subr.bf16.mxu1 %v13892_v0 }
0x17cf   :  { %v2414_v12 = vpop.f32.mrb[8].mxu1 }
0x17d0   :  { %v13312_v42 = vadd.f32 %v14402_v41, %v2414_v12  ;;  %v11835_v13 = vpop.f32.mrb[9].mxu1 }
0x17d2   :  { %13582 = vtanh.f32 %v13312_v42  ;;  %v10434_v16 = vmul.f32 -1.442695, %v13312_v42 }
0x17d4   :  { %13584 = vpow2.f32 %v10434_v16 }
0x17dc   :  { %v13583_v15 = vpop.eup %13582 }
0x17dd   :  { %2428 = vrot.lane.b32.xlu0 %v13583_v15, %s13895_s12 }
0x17de   :  { %v13585_v18 = vpop.eup %13584 }
0x17df   :  { %v2422_v20 = vadd.f32 1.0, %v13585_v18 }
0x17e1   :  { %13586 = vrcp.f32 %v2422_v20 }
0x17eb   :  { %v13587_v21 = vpop.eup %13586 }
0x17ec   :  { %v2426_v24 = vmul.f32 %v13587_v21, %v2336_v3 }
0x184f   :  { %v2429_v22 = vpop.permute.xlu0 %2428 }
0x1850   :  { %v2431_v23 = vmul.f32 %v13587_v21, %v2429_v22 }
0x1852   :  { %2433 = vrot.lane.b32.xlu1 %v2431_v23, %s13883_s11 }
0x18c4   :  { %v2434_v25 = vpop.permute.xlu1 %2433 }
0x18c5   :  { %v2436_v26 = vadd.f32 %v2434_v25, %v2426_v24 }
0x18c7   :  { %13588 = vtanh.f32 %v2436_v26 }
0x18d1   :  { %v13589_v27 = vpop.eup %13588 }
0x18d2   :  { %2439 = vrot.lane.b32.xlu0 %v13589_v27, %s13895_s12 }
0x1944   :  { %v2440_v28 = vpop.permute.xlu0 %2439 }
0x1945   :  { %v2442_v29 = vmul.f32 %v13587_v21, %v2440_v28 }
0x1947   :  { %2444 = vrot.lane.b32.xlu1 %v2442_v29, %s13883_s11 }
0x19b9   :  { %v2445_v30 = vpop.permute.xlu1 %2444 }
0x19ba   :  { %3049 = vst.msk [vmem:[#allocation2 + $0x1] sm:$0x1] %vm3044_vm2, %v2445_v30  ;;  %11845 = vmatmul.mubr.msk.f32.vlgmr.msra.gmra.mrb[10].mxu0 %vm265_vm1, %v2445_v30 }
0x19bb   :  { %3050 = vst.msk [vmem:[#allocation2 + $0x8] sm:$0x2] %vm3046_vm3, %v2445_v30  ;;  %12929 = vmatpush3.bf16.msra.mxu0 %v14349_v33  ;;  %11866 = vmatprep.mubr.msk.f32.mxu0 %vm13893_vm0, %v13894_v1 }
0x19bc   :  { %12930 = vmatprep.subr.bf16.mxu0 %v13892_v0 }
0x19bf   :  { %12932 = vmatpush3.bf16.msra.mxu0 %v14357_v38 }
0x19c0   :  { %12939 = vmatprep.subr.bf16.mxu0 %v13892_v0 }
0x1a8d   :  { %v2514_v31 = vpop.f32.mrb[10].mxu0 }
0x1a8e   :  { %v13313_v32 = vadd.f32 %v14402_v41, %v2514_v31  ;;  %v11846_v35 = vpop.f32.mrb[11].mxu0 }
0x1a90   :  { %13590 = vtanh.f32 %v13313_v32  ;;  %v10436_v37 = vmul.f32 -1.442695, %v13313_v32 }
0x1a92   :  { %13592 = vpow2.f32 %v10436_v37 }
0x1a9a   :  { %v13591_v36 = vpop.eup %13590 }
0x1a9b   :  { %2528 = vrot.lane.b32.xlu0 %v13591_v36, %s13895_s12 }
0x1a9c   :  { %v13593_v39 = vpop.eup %13592 }
0x1a9d   :  { %v2522_v59 = vadd.f32 1.0, %v13593_v39 }
0x1a9f   :  { %13594 = vrcp.f32 %v2522_v59 }
0x1aa9   :  { %v13595_v34 = vpop.eup %13594 }
0x1aaa   :  { %v2526_v44 = vmul.f32 %v13595_v34, %v2436_v26 }
0x1b0d   :  { %v2529_v40 = vpop.permute.xlu0 %2528 }
0x1b0e   :  { %v2531_v43 = vmul.f32 %v13595_v34, %v2529_v40 }
0x1b10   :  { %2533 = vrot.lane.b32.xlu1 %v2531_v43, %s13883_s11 }
0x1b82   :  { %v2534_v45 = vpop.permute.xlu1 %2533 }
0x1b83   :  { %v2536_v46 = vadd.f32 %v2534_v45, %v2526_v44 }
0x1b85   :  { %13596 = vtanh.f32 %v2536_v46 }
0x1b8f   :  { %v13597_v47 = vpop.eup %13596 }
0x1b90   :  { %2539 = vrot.lane.b32.xlu0 %v13597_v47, %s13895_s12 }
0x1c02   :  { %v2540_v48 = vpop.permute.xlu0 %2539 }
0x1c03   :  { %v2542_v49 = vmul.f32 %v13595_v34, %v2540_v48 }
0x1c05   :  { %2544 = vrot.lane.b32.xlu1 %v2542_v49, %s13883_s11 }
0x1c77   :  { %v2545_v19 = vpop.permute.xlu1 %2544 }
0x1c78   :  { %3052 = vst.msk [vmem:[#allocation2 + $0x2] sm:$0x1] %vm3044_vm2, %v2545_v19  ;;  %11856 = vmatmul.mubr.msk.f32.vlgmr.msra.gmra.mrb[10].mxu1 %vm265_vm1, %v2545_v19 }
0x1c79   :  { %3053 = vst.msk [vmem:[#allocation2 + $0x9] sm:$0x2] %vm3046_vm3, %v2545_v19  ;;  %12935 = vmatpush3.bf16.msra.mxu1 %v14349_v33  ;;  %11877 = vmatprep.mubr.msk.f32.mxu1 %vm13893_vm0, %v13894_v1 }
0x1c7a   :  { %12936 = vmatprep.subr.bf16.mxu1 %v13892_v0 }
0x1c7d   :  { %12938 = vmatpush3.bf16.msra.mxu1 %v14357_v38 }
0x1c7e   :  { %12945 = vmatprep.subr.bf16.mxu1 %v13892_v0 }
0x1d4b   :  { %v2614_v50 = vpop.f32.mrb[10].mxu1 }
0x1d4c   :  { %v13314_v51 = vadd.f32 %v14402_v41, %v2614_v50  ;;  %v11857_v52 = vpop.f32.mrb[11].mxu1 }
0x1d4e   :  { %13598 = vtanh.f32 %v13314_v51  ;;  %v10438_v54 = vmul.f32 -1.442695, %v13314_v51 }
0x1d50   :  { %13600 = vpow2.f32 %v10438_v54 }
0x1d58   :  { %v13599_v53 = vpop.eup %13598 }
0x1d59   :  { %2628 = vrot.lane.b32.xlu0 %v13599_v53, %s13895_s12 }
0x1d5a   :  { %v13601_v55 = vpop.eup %13600 }
0x1d5b   :  { %v2622_v56 = vadd.f32 1.0, %v13601_v55 }
0x1d5d   :  { %13602 = vrcp.f32 %v2622_v56 }
0x1d67   :  { %v13603_v57 = vpop.eup %13602 }
0x1d68   :  { %v2626_v60 = vmul.f32 %v13603_v57, %v2536_v46 }
0x1dcb   :  { %v2629_v14 = vpop.permute.xlu0 %2628 }
0x1dcc   :  { %v2631_v58 = vmul.f32 %v13603_v57, %v2629_v14 }
0x1dce   :  { %2633 = vrot.lane.b32.xlu1 %v2631_v58, %s13883_s11 }
0x1e40   :  { %v2634_v17 = vpop.permute.xlu1 %2633 }
0x1e41   :  { %v2636_v61 = vadd.f32 %v2634_v17, %v2626_v60 }
0x1e43   :  { %13604 = vtanh.f32 %v2636_v61 }
0x1e4d   :  { %v13605_v62 = vpop.eup %13604 }
0x1e4e   :  { %2639 = vrot.lane.b32.xlu0 %v13605_v62, %s13895_s12 }
0x1ec0   :  { %v2640_v63 = vpop.permute.xlu0 %2639 }
0x1ec1   :  { %v2642_v2 = vmul.f32 %v13603_v57, %v2640_v63 }
0x1ec3   :  { %2644 = vrot.lane.b32.xlu1 %v2642_v2, %s13883_s11 }
0x1f35   :  { %v2645_v3 = vpop.permute.xlu1 %2644 }
0x1f36   :  { %3055 = vst.msk [vmem:[#allocation2 + $0x3] sm:$0x1] %vm3044_vm2, %v2645_v3  ;;  %11867 = vmatmul.mubr.msk.f32.vlgmr.msra.gmra.mrb[12].mxu0 %vm265_vm1, %v2645_v3 }
0x1f37   :  { %3056 = vst.msk [vmem:[#allocation2 + $0xa] sm:$0x2] %vm3046_vm3, %v2645_v3  ;;  %12941 = vmatpush3.bf16.msra.mxu0 %v14349_v33  ;;  %11888 = vmatprep.mubr.msk.f32.mxu0 %vm13893_vm0, %v13894_v1 }
0x1f38   :  { %12942 = vmatprep.subr.bf16.mxu0 %v13892_v0 }
0x1f3b   :  { %12944 = vmatpush3.bf16.msra.mxu0 %v14357_v38 }
0x2009   :  { %v2714_v4 = vpop.f32.mrb[12].mxu0 }
0x200a   :  { %v13315_v5 = vadd.f32 %v14402_v41, %v2714_v4  ;;  %v11868_v6 = vpop.f32.mrb[13].mxu0 }
0x200b   :  { %v3074_v6 = vld [vmem:[%s13934_s29] sm:$0xff] }
0x200c   :  { %13606 = vtanh.f32 %v13315_v5  ;;  %v10440_v8 = vmul.f32 -1.442695, %v13315_v5 }
0x200e   :  { %13608 = vpow2.f32 %v10440_v8 }
0x2016   :  { %v13607_v7 = vpop.eup %13606 }
0x2017   :  { %2728 = vrot.lane.b32.xlu0 %v13607_v7, %s13895_s12  ;;  %v3075_v7 = vld [vmem:[%s13934_s29 + $0x8] sm:$0xff] }
0x2018   :  { %v13609_v9 = vpop.eup %13608  ;;  %v12951_v8 = vpack.c.bf16 %v3075_v7, %v3074_v6 }
0x2019   :  { %v2722_v10 = vadd.f32 1.0, %v13609_v9  ;;  %v3076_v9 = vld [vmem:[%s13934_s29 + $0x10] sm:$0xff] }
0x201a   :  { %12952 = vmatprep.subr.bf16.mxu0 %v12951_v8 }
0x201b   :  { %13610 = vrcp.f32 %v2722_v10  ;;  %v3077_v10 = vld [vmem:[%s13934_s29 + $0x18] sm:$0xff]  ;;  %s15313_s29 = sld [smem:[#allocation26_spill]] }
0x2025   :  { %v13611_v11 = vpop.eup %13610 }
0x2026   :  { %v2726_v13 = vmul.f32 %v13611_v11, %v2636_v61 }
0x2089   :  { %v2729_v12 = vpop.permute.xlu0 %2728 }
0x208a   :  { %v2731_v42 = vmul.f32 %v13611_v11, %v2729_v12 }
0x208c   :  { %2733 = vrot.lane.b32.xlu1 %v2731_v42, %s13883_s11 }
0x20fe   :  { %v2734_v15 = vpop.permute.xlu1 %2733 }
0x20ff   :  { %v2736_v16 = vadd.f32 %v2734_v15, %v2726_v13 }
0x2101   :  { %13612 = vtanh.f32 %v2736_v16 }
0x210b   :  { %v13613_v18 = vpop.eup %13612 }
0x210c   :  { %2739 = vrot.lane.b32.xlu0 %v13613_v18, %s13895_s12  ;;  %v3166_v18 = vlaneseq }
0x217e   :  { %v2740_v20 = vpop.permute.xlu0 %2739 }
0x217f   :  { %v2742_v21 = vmul.f32 %v13611_v11, %v2740_v20  ;;  %v12955_v11 = vpack.c.bf16 %v3077_v10, %v3076_v9  ;;  %v14514_v20 = vand.u32 127, %v3166_v18 }
0x2181   :  { %2744 = vrot.lane.b32.xlu1 %v2742_v21, %s13883_s11  ;;  %v14517_v21 = vmul.u32 2, %v14514_v20 }
0x21f3   :  { %v2745_v22 = vpop.permute.xlu1 %2744 }
0x21f4   :  { %3058 = vst.msk [vmem:[#allocation2 + $0x4] sm:$0x1] %vm3044_vm2, %v2745_v22  ;;  %11878 = vmatmul.mubr.msk.f32.vlgmr.msra.gmra.mrb[12].mxu1 %vm265_vm1, %v2745_v22 }
0x21f5   :  { %3059 = vst.msk [vmem:[#allocation2 + $0xb] sm:$0x2] %vm3046_vm3, %v2745_v22  ;;  %12947 = vmatpush3.bf16.msra.mxu1 %v14349_v33  ;;  %11899 = vmatprep.mubr.msk.f32.mxu1 %vm13893_vm0, %v13894_v1  ;;  %v14519_v22 = vshrl.u32 %v3166_v18, 7  ;;  %v3894_v18 = vld [vmem:[%s15311_s21] sm:$0xff] }
0x21f6   :  { %12948 = vmatprep.subr.bf16.mxu1 %v13892_v0 }
0x21f7   :  { %vm3172_vm4 = vcmp.le.s32.totalorder %v14517_v21, %v14519_v22 }
0x21f9   :  { %12950 = vmatpush3.bf16.msra.mxu1 %v14357_v38 }
0x22c7   :  { %v2814_v23 = vpop.f32.mrb[12].mxu1 }
0x22c8   :  { %v13316_v24 = vadd.f32 %v14402_v41, %v2814_v23  ;;  %v11879_v25 = vpop.f32.mrb[13].mxu1  ;;  %v14522_v23 = vadd.s32 1, %v14517_v21 }
0x22c9   :  { %v10486_v25 = vld [vmem:[%s15309_s5 + $0x20] sm:$0xff] }
0x22ca   :  { %13614 = vtanh.f32 %v13316_v24  ;;  %v10442_v27 = vmul.f32 -1.442695, %v13316_v24  ;;  %vm3175_vm5 = vcmp.le.s32.totalorder %v14519_v22, %v14522_v23 }
0x22cb   :  { %vm3177_vm6 = vmand %vm3172_vm4, %vm3175_vm5 }
0x22cc   :  { %13616 = vpow2.f32 %v10442_v27  ;;  %v14529_v24 = vsel %vm3177_vm6, 1.0, %v13894_v1  ;;  %v10488_v27 = vld [vmem:[%s15309_s5 + $0x30] sm:$0xff] }
0x22d4   :  { %v13615_v26 = vpop.eup %13614 }
0x22d5   :  { %2828 = vrot.lane.b32.xlu0 %v13615_v26, %s13895_s12  ;;  %v10487_v26 = vld [vmem:[%s15309_s5 + $0x28] sm:$0xff] }
0x22d6   :  { %v13617_v28 = vpop.eup %13616 }
0x22d7   :  { %v2822_v29 = vadd.f32 1.0, %v13617_v28  ;;  %v12963_v28 = vpack.c.bf16 %v10487_v26, %v10486_v25  ;;  %v3895_v25 = vld [vmem:[%s15311_s21 + $0x8] sm:$0xff] }
0x22d8   :  { %v12999_v26 = vpack.c.bf16 %v3895_v25, %v3894_v18 }
0x22d9   :  { %13618 = vrcp.f32 %v2822_v29  ;;  %v10489_v29 = vld [vmem:[%s15309_s5 + $0x38] sm:$0xff] }
0x22e3   :  { %v13619_v33 = vpop.eup %13618 }
0x22e4   :  { %v2826_v0 = vmul.f32 %v13619_v33, %v2736_v16 }
0x2347   :  { %v2829_v30 = vpop.permute.xlu0 %2828 }
0x2348   :  { %v2831_v31 = vmul.f32 %v13619_v33, %v2829_v30  ;;  %v3168_v30 = vadd.s32 8, %v14519_v22 }
0x234a   :  { %2833 = vrot.lane.b32.xlu1 %v2831_v31, %s13883_s11  ;;  %vm3173_vm8 = vcmp.le.s32.totalorder %v14517_v21, %v3168_v30  ;;  %vm3176_vm9 = vcmp.le.s32.totalorder %v3168_v30, %v14522_v23  ;;  %v10447_v31 = vld [vmem:[%s15310_s17] ss:$0 sm:$0xff] }
0x234b   :  { %vm3178_vm10 = vmand %vm3173_vm8, %vm3176_vm9 }
0x23bc   :  { %v2834_v38 = vpop.permute.xlu1 %2833 }
0x23bd   :  { %v2836_v32 = vadd.f32 %v2834_v38, %v2826_v0 }
0x23bf   :  { %13620 = vtanh.f32 %v2836_v32 }
0x23c9   :  { %v13621_v35 = vpop.eup %13620 }
0x23ca   :  { %2839 = vrot.lane.b32.xlu0 %v13621_v35, %s13895_s12 }
0x243c   :  { %v2840_v36 = vpop.permute.xlu0 %2839 }
0x243d   :  { %v2842_v37 = vmul.f32 %v13619_v33, %v2840_v36  ;;  %v12967_v33 = vpack.c.bf16 %v10489_v29, %v10488_v27  ;;  %v14544_v36 = vsel %vm3178_vm10, 1.0, %v13894_v1  ;;  %v10515_v27 = vld [vmem:[%s15311_s21 + $0x20] sm:$0xff] }
0x243f   :  { %2844 = vrot.lane.b32.xlu1 %v2842_v37, %s13883_s11  ;;  %v10458_v37 = vadd.s32 4294967295, %v14519_v22 }
0x2441   :  { %vm3221_vm11 = vcmp.eq.s32.totalorder %v14514_v20, %v10458_v37 }
0x24b1   :  { %v2845_v39 = vpop.permute.xlu1 %2844 }
0x24b2   :  { %3061 = vst.msk [vmem:[#allocation2 + $0x5] sm:$0x1] %vm3044_vm2, %v2845_v39  ;;  %11889 = vmatmul.mubr.msk.f32.vlgmr.msra.gmra.mrb[14].mxu0 %vm265_vm1, %v2845_v39 }
0x24b3   :  { %3062 = vst.msk [vmem:[#allocation2 + $0xc] sm:$0x2] %vm3046_vm3, %v2845_v39  ;;  %12954 = vmatpush3.bf16.msra.mxu0 %v12951_v8  ;;  %v14551_v39 = vsel %vm3221_vm11, 1.0, %v13894_v1 }
0x24b4   :  { %12956 = vmatprep.subr.bf16.mxu0 %v12955_v11 }
0x24b7   :  { %12958 = vmatpush3.bf16.msra.mxu0 %v12955_v11 }
0x24b8   :  { %12964 = vmatprep.subr.bf16.mxu0 %v12963_v28 }
0x2585   :  { %v2914_v59 = vpop.f32.mrb[14].mxu0 }
0x2586   :  { %v13317_v34 = vadd.f32 %v14402_v41, %v2914_v59  ;;  %v11890_v40 = vpop.f32.mrb[15].mxu0  ;;  %v3450_v59 = vld [vmem:[%s15309_s5] sm:$0xff] }
0x2588   :  { %13622 = vtanh.f32 %v13317_v34  ;;  %v10444_v44 = vmul.f32 -1.442695, %v13317_v34  ;;  %v3451_v34 = vld [vmem:[%s15309_s5 + $0x8] sm:$0xff] }
0x2589   :  { %v12971_v40 = vpack.c.bf16 %v3451_v34, %v3450_v59 }
0x258a   :  { %13624 = vpow2.f32 %v10444_v44  ;;  %v3452_v44 = vld [vmem:[%s15309_s5 + $0x10] sm:$0xff] }
0x2592   :  { %v13623_v43 = vpop.eup %13622 }
0x2593   :  { %2928 = vrot.lane.b32.xlu0 %v13623_v43, %s13895_s12  ;;  %v10459_v43 = vadd.s32 4294967295, %v3168_v30 }
0x2594   :  { %v13625_v45 = vpop.eup %13624 }
0x2595   :  { %v2922_v46 = vadd.f32 1.0, %v13625_v45  ;;  %v3453_v45 = vld [vmem:[%s15309_s5 + $0x18] sm:$0xff]  ;;  %vm3222_vm13 = vcmp.eq.s32.totalorder %v14514_v20, %v10459_v43 }
0x2597   :  { %13626 = vrcp.f32 %v2922_v46  ;;  %v3227_v46 = vadd.s32 1, %v14519_v22 }
0x2599   :  { %vm3229_vm14 = vcmp.eq.s32.totalorder %v14514_v20, %v3227_v46 }
0x25a1   :  { %v13627_v47 = vpop.eup %13626 }
0x25a2   :  { %v2926_v19 = vmul.f32 %v13627_v47, %v2836_v32 }
0x2605   :  { %v2929_v48 = vpop.permute.xlu0 %2928 }
0x2606   :  { %v2931_v49 = vmul.f32 %v13627_v47, %v2929_v48 }
0x2608   :  { %2933 = vrot.lane.b32.xlu1 %v2931_v49, %s13883_s11  ;;  %v12975_v49 = vpack.c.bf16 %v3453_v45, %v3452_v44  ;;  %v3183_v44 = vadd.s32 16, %v14519_v22 }
0x260a   :  { %vm3185_vm0 = vcmp.le.s32.totalorder %v14517_v21, %v3183_v44 }
0x267a   :  { %v2934_v50 = vpop.permute.xlu1 %2933 }
0x267b   :  { %v2936_v51 = vadd.f32 %v2934_v50, %v2926_v19  ;;  %v3228_v19 = vadd.s32 1, %v3168_v30 }
0x267d   :  { %13628 = vtanh.f32 %v2936_v51  ;;  %vm3230_vm15 = vcmp.eq.s32.totalorder %v14514_v20, %v3228_v19  ;;  %v10531_v19 = vld [vmem:[%s15312_s25 + $0x18] sm:$0xff] }
0x2687   :  { %v13629_v52 = vpop.eup %13628 }
0x2688   :  { %2939 = vrot.lane.b32.xlu0 %v13629_v52, %s13895_s12  ;;  %v14569_v52 = vsel %vm3229_vm14, 1.0, %v13894_v1 }
0x26fa   :  { %v2940_v53 = vpop.permute.xlu0 %2939 }
0x26fb   :  { %v2942_v54 = vmul.f32 %v13627_v47, %v2940_v53  ;;  %v14574_v53 = vsel %vm3230_vm15, 1.0, %v13894_v1 }
0x26fd   :  { %2944 = vrot.lane.b32.xlu1 %v2942_v54, %s13883_s11  ;;  %v10496_v54 = vld [vmem:[%s15309_s5 + $0x40] sm:$0xff] }
0x276f   :  { %v2945_v55 = vpop.permute.xlu1 %2944 }
0x2770   :  { %3064 = vst.msk [vmem:[#allocation2 + $0x6] sm:$0x1] %vm3044_vm2, %v2945_v55  ;;  %11900 = vmatmul.mubr.msk.f32.vlgmr.msra.gmra.mrb[14].mxu1 %vm265_vm1, %v2945_v55 }
0x2771   :  { %3065 = vst.msk [vmem:[#allocation2 + $0xd] sm:$0x2] %vm3046_vm3, %v2945_v55  ;;  %11915 = vmatprep.mubr.msk.f32.mxu1 %vm3283_vm7, %v14529_v24  ;;  %v10497_v55 = vld [vmem:[%s15309_s5 + $0x48] sm:$0xff] }
0x2843   :  { %v3014_v56 = vpop.f32.mrb[14].mxu1 }
0x2844   :  { %v13318_v57 = vadd.f32 %v14402_v41, %v3014_v56  ;;  %v11901_v14 = vpop.f32.mrb[15].mxu1  ;;  %v12983_v56 = vpack.c.bf16 %v10497_v55, %v10496_v54 }
0x2845   :  { %v10499_v14 = vld [vmem:[%s15309_s5 + $0x58] sm:$0xff] }
0x2846   :  { %13630 = vtanh.f32 %v13318_v57  ;;  %v10446_v60 = vmul.f32 -1.442695, %v13318_v57  ;;  %v10498_v57 = vld [vmem:[%s15309_s5 + $0x50] sm:$0xff] }
0x2848   :  { %13632 = vpow2.f32 %v10446_v60 }
0x2850   :  { %v13631_v58 = vpop.eup %13630 }
0x2851   :  { %3028 = vrot.lane.b32.xlu0 %v13631_v58, %s13895_s12 }
0x2852   :  { %v13633_v17 = vpop.eup %13632 }
0x2853   :  { %v3022_v61 = vadd.f32 1.0, %v13633_v17  ;;  %v12987_v17 = vpack.c.bf16 %v10499_v14, %v10498_v57  ;;  %v4439_v14 = vld [vmem:[%s15312_s25] sm:$0xff] }
0x2855   :  { %13634 = vrcp.f32 %v3022_v61 }
0x285f   :  { %v13635_v62 = vpop.eup %13634 }
0x2860   :  { %v3026_v41 = vmul.f32 %v13635_v62, %v2936_v51  ;;  %v14565_v51 = vsel %vm3222_vm13, 1.0, %v13894_v1 }
0x28c3   :  { %v3029_v63 = vpop.permute.xlu0 %3028 }
0x28c4   :  { %v3031_v2 = vmul.f32 %v13635_v62, %v3029_v63  ;;  %v10502_v63 = vld [vmem:[#allocation7] ss:$0 sm:$0xff] }
0x28c6   :  { %3033 = vrot.lane.b32.xlu1 %v3031_v2, %s13883_s11  ;;  %v10503_v2 = vld [vmem:[#allocation8] ss:$0 sm:$0xff] }
0x2938   :  { %v3034_v3 = vpop.permute.xlu1 %3033 }
0x2939   :  { %v3036_v4 = vadd.f32 %v3034_v3, %v3026_v41 }
0x293b   :  { %13636 = vtanh.f32 %v3036_v4 }
0x2945   :  { %v13637_v5 = vpop.eup %13636 }
0x2946   :  { %3039 = vrot.lane.b32.xlu0 %v13637_v5, %s13895_s12  ;;  %v10504_v5 = vld [vmem:[#allocation10] ss:$0 sm:$0xff] }
0x29b8   :  { %v3040_v12 = vpop.permute.xlu0 %3039 }
0x29b9   :  { %v3042_v42 = vmul.f32 %v13635_v62, %v3040_v12  ;;  %v10507_v12 = vld [vmem:[%s15311_s21 + $0x10] sm:$0xff] }
0x29bb   :  { %3067 = vrot.lane.b32.xlu1 %v3042_v42, %s13883_s11  ;;  %v10508_v42 = vld [vmem:[%s15311_s21 + $0x18] sm:$0xff]  ;;  %s15315_s11 = sld [smem:[#allocation28_spill]] }
0x2a2d   :  { %v3068_v13 = vpop.permute.xlu1 %3067 }
0x2a2e   :  { %3070 = vst.msk [vmem:[#allocation2 + $0x7] sm:$0x1] %vm3044_vm2, %v3068_v13  ;;  %vm3187_vm2 = vcmp.le.s32.totalorder %v3183_v44, %v14522_v23 }
0x2a2f   :  { %3071 = vst.msk [vmem:[#allocation2 + $0xe] sm:$0x2] %vm3046_vm3, %v3068_v13  ;;  %vm3189_vm3 = vmand %vm3185_vm0, %vm3187_vm2 }
0x2a35   :  { %v3072_v15 = vld [vmem:[#allocation2] sm:$0xff] }
0x2a36   :  { %v3073_v16 = vld [vmem:[#allocation2 + $0x8] sm:$0xff]  ;;  %11910 = vmatprep.mubr.msk.f32.mxu0 %vm265_vm1, %v3072_v15 }
0x2a37   :  { %11911 = vmatmul.mubr.msk.f32.vlgmr.msra.gmra.mrb[16].mxu0 %vm265_vm1, %v3073_v16  ;;  %v12995_v16 = vpack.c.bf16 %v10508_v42, %v10507_v12  ;;  %v10545_v12 = vld [vmem:[%s15312_s25 + $0x28] sm:$0xff] }
0x2a38   :  { %12966 = vmatpush3.bf16.msra.mxu0 %v12963_v28  ;;  %v10516_v28 = vld [vmem:[%s15311_s21 + $0x28] sm:$0xff] }
0x2a39   :  { %12968 = vmatprep.subr.bf16.mxu0 %v12967_v33  ;;  %v13007_v30 = vpack.c.bf16 %v10516_v28, %v10515_v27 }
0x2a3c   :  { %12970 = vmatpush3.bf16.msra.mxu0 %v12967_v33 }
0x2a3d   :  { %12972 = vmatprep.subr.bf16.mxu0 %v12971_v40 }
0x2b0a   :  { %v11912_v0 = vpop.f32.mrb[16].mxu0 }
0x2b0b   :  { %v14541_v38 = vadd.f32 %v11912_v0, %v10447_v31  ;;  %v3157_v32 = vpop.f32.mrb[17].mxu0 }
0x2b0c   :  { %v3158_v35 = vadd.f32 %v10447_v31, %v3157_v32  ;;  %v10519_v32 = vld [vmem:[#allocation11] ss:$0 sm:$0xff] }
0x2b0e   :  { %11913 = vmatprep.subr.mxu1 %v3158_v35 }
0x2b0f   :  { %11914 = vmatpush3.msra.mxu1 %v3158_v35  ;;  %v10520_v35 = vld [vmem:[#allocation13] ss:$0 sm:$0xff] }
0x2b10   :  { %11916 = vmatmul.mubr.msk.f32.vlgmr.msra.gmra.mrb[16].mxu1 %vm3283_vm7, %v14544_v36 }
0x2b11   :  { %11922 = vmatprep.mubr.msk.f32.mxu1 %vm3368_vm12, %v14551_v39 }
0x2be3   :  { %v11917_v47 = vpop.f32.mrb[16].mxu1 }
0x2be4   :  { %v3356_v48 = vpop.f32.mrb[17].mxu1 }
0x2be5   :  { %v12959_v50 = vpack.c.bf16 %v11917_v47, %v3356_v48  ;;  %11933 = vmatprep.mubr.msk.f32.mxu0 %vm265_vm1, %v3356_v48  ;;  %v3184_v48 = vadd.s32 24, %v14519_v22 }
0x2be6   :  { %11934 = vmatmul.mubr.msk.f32.vlgmr.msra.gmra.mrb[18].mxu0 %vm265_vm1, %v11917_v47 }
0x2be7   :  { %12960 = vmatprep.subr.bf16.mxu1 %v12959_v50  ;;  %12974 = vmatpush3.bf16.msra.mxu0 %v12971_v40  ;;  %v10521_v40 = vld [vmem:[#allocation14] ss:$0 sm:$0xff]  ;;  %vm3186_vm4 = vcmp.le.s32.totalorder %v14517_v21, %v3184_v48  ;;  %vm3188_vm5 = vcmp.le.s32.totalorder %v3184_v48, %v14522_v23 }
0x2be8   :  { %12962 = vmatpush3.bf16.msra.mxu1 %v12959_v50  ;;  %12976 = vmatprep.subr.bf16.mxu0 %v12975_v49  ;;  %vm3190_vm6 = vmand %vm3186_vm4, %vm3188_vm5 }
0x2be9   :  { %12980 = vmatprep.subr.bf16.mxu1 %v12959_v50  ;;  %v14628_v57 = vsel %vm3190_vm6, 1.0, %v13894_v1 }
0x2beb   :  { %11923 = vmatmul.mubr.msk.f32.vlgmr.msra.gmra.mrb[18].mxu1 %vm3368_vm12, %v14565_v51  ;;  %12978 = vmatpush3.bf16.msra.mxu0 %v12975_v49  ;;  %v10530_v49 = vld [vmem:[%s15312_s25 + $0x10] sm:$0xff] }
0x2bec   :  { %12982 = vmatpush3.bf16.msra.mxu1 %v12959_v50  ;;  %11951 = vmatprep.mubr.msk.f32.mxu1 %vm3368_vm12, %v14569_v52  ;;  %v13023_v55 = vpack.c.bf16 %v10531_v19, %v10530_v49 }
0x2bed   :  { %12984 = vmatprep.subr.bf16.mxu0 %v12983_v56 }
0x2bef   :  { %11952 = vmatmul.mubr.msk.f32.vlgmr.msra.gmra.mrb[20].mxu1 %vm3368_vm12, %v14574_v53 }
0x2bf0   :  { %11969 = vmatprep.mubr.msk.f32.mxu1 %vm3368_vm12, %v14551_v39 }
0x2cbe   :  { %v11924_v58 = vpop.f32.mrb[18].mxu1 }
0x2cbf   :  { %v3441_v60 = vpop.f32.mrb[19].mxu1 }
0x2cc0   :  { %11944 = vmatprep.mubr.msk.f32.mxu0 %vm265_vm1, %v3441_v60 }
0x2cc1   :  { %11945 = vmatmul.mubr.msk.f32.vlgmr.msra.gmra.mrb[18].mxu0 %vm265_vm1, %v11924_v58  ;;  %v4440_v58 = vld [vmem:[%s15312_s25 + $0x8] sm:$0xff] }
0x2cc2   :  { %12986 = vmatpush3.bf16.msra.mxu0 %v12983_v56  ;;  %v11953_v61 = vpop.f32.mrb[20].mxu1  ;;  %v14621_v56 = vsel %vm3189_vm3, 1.0, %v13894_v1  ;;  %v13027_v60 = vpack.c.bf16 %v4440_v58, %v4439_v14 }
0x2cc3   :  { %12988 = vmatprep.subr.bf16.mxu0 %v12987_v17  ;;  %v3693_v62 = vpop.f32.mrb[21].mxu1 }
0x2cc4   :  { %11962 = vmatprep.mubr.msk.f32.mxu0 %vm265_vm1, %v3693_v62 }
0x2cc6   :  { %12990 = vmatpush3.bf16.msra.mxu0 %v12987_v17 }
0x2cc9   :  { %11963 = vmatmul.mubr.msk.f32.vlgmr.msra.gmra.mrb[18].mxu0 %vm265_vm1, %v11953_v61 }
0x2cca   :  { %12004 = vmatprep.mubr.msk.f32.mxu0 %vm3368_vm12, %v14529_v24 }
0x2d9c   :  { %v11964_v41 = vpop.f32.mrb[18].mxu0 }
0x2d9d   :  { %v3797_v3 = vadd.f32 %v11964_v41, %v10502_v63  ;;  %v3779_v4 = vpop.f32.mrb[19].mxu0 }
0x2d9e   :  { %v3796_v6 = vadd.f32 %v10502_v63, %v3779_v4  ;;  %v10464_v63 = vadd.s32 4294967295, %v3183_v44  ;;  %v10465_v4 = vadd.s32 4294967295, %v3184_v48 }
0x2d9f   :  { %v3805_v7 = vmul.f32 %v10503_v2, %v3797_v3 }
0x2da0   :  { %v3804_v8 = vmul.f32 %v10503_v2, %v3796_v6  ;;  %vm3237_vm8 = vcmp.eq.s32.totalorder %v14514_v20, %v10464_v63  ;;  %vm3238_vm9 = vcmp.eq.s32.totalorder %v14514_v20, %v10465_v4  ;;  %v3243_v6 = vadd.s32 1, %v3183_v44 }
0x2da1   :  { %v3813_v9 = vadd.f32 %v10504_v5, %v3805_v7  ;;  %v14648_v7 = vsel %vm3238_vm9, 1.0, %v13894_v1 }
0x2da2   :  { %v3812_v10 = vadd.f32 %v10504_v5, %v3804_v8  ;;  %v14640_v5 = vsel %vm3237_vm8, 1.0, %v13894_v1  ;;  %v3244_v8 = vadd.s32 1, %v3184_v48  ;;  %vm3245_vm10 = vcmp.eq.s32.totalorder %v14514_v20, %v3243_v6 }
0x2da3   :  { %v3815_v11 = vmax.f32 %v3813_v9, 0.0  ;;  %v14656_v9 = vsel %vm3245_vm10, 1.0, %v13894_v1 }
0x2da4   :  { %v3814_v13 = vmax.f32 %v3812_v10, 0.0  ;;  %vm3246_vm11 = vcmp.eq.s32.totalorder %v14514_v20, %v3244_v8 }
0x2da5   :  { %v14664_v10 = vsel %vm3246_vm11, 1.0, %v13894_v1  ;;  %vm5502_vm11 = vcmask 523264  }
0x2da6   :  { %v12991_v15 = vpack.c.bf16 %v3815_v11, %v3814_v13 }
0x2da8   :  { %12992 = vmatprep.subr.bf16.mxu1 %v12991_v15 }
0x2da9   :  { %12994 = vmatpush3.bf16.msra.mxu1 %v12991_v15 }
0x2daa   :  { %12996 = vmatprep.subr.bf16.mxu1 %v12995_v16 }
0x2dac   :  { %11970 = vmatmul.mubr.msk.f32.vlgmr.msra.gmra.mrb[22].mxu1 %vm3368_vm12, %v14565_v51 }
0x2dad   :  { %12998 = vmatpush3.bf16.msra.mxu1 %v12995_v16  ;;  %11976 = vmatprep.mubr.msk.f32.mxu1 %vm3368_vm12, %v3814_v13 }
0x2dae   :  { %13000 = vmatprep.subr.bf16.mxu1 %v12999_v26 }
0x2db0   :  { %11977 = vmatmul.mubr.msk.f32.vlgmr.msra.gmra.mrb[24].mxu1 %vm3368_vm12, %v3815_v11  ;;  %v10544_v11 = vld [vmem:[%s15312_s25 + $0x20] sm:$0xff] }
0x2db1   :  { %13002 = vmatpush3.bf16.msra.mxu1 %v12999_v26  ;;  %v13039_v42 = vpack.c.bf16 %v10545_v12, %v10544_v11  ;;  %v10575_v12 = vld [vmem:[%s15316_s23] ss:$0 sm:$0xff] }
0x2db2   :  { %13004 = vmatprep.subr.bf16.mxu1 %v12991_v15 }
0x2e7f   :  { %v11971_v29 = vpop.f32.mrb[22].mxu1 }
0x2e80   :  { %v3885_v33 = vpop.f32.mrb[23].mxu1 }
0x2e81   :  { %11983 = vmatprep.mubr.msk.f32.mxu1 %vm3368_vm12, %v3885_v33  ;;  %v10551_v33 = vld [vmem:[%s15313_s29] ss:$0 sm:$0xff] }
0x2e82   :  { %11984 = vmatmul.mubr.msk.f32.vlgmr.msra.gmra.mrb[24].mxu1 %vm3368_vm12, %v11971_v29  ;;  %v10550_v29 = vld [vmem:[#allocation16] ss:$0 sm:$0xff] }
0x2e83   :  { %13006 = vmatpush3.bf16.msra.mxu1 %v12991_v15  ;;  %11990 = vmatprep.mubr.msk.f32.mxu1 %vm3368_vm12, %v14569_v52 }
0x2e84   :  { %13008 = vmatprep.subr.bf16.mxu1 %v13007_v30 }
0x2e86   :  { %11991 = vmatmul.mubr.msk.f32.vlgmr.msra.gmra.mrb[26].mxu1 %vm3368_vm12, %v14574_v53 }
0x2e87   :  { %13010 = vmatpush3.bf16.msra.mxu1 %v13007_v30 }
0x2f59   :  { %v11992_v31 = vpop.f32.mrb[26].mxu1 }
0x2f5a   :  { %v4127_v0 = vpop.f32.mrb[27].mxu1 }
0x2f5b   :  { %11997 = vmatprep.mubr.msk.f32.mxu1 %vm3368_vm12, %v4127_v0 }
0x2f5c   :  { %11998 = vmatmul.mubr.msk.f32.vlgmr.msra.gmra.mrb[24].mxu1 %vm3368_vm12, %v11992_v31 }
0x2f5d   :  { %12018 = vmatprep.mubr.msk.f32.mxu1 %vm265_vm1, %v14551_v39 }
0x302f   :  { %v11999_v37 = vpop.f32.mrb[24].mxu1 }
0x3030   :  { %v4229_v59 = vadd.f32 %v11999_v37, %v10519_v32  ;;  %v4211_v34 = vpop.f32.mrb[25].mxu1 }
0x3031   :  { %v4228_v43 = vadd.f32 %v10519_v32, %v4211_v34  ;;  %v10552_v32 = vld [vmem:[%s15314_s4] ss:$0 sm:$0xff] }
0x3032   :  { %v4237_v45 = vmul.f32 %v10520_v35, %v4229_v59 }
0x3033   :  { %v4236_v46 = vmul.f32 %v10520_v35, %v4228_v43 }
0x3034   :  { %v4245_v47 = vadd.f32 %v10521_v40, %v4237_v45 }
0x3035   :  { %v4244_v50 = vadd.f32 %v10521_v40, %v4236_v46 }
0x3037   :  { %v13011_v54 = vpack.c.bf16 %v4245_v47, %v4244_v50 }
0x3039   :  { %13012 = vmatprep.subr.bf16.mxu0 %v13011_v54 }
0x303a   :  { %13014 = vmatpush3.bf16.msra.mxu0 %v13011_v54 }
0x303b   :  { %13024 = vmatprep.subr.bf16.mxu0 %v13023_v55 }
0x303d   :  { %12005 = vmatmul.mubr.msk.f32.vlgmr.msra.gmra.mrb[20].mxu0 %vm3368_vm12, %v14544_v36 }
0x303e   :  { %12007 = vmatprep.mubr.msk.f32.mxu0 %vm3368_vm12, %v14621_v56  ;;  %13026 = vmatpush3.bf16.msra.mxu0 %v13023_v55 }
0x303f   :  { %13028 = vmatprep.subr.bf16.mxu0 %v13027_v60 }
0x3041   :  { %12008 = vmatmul.mubr.msk.f32.gmra.mrb[22].mxu0 %vm3368_vm12, %v14628_v57 }
0x3110   :  { %v12006_v17 = vpop.f32.mrb[20].mxu0 }
0x3111   :  { %v4322_v61 = vpop.f32.mrb[21].mxu0 }
0x3112   :  { %v13015_v62 = vpack.c.bf16 %v12006_v17, %v4322_v61  ;;  %12028 = vmatprep.mubr.msk.f32.mxu0 %vm3368_vm12, %v4322_v61  ;;  %v4959_v61 = vld [vmem:[%s15315_s11] sm:$0xff] }
0x3113   :  { %12029 = vmatmul.mubr.msk.f32.vlgmr.msra.gmra.mrb[24].mxu0 %vm3368_vm12, %v12006_v17  ;;  %v10557_v17 = vld [vmem:[%s15315_s11 + $0x8] sm:$0xff] }
0x3114   :  { %v12009_v2 = vpop.f32.mrb[22].mxu0  ;;  %13016 = vmatprep.subr.bf16.mxu1 %v13015_v62  ;;  %13030 = vmatpush3.bf16.msra.mxu0 %v13027_v60 }
0x3115   :  { %v4332_v41 = vpop.f32.mrb[23].mxu0  ;;  %13018 = vmatpush3.bf16.msra.mxu1 %v13015_v62  ;;  %13040 = vmatprep.subr.bf16.mxu0 %v13039_v42 }
0x3116   :  { %v13019_v3 = vpack.c.bf16 %v12009_v2, %v4332_v41  ;;  %12031 = vmatprep.mubr.msk.f32.mxu0 %vm3368_vm12, %v4332_v41 }
0x3117   :  { %12032 = vmatmul.mubr.msk.f32.gmra.mrb[26].mxu0 %vm3368_vm12, %v12009_v2 }
0x3118   :  { %13020 = vmatprep.subr.bf16.mxu1 %v13019_v3 }
0x3119   :  { %13022 = vmatpush3.bf16.msra.mxu1 %v13019_v3 }
0x311a   :  { %13032 = vmatprep.subr.bf16.mxu1 %v13015_v62 }
0x311c   :  { %12019 = vmatmul.mubr.msk.f32.vlgmr.msra.gmra.mrb[28].mxu1 %vm265_vm1, %v14565_v51 }
0x311d   :  { %13034 = vmatpush3.bf16.msra.mxu1 %v13015_v62  ;;  %12021 = vmatprep.mubr.msk.f32.mxu1 %vm265_vm1, %v14640_v5  ;;  %v10570_v62 = vld [vmem:[%s15315_s11 + $0x10] sm:$0xff] }
0x311e   :  { %13036 = vmatprep.subr.bf16.mxu1 %v13019_v3 }
0x3120   :  { %12022 = vmatmul.mubr.msk.f32.gmra.mrb[30].mxu1 %vm265_vm1, %v14648_v7 }
0x3121   :  { %13038 = vmatpush3.bf16.msra.mxu1 %v13019_v3  ;;  %12052 = vmatprep.mubr.msk.f32.mxu1 %vm265_vm1, %v14569_v52 }
0x3124   :  { %12053 = vmatmul.mubr.msk.f32.vlgmr.msra.gmra.mrb[32].mxu1 %vm265_vm1, %v14574_v53 }
0x3125   :  { %12055 = vmatprep.mubr.msk.f32.mxu1 %vm265_vm1, %v14656_v9 }
0x3128   :  { %12056 = vmatmul.mubr.msk.f32.gmra.mrb[34].mxu1 %vm265_vm1, %v14664_v10 }
0x3129   :  { %12076 = vmatprep.mubr.msk.f32.mxu1 %vm265_vm1, %v14551_v39 }
0x31ef   :  { %v12020_v13 = vpop.f32.mrb[28].mxu1 }
0x31f0   :  { %v4420_v15 = vpop.f32.mrb[29].mxu1 }
0x31f1   :  { %12038 = vmatprep.mubr.msk.f32.mxu0 %vm3368_vm12, %v4420_v15 }
0x31f2   :  { %12039 = vmatmul.mubr.msk.f32.vlgmr.msra.gmra.mrb[24].mxu0 %vm3368_vm12, %v12020_v13 }
0x31f3   :  { %v12023_v16 = vpop.f32.mrb[30].mxu1  ;;  %13042 = vmatpush3.bf16.msra.mxu0 %v13039_v42  ;;  %v10576_v42 = vld [vmem:[%s15317_s20] ss:$0 sm:$0xff] }
0x31f4   :  { %v4430_v18 = vpop.f32.mrb[31].mxu1 }
0x31f5   :  { %12041 = vmatprep.mubr.msk.f32.mxu0 %vm3368_vm12, %v4430_v18  ;;  %v10577_v18 = vld [vmem:[%s15318_s26] ss:$0 sm:$0xff] }
0x31f6   :  { %12042 = vmatmul.mubr.msk.f32.gmra.mrb[26].mxu0 %vm3368_vm12, %v12023_v16 }
0x31f7   :  { %v12054_v25 = vpop.f32.mrb[32].mxu1 }
0x31f8   :  { %v4714_v26 = vpop.f32.mrb[33].mxu1 }
0x31f9   :  { %12062 = vmatprep.mubr.msk.f32.mxu0 %vm3368_vm12, %v4714_v26 }
0x31fa   :  { %12063 = vmatmul.mubr.msk.f32.vlgmr.msra.gmra.mrb[24].mxu0 %vm3368_vm12, %v12054_v25 }
0x31fb   :  { %v12057_v27 = vpop.f32.mrb[34].mxu1 }
0x31fc   :  { %v4724_v28 = vpop.f32.mrb[35].mxu1 }
0x31fd   :  { %12065 = vmatprep.mubr.msk.f32.mxu0 %vm3368_vm12, %v4724_v28 }
0x31fe   :  { %12066 = vmatmul.mubr.msk.f32.gmra.mrb[26].mxu0 %vm3368_vm12, %v12057_v27 }
0x31ff   :  { %12106 = vmatprep.mubr.msk.f32.mxu0 %vm265_vm1, %v14569_v52 }
0x32cd   :  { %v12064_v30 = vpop.f32.mrb[24].mxu0 }
0x32ce   :  { %v4844_v31 = vadd.f32 %v12064_v30, %v10550_v29  ;;  %v4814_v0 = vpop.f32.mrb[25].mxu0 }
0x32cf   :  { %v4843_v35 = vadd.f32 %v10550_v29, %v4814_v0 }
0x32d0   :  { %v4854_v37 = vmul.f32 %v10551_v33, %v4844_v31 }
0x32d1   :  { %v4853_v59 = vmul.f32 %v10551_v33, %v4843_v35  ;;  %v12067_v34 = vpop.f32.mrb[26].mxu0 }
0x32d2   :  { %v4864_v40 = vadd.f32 %v10552_v32, %v4854_v37  ;;  %v4846_v43 = vadd.f32 %v12067_v34, %v10550_v29  ;;  %v4824_v44 = vpop.f32.mrb[27].mxu0 }
0x32d3   :  { %v4863_v45 = vadd.f32 %v10552_v32, %v4853_v59  ;;  %v4845_v46 = vadd.f32 %v10550_v29, %v4824_v44  ;;  %v14720_v44 = vadd.s32 40, %v14519_v22 }
0x32d4   :  { %v4868_v47 = vmax.f32 %v4864_v40, 0.0  ;;  %v4856_v48 = vmul.f32 %v10551_v33, %v4846_v43  ;;  %v14717_v40 = vadd.s32 32, %v14519_v22 }
0x32d5   :  { %v4867_v49 = vmax.f32 %v4863_v45, 0.0  ;;  %v4855_v19 = vmul.f32 %v10551_v33, %v4845_v46  ;;  %v14727_v45 = vadd.s32 48, %v14519_v22  ;;  %vm3200_vm0 = vcmp.le.s32.totalorder %v14517_v21, %v14720_v44 }
0x32d6   :  { %v4866_v50 = vadd.f32 %v10552_v32, %v4856_v48  ;;  %vm3199_vm13 = vcmp.le.s32.totalorder %v14517_v21, %v14717_v40  ;;  %vm3203_vm14 = vcmp.le.s32.totalorder %v14717_v40, %v14522_v23  ;;  %vm3204_vm2 = vcmp.le.s32.totalorder %v14720_v44, %v14522_v23 }
0x32d7   :  { %v13043_v54 = vpack.c.bf16 %v4868_v47, %v4867_v49  ;;  %v4865_v55 = vadd.f32 %v10552_v32, %v4855_v19  ;;  %vm3207_vm15 = vmand %vm3199_vm13, %vm3203_vm14  ;;  %v14734_v46 = vadd.s32 56, %v14519_v22  ;;  %vm3201_vm3 = vcmp.le.s32.totalorder %v14517_v21, %v14727_v45 }
0x32d8   :  { %v4870_v14 = vmax.f32 %v4866_v50, 0.0  ;;  %vm3205_vm4 = vcmp.le.s32.totalorder %v14727_v45, %v14522_v23  ;;  %vm3208_vm5 = vmand %vm3200_vm0, %vm3204_vm2 }
0x32d9   :  { %v4869_v58 = vmax.f32 %v4865_v55, 0.0  ;;  %13044 = vmatprep.subr.bf16.mxu1 %v13043_v54  ;;  %13052 = vmatprep.subr.bf16.mxu0 %v13043_v54  ;;  %vm3209_vm6 = vmand %vm3201_vm3, %vm3205_vm4  ;;  %vm3202_vm8 = vcmp.le.s32.totalorder %v14517_v21, %v14734_v46  ;;  %vm3206_vm9 = vcmp.le.s32.totalorder %v14734_v46, %v14522_v23  ;;  %v14756_v22 = vsel %vm3208_vm5, 1.0, %v13894_v1 }
0x32da   :  { %13046 = vmatpush3.bf16.msra.mxu1 %v13043_v54  ;;  %13054 = vmatpush3.bf16.msra.mxu0 %v13043_v54  ;;  %v14759_v48 = vsel %vm3209_vm6, 1.0, %v13894_v1  ;;  %vm3210_vm10 = vmand %vm3202_vm8, %vm3206_vm9  ;;  %vm6339_vm6 = vcmask 1043456   ;;  %vm6314_vm8 = vcmask 31744  }
0x32db   :  { %v13047_v60 = vpack.c.bf16 %v4870_v14, %v4869_v58  ;;  %v14766_v21 = vsel %vm3210_vm10, 1.0, %v13894_v1 }
0x32dd   :  { %13048 = vmatprep.subr.bf16.mxu1 %v13047_v60  ;;  %13056 = vmatprep.subr.bf16.mxu0 %v13047_v60 }
0x32de   :  { %13050 = vmatpush3.bf16.msra.mxu1 %v13047_v60  ;;  %13058 = vmatpush3.bf16.msra.mxu0 %v13047_v60 }
0x32df   :  { %12082 = vmatprep.subr.mxu1 %v10557_v17 }
0x32e1   :  { %12077 = vmatmul.mubr.msk.f32.vlgmr.msra.gmra.mrb[36].mxu1 %vm265_vm1, %v14565_v51  ;;  %12107 = vmatmul.mubr.msk.f32.vlgmr.msra.gmra.mrb[28].mxu0 %vm265_vm1, %v14574_v53 }
0x32e2   :  { %12079 = vmatprep.mubr.msk.f32.mxu1 %vm265_vm1, %v14640_v5  ;;  %12083 = vmatpush3.msra.mxu1 %v10557_v17 }
0x32e3   :  { %12109 = vmatprep.mubr.msk.f32.mxu0 %vm265_vm1, %v14656_v9  ;;  %12090 = vmatprep.subr.mxu1 %v4959_v61 }
0x32e5   :  { %12080 = vmatmul.mubr.msk.f32.gmra.mrb[38].mxu1 %vm265_vm1, %v14648_v7  ;;  %12110 = vmatmul.mubr.msk.f32.gmra.mrb[30].mxu0 %vm265_vm1, %v14664_v10 }
0x32e6   :  { %12084 = vmatprep.mubr.msk.f32.mxu1 %vm3283_vm7, %v4867_v49  ;;  %12128 = vmatprep.mubr.msk.f32.mxu0 %vm265_vm1, %v14529_v24 }
0x32e9   :  { %12085 = vmatmul.mubr.msk.f32.vlgmr.msra.gmra.mrb[40].mxu1 %vm3283_vm7, %v4868_v47  ;;  %v14745_v47 = vsel %vm3207_vm15, 1.0, %v13894_v1 }
0x32ea   :  { %12087 = vmatprep.mubr.msk.f32.mxu1 %vm3283_vm7, %v4869_v58  ;;  %12091 = vmatpush3.msra.mxu1 %v4959_v61 }
0x32eb   :  { %12112 = vmatprep.subr.mxu1 %v10570_v62 }
0x32ed   :  { %12088 = vmatmul.mubr.msk.f32.gmra.mrb[42].mxu1 %vm3283_vm7, %v4870_v14 }
0x33b4   :  { %v12078_v63 = vpop.f32.mrb[36].mxu1  ;;  %v12108_v2 = vpop.f32.mrb[28].mxu0 }
0x33b5   :  { %v4940_v41 = vpop.f32.mrb[37].mxu1  ;;  %v5222_v3 = vpop.f32.mrb[29].mxu0 }
0x33b6   :  { %12092 = vmatprep.mubr.msk.f32.mxu1 %vm3283_vm7, %v4940_v41  ;;  %v10471_v41 = vadd.s32 4294967295, %v14720_v44 }
0x33b7   :  { %12093 = vmatmul.mubr.msk.f32.vlgmr.msra.gmra.mrb[40].mxu1 %vm3283_vm7, %v12078_v63  ;;  %v10594_v63 = vld [vmem:[%s15319_s28 + $0x8] sm:$0xff] }
0x33b8   :  { %v12081_v4 = vpop.f32.mrb[38].mxu1  ;;  %12113 = vmatpush3.msra.mxu1 %v10570_v62  ;;  %v12111_v6 = vpop.f32.mrb[30].mxu0  ;;  %vm3256_vm14 = vcmp.eq.s32.totalorder %v14514_v20, %v10471_v41 }
0x33b9   :  { %v4950_v8 = vpop.f32.mrb[39].mxu1  ;;  %v5232_v11 = vpop.f32.mrb[31].mxu0 }
0x33ba   :  { %12095 = vmatprep.mubr.msk.f32.mxu1 %vm3283_vm7, %v4950_v8  ;;  %v14792_v8 = vsel %vm3256_vm14, 1.0, %v13894_v1 }
0x33bb   :  { %12096 = vmatmul.mubr.msk.f32.gmra.mrb[42].mxu1 %vm3283_vm7, %v12081_v4 }
0x33bc   :  { %12114 = vmatprep.mubr.msk.f32.mxu1 %vm3283_vm7, %v5222_v3  ;;  %v10472_v3 = vadd.s32 4294967295, %v14727_v45 }
0x33be   :  { %vm3257_vm15 = vcmp.eq.s32.totalorder %v14514_v20, %v10472_v3 }
0x33bf   :  { %12115 = vmatmul.mubr.msk.f32.vlgmr.msra.gmra.mrb[40].mxu1 %vm3283_vm7, %v12108_v2  ;;  %v10470_v2 = vadd.s32 4294967295, %v14717_v40 }
0x33c0   :  { %12117 = vmatprep.mubr.msk.f32.mxu1 %vm3283_vm7, %v5232_v11  ;;  %v14795_v11 = vsel %vm3257_vm15, 1.0, %v13894_v1 }
0x33c1   :  { %vm3255_vm13 = vcmp.eq.s32.totalorder %v14514_v20, %v10470_v2  ;;  %v10629_v2 = vld [vmem:[%s15322_s15] ss:$0 sm:$0xff] }
0x33c2   :  { %v14782_v4 = vsel %vm3255_vm13, 1.0, %v13894_v1 }
0x33c3   :  { %12118 = vmatmul.mubr.msk.f32.gmra.mrb[42].mxu1 %vm3283_vm7, %v12111_v6  ;;  %v10473_v6 = vadd.s32 4294967295, %v14734_v46 }
0x33c5   :  { %vm3258_vm0 = vcmp.eq.s32.totalorder %v14514_v20, %v10473_v6  ;;  %v10630_v6 = vld [vmem:[%s15323_s2] ss:$0 sm:$0xff] }
0x3492   :  { %v12116_v13 = vpop.f32.mrb[40].mxu1 }
0x3493   :  { %v5351_v15 = vadd.f32 %v12116_v13, %v10575_v12  ;;  %v5321_v16 = vpop.f32.mrb[41].mxu1  ;;  %v3268_v13 = vadd.s32 1, %v14720_v44 }
0x3494   :  { %v5350_v25 = vadd.f32 %v10575_v12, %v5321_v16 }
0x3495   :  { %v5361_v26 = vmul.f32 %v10576_v42, %v5351_v15  ;;  %v3269_v15 = vadd.s32 1, %v14727_v45  ;;  %vm3272_vm3 = vcmp.eq.s32.totalorder %v14514_v20, %v3268_v13 }
0x3496   :  { %v5360_v27 = vmul.f32 %v10576_v42, %v5350_v25  ;;  %v12119_v28 = vpop.f32.mrb[42].mxu1  ;;  %v14836_v25 = vsel %vm3272_vm3, 1.0, %v13894_v1 }
0x3497   :  { %v5371_v29 = vadd.f32 %v10577_v18, %v5361_v26  ;;  %v5353_v33 = vadd.f32 %v12119_v28, %v10575_v12  ;;  %v5331_v30 = vpop.f32.mrb[43].mxu1  ;;  %vm3273_vm4 = vcmp.eq.s32.totalorder %v14514_v20, %v3269_v15  ;;  %v5628_v28 = vld [vmem:[%s15319_s28] sm:$0xff] }
0x3498   :  { %v5370_v31 = vadd.f32 %v10577_v18, %v5360_v27  ;;  %v5352_v0 = vadd.f32 %v10575_v12, %v5331_v30  ;;  %v14803_v12 = vsel %vm3258_vm0, 1.0, %v13894_v1  ;;  %v14839_v26 = vsel %vm3273_vm4, 1.0, %v13894_v1  ;;  %12182 = vmatprep.subr.mxu1 %v5628_v28 }
0x3499   :  { %v5363_v32 = vmul.f32 %v10576_v42, %v5353_v33  ;;  %12183 = vmatpush3.msra.mxu1 %v5628_v28 }
0x349a   :  { %v5362_v35 = vmul.f32 %v10576_v42, %v5352_v0  ;;  %v13059_v37 = vpack.c.bf16 %v5371_v29, %v5370_v31  ;;  %v3267_v42 = vadd.s32 1, %v14717_v40  ;;  %v10619_v29 = vld [vmem:[%s15319_s28 + $0x10] sm:$0xff] }
0x349b   :  { %v5373_v59 = vadd.f32 %v10577_v18, %v5363_v32  ;;  %12224 = vmatprep.subr.mxu1 %v10619_v29 }
0x349c   :  { %v5372_v34 = vadd.f32 %v10577_v18, %v5362_v35  ;;  %13060 = vmatprep.subr.bf16.mxu0 %v13059_v37  ;;  %vm3271_vm2 = vcmp.eq.s32.totalorder %v14514_v20, %v3267_v42  ;;  %v3270_v18 = vadd.s32 1, %v14734_v46 }
0x349d   :  { %13062 = vmatpush3.bf16.msra.mxu0 %v13059_v37  ;;  %v14826_v16 = vsel %vm3271_vm2, 1.0, %v13894_v1 }
0x349e   :  { %v13063_v43 = vpack.c.bf16 %v5373_v59, %v5372_v34  ;;  %vm3274_vm5 = vcmp.eq.s32.totalorder %v14514_v20, %v3270_v18 }
0x349f   :  { %v14847_v27 = vsel %vm3274_vm5, 1.0, %v13894_v1 }
0x34a0   :  { %13064 = vmatprep.subr.bf16.mxu0 %v13063_v43 }
0x34a1   :  { %13066 = vmatpush3.bf16.msra.mxu0 %v13063_v43 }
0x34a4   :  { %12129 = vmatmul.mubr.msk.f32.vlgmr.msra.gmra.mrb[32].mxu0 %vm265_vm1, %v14544_v36 }
0x34a5   :  { %12131 = vmatprep.mubr.msk.f32.mxu0 %vm265_vm1, %v14621_v56 }
0x34a8   :  { %12132 = vmatmul.mubr.msk.f32.gmra.mrb[34].mxu0 %vm265_vm1, %v14628_v57 }
0x34a9   :  { %12134 = vmatprep.mubr.msk.f32.mxu0 %vm265_vm1, %v14745_v47 }
0x34ac   :  { %12135 = vmatmul.mubr.msk.f32.gmra.mrb[36].mxu0 %vm265_vm1, %v14756_v22 }
0x34ad   :  { %12137 = vmatprep.mubr.msk.f32.mxu0 %vm265_vm1, %v14759_v48 }
0x34b0   :  { %12138 = vmatmul.mubr.msk.f32.gmra.mrb[38].mxu0 %vm265_vm1, %v14766_v21 }
0x34b1   :  { %12156 = vmatprep.mubr.msk.f32.mxu0 %vm5502_vm11, %v14551_v39 }
0x3577   :  { %v12130_v23 = vpop.f32.mrb[32].mxu0 }
0x3578   :  { %v5460_v49 = vpop.f32.mrb[33].mxu0 }
0x3579   :  { %v13067_v19 = vpack.c.bf16 %v12130_v23, %v5460_v49 }
0x357b   :  { %v12133_v50 = vpop.f32.mrb[34].mxu0  ;;  %13068 = vmatprep.subr.bf16.mxu0 %v13067_v19 }
0x357c   :  { %v5470_v54 = vpop.f32.mrb[35].mxu0  ;;  %13070 = vmatpush3.bf16.msra.mxu0 %v13067_v19 }
0x357d   :  { %v13071_v55 = vpack.c.bf16 %v12133_v50, %v5470_v54 }
0x357f   :  { %v12136_v14 = vpop.f32.mrb[36].mxu0  ;;  %13072 = vmatprep.subr.bf16.mxu0 %v13071_v55 }
0x3580   :  { %v5480_v58 = vpop.f32.mrb[37].mxu0  ;;  %13074 = vmatpush3.bf16.msra.mxu0 %v13071_v55 }
0x3581   :  { %v13075_v60 = vpack.c.bf16 %v12136_v14, %v5480_v58 }
0x3583   :  { %v12139_v17 = vpop.f32.mrb[38].mxu0  ;;  %13076 = vmatprep.subr.bf16.mxu0 %v13075_v60 }
0x3584   :  { %v5490_v61 = vpop.f32.mrb[39].mxu0  ;;  %13078 = vmatpush3.bf16.msra.mxu0 %v13075_v60 }
0x3585   :  { %v13079_v62 = vpack.c.bf16 %v12139_v17, %v5490_v61 }
0x3587   :  { %13080 = vmatprep.subr.bf16.mxu0 %v13079_v62 }
0x3588   :  { %13082 = vmatpush3.bf16.msra.mxu0 %v13079_v62 }
0x3589   :  { %12168 = vmatprep.subr.mxu0 %v10594_v63 }
0x358b   :  { %12157 = vmatmul.mubr.msk.f32.vlgmr.msra.gmra.mrb[40].mxu0 %vm5502_vm11, %v14565_v51 }
0x358c   :  { %12169 = vmatpush3.msra.mxu0 %v10594_v63  ;;  %12159 = vmatprep.mubr.msk.f32.mxu0 %vm5502_vm11, %v14640_v5 }
0x358d   :  { %13084 = vmatprep.subr.bf16.mxu0 %v13067_v19 }
0x358f   :  { %12160 = vmatmul.mubr.msk.f32.gmra.mrb[42].mxu0 %vm5502_vm11, %v14648_v7 }
0x3590   :  { %12162 = vmatprep.mubr.msk.f32.mxu0 %vm5502_vm11, %v14782_v4 }
0x3593   :  { %12163 = vmatmul.mubr.msk.f32.gmra.mrb[44].mxu0 %vm5502_vm11, %v14792_v8 }
0x3594   :  { %12165 = vmatprep.mubr.msk.f32.mxu0 %vm5502_vm11, %v14795_v11 }
0x3597   :  { %12166 = vmatmul.mubr.msk.f32.gmra.mrb[46].mxu0 %vm5502_vm11, %v14803_v12 }
0x3598   :  { %12170 = vmatprep.mubr.msk.f32.mxu0 %vm3283_vm7, %v5460_v49 }
0x359b   :  { %12171 = vmatmul.mubr.msk.f32.vlgmr.msra.gmra.mrb[48].mxu0 %vm3283_vm7, %v12130_v23 }
0x359c   :  { %13086 = vmatpush3.bf16.msra.mxu0 %v13067_v19  ;;  %12173 = vmatprep.mubr.msk.f32.mxu0 %vm3283_vm7, %v5470_v54 }
0x359d   :  { %13088 = vmatprep.subr.bf16.mxu0 %v13071_v55 }
0x359f   :  { %12174 = vmatmul.mubr.msk.f32.gmra.mrb[50].mxu0 %vm3283_vm7, %v12133_v50 }
0x35a0   :  { %13090 = vmatpush3.bf16.msra.mxu0 %v13071_v55  ;;  %12176 = vmatprep.mubr.msk.f32.mxu0 %vm3283_vm7, %v5480_v58 }
0x35a1   :  { %13092 = vmatprep.subr.bf16.mxu0 %v13075_v60 }
0x35a3   :  { %12177 = vmatmul.mubr.msk.f32.gmra.mrb[52].mxu0 %vm3283_vm7, %v12136_v14 }
0x35a4   :  { %13094 = vmatpush3.bf16.msra.mxu0 %v13075_v60  ;;  %12179 = vmatprep.mubr.msk.f32.mxu0 %vm3283_vm7, %v5490_v61  ;;  %v10639_v60 = vld [vmem:[%s15320_s1 + $0x4] sm:$0xf] }
0x35a5   :  { %13096 = vmatprep.subr.bf16.mxu0 %v13079_v62 }
0x35a7   :  { %12180 = vmatmul.mubr.msk.f32.gmra.mrb[54].mxu0 %vm3283_vm7, %v12139_v17  ;;  %v10628_v17 = vld [vmem:[%s15321_s9] ss:$0 sm:$0xff] }
0x35a8   :  { %13098 = vmatpush3.bf16.msra.mxu0 %v13079_v62  ;;  %12212 = vmatprep.mubr.msk.f32.mxu0 %vm5502_vm11, %v14569_v52 }
0x35ab   :  { %12213 = vmatmul.mubr.msk.f32.vlgmr.msra.gmra.mrb[56].mxu0 %vm5502_vm11, %v14574_v53 }
0x35ac   :  { %12215 = vmatprep.mubr.msk.f32.mxu0 %vm5502_vm11, %v14656_v9 }
0x35af   :  { %12216 = vmatmul.mubr.msk.f32.gmra.mrb[58].mxu0 %vm5502_vm11, %v14664_v10 }
0x35b0   :  { %12218 = vmatprep.mubr.msk.f32.mxu0 %vm5502_vm11, %v14826_v16 }
0x35b3   :  { %12219 = vmatmul.mubr.msk.f32.gmra.mrb[60].mxu0 %vm5502_vm11, %v14836_v25 }
0x35b4   :  { %12221 = vmatprep.mubr.msk.f32.mxu0 %vm5502_vm11, %v14839_v26 }
0x35b7   :  { %12222 = vmatmul.mubr.msk.f32.gmra.mrb[62].mxu0 %vm5502_vm11, %v14847_v27 }
0x35b8   :  { %12254 = vmatprep.mubr.msk.f32.mxu0 %vm5502_vm11, %v14551_v39 }
0x365e   :  { %v12158_v20 = vpop.f32.mrb[40].mxu0 }
0x365f   :  { %v5589_v33 = vpop.f32.mrb[41].mxu0 }
0x3660   :  { %12184 = vmatprep.mubr.msk.f32.mxu1 %vm3283_vm7, %v5589_v33 }
0x3661   :  { %12185 = vmatmul.mubr.msk.f32.vlgmr.msra.gmra.mrb[44].mxu1 %vm3283_vm7, %v12158_v20 }
0x3662   :  { %v12161_v30 = vpop.f32.mrb[42].mxu0  ;;  %12225 = vmatpush3.msra.mxu1 %v10619_v29 }
0x3663   :  { %v5599_v1 = vpop.f32.mrb[43].mxu0  ;;  %12266 = vmatprep.subr.msk.mxu1 %vm6339_vm6, %v10639_v60 }
0x3664   :  { %12187 = vmatprep.mubr.msk.f32.mxu1 %vm3283_vm7, %v5599_v1 }
0x3665   :  { %12188 = vmatmul.mubr.msk.f32.gmra.mrb[46].mxu1 %vm3283_vm7, %v12161_v30 }
0x3666   :  { %v12164_v31 = vpop.f32.mrb[44].mxu0 }
0x3667   :  { %v5609_v0 = vpop.f32.mrb[45].mxu0 }
0x3668   :  { %12190 = vmatprep.mubr.msk.f32.mxu1 %vm3283_vm7, %v5609_v0 }
0x3669   :  { %12191 = vmatmul.mubr.msk.f32.gmra.mrb[48].mxu1 %vm3283_vm7, %v12164_v31 }
0x366a   :  { %v12167_v32 = vpop.f32.mrb[46].mxu0 }
0x366b   :  { %v5619_v35 = vpop.f32.mrb[47].mxu0 }
0x366c   :  { %12193 = vmatprep.mubr.msk.f32.mxu1 %vm3283_vm7, %v5619_v35 }
0x366d   :  { %12194 = vmatmul.mubr.msk.f32.gmra.mrb[50].mxu1 %vm3283_vm7, %v12167_v32 }
0x366e   :  { %v12172_v37 = vpop.f32.mrb[48].mxu0 }
0x366f   :  { %v5721_v59 = vpop.f32.mrb[49].mxu0 }
0x3672   :  { %v12175_v34 = vpop.f32.mrb[50].mxu0 }
0x3673   :  { %v5731_v40 = vpop.f32.mrb[51].mxu0 }
0x3676   :  { %v12178_v43 = vpop.f32.mrb[52].mxu0 }
0x3677   :  { %v5741_v44 = vpop.f32.mrb[53].mxu0 }
0x367a   :  { %v12181_v45 = vpop.f32.mrb[54].mxu0 }
0x367b   :  { %v14863_v46 = vpop.f32.mrb[55].mxu0 }
0x367e   :  { %v12214_v23 = vpop.f32.mrb[56].mxu0 }
0x367f   :  { %v5975_v49 = vpop.f32.mrb[57].mxu0 }
0x3680   :  { %12226 = vmatprep.mubr.msk.f32.mxu1 %vm3283_vm7, %v5975_v49 }
0x3681   :  { %12227 = vmatmul.mubr.msk.f32.vlgmr.msra.gmra.mrb[44].mxu1 %vm3283_vm7, %v12214_v23 }
0x3682   :  { %v12217_v19 = vpop.f32.mrb[58].mxu0  ;;  %12267 = vmatpush3.msk.msra.mxu1 %vm6339_vm6, %v10639_v60 }
0x3683   :  { %v5985_v50 = vpop.f32.mrb[59].mxu0 }
0x3684   :  { %12229 = vmatprep.mubr.msk.f32.mxu1 %vm3283_vm7, %v5985_v50 }
0x3685   :  { %12230 = vmatmul.mubr.msk.f32.gmra.mrb[46].mxu1 %vm3283_vm7, %v12217_v19 }
0x3686   :  { %v12220_v54 = vpop.f32.mrb[60].mxu0 }
0x3687   :  { %v5995_v55 = vpop.f32.mrb[61].mxu0 }
0x3688   :  { %12232 = vmatprep.mubr.msk.f32.mxu1 %vm3283_vm7, %v5995_v55 }
0x3689   :  { %12233 = vmatmul.mubr.msk.f32.gmra.mrb[48].mxu1 %vm3283_vm7, %v12220_v54 }
0x368a   :  { %v12223_v14 = vpop.f32.mrb[62].mxu0 }
0x368b   :  { %v6005_v58 = vpop.f32.mrb[63].mxu0 }
0x368c   :  { %12235 = vmatprep.mubr.msk.f32.mxu1 %vm3283_vm7, %v6005_v58 }
0x368d   :  { %12236 = vmatmul.mubr.msk.f32.gmra.mrb[50].mxu1 %vm3283_vm7, %v12223_v14 }
0x3754   :  { %v12228_v61 = vpop.f32.mrb[44].mxu1 }
0x3755   :  { %v13319_v62 = vadd.f32 %v12228_v61, %v12172_v37  ;;  %v6106_v63 = vpop.f32.mrb[45].mxu1 }
0x3756   :  { %v13320_v41 = vadd.f32 %v6106_v63, %v5721_v59 }
0x3757   :  { %v6160_v3 = vadd.f32 %v13319_v62, %v10628_v17 }
0x3758   :  { %v6159_v42 = vadd.f32 %v13320_v41, %v10628_v17  ;;  %v12231_v13 = vpop.f32.mrb[46].mxu1 }
0x3759   :  { %v6174_v15 = vmul.f32 %v10629_v2, %v6160_v3  ;;  %v13321_v18 = vadd.f32 %v12231_v13, %v12175_v34  ;;  %v6116_v28 = vpop.f32.mrb[47].mxu1 }
0x375a   :  { %v6173_v29 = vmul.f32 %v10629_v2, %v6159_v42  ;;  %v13322_v20 = vadd.f32 %v6116_v28, %v5731_v40 }
0x375b   :  { %v6188_v33 = vadd.f32 %v10630_v6, %v6174_v15  ;;  %v6162_v30 = vadd.f32 %v13321_v18, %v10628_v17 }
0x375c   :  { %v6187_v1 = vadd.f32 %v10630_v6, %v6173_v29  ;;  %v6161_v31 = vadd.f32 %v13322_v20, %v10628_v17  ;;  %v12234_v0 = vpop.f32.mrb[48].mxu1 }
0x375d   :  { %v6196_v32 = vmax.f32 %v6188_v33, 0.0  ;;  %v6176_v35 = vmul.f32 %v10629_v2, %v6162_v30  ;;  %v13323_v37 = vadd.f32 %v12234_v0, %v12178_v43  ;;  %v6126_v23 = vpop.f32.mrb[49].mxu1 }
0x375e   :  { %v6195_v59 = vmax.f32 %v6187_v1, 0.0  ;;  %v6175_v49 = vmul.f32 %v10629_v2, %v6161_v31  ;;  %v13324_v19 = vadd.f32 %v6126_v23, %v5741_v44 }
0x375f   :  { %v6190_v50 = vadd.f32 %v10630_v6, %v6176_v35  ;;  %v6164_v54 = vadd.f32 %v13323_v37, %v10628_v17 }
0x3760   :  { %v6189_v55 = vadd.f32 %v10630_v6, %v6175_v49  ;;  %v6163_v34 = vadd.f32 %v13324_v19, %v10628_v17  ;;  %v12237_v14 = vpop.f32.mrb[50].mxu1  ;;  %12268 = vmatprep.mubr.msk.f32.mxu1 %vm6314_vm8, %v6195_v59  ;;  %v13099_v40 = vpack.c.bf16 %v6196_v32, %v6195_v59 }
0x3761   :  { %v6198_v58 = vmax.f32 %v6190_v50, 0.0  ;;  %v6178_v60 = vmul.f32 %v10629_v2, %v6164_v54  ;;  %v13325_v61 = vadd.f32 %v12237_v14, %v12181_v45  ;;  %v6136_v62 = vpop.f32.mrb[51].mxu1  ;;  %12269 = vmatmul.mubr.msk.f32.vlgmr.msra.gmra.mrb[52].mxu1 %vm6314_vm8, %v6196_v32 }
0x3762   :  { %v6197_v43 = vmax.f32 %v6189_v55, 0.0  ;;  %v6177_v63 = vmul.f32 %v10629_v2, %v6163_v34  ;;  %v13326_v41 = vadd.f32 %v6136_v62, %v14863_v46  ;;  %13100 = vmatprep.subr.bf16.mxu0 %v13099_v40 }
0x3763   :  { %v6192_v44 = vadd.f32 %v10630_v6, %v6178_v60  ;;  %v6166_v3 = vadd.f32 %v13325_v61, %v10628_v17  ;;  %13102 = vmatpush3.bf16.msra.mxu0 %v13099_v40  ;;  %v10684_v60 = vld [vmem:[%s15309_s5 + $0x28] sm:$0xff] }
0x3764   :  { %v6191_v42 = vadd.f32 %v10630_v6, %v6177_v63  ;;  %v6165_v13 = vadd.f32 %v13326_v41, %v10628_v17  ;;  %12271 = vmatprep.mubr.msk.f32.mxu1 %vm6314_vm8, %v6197_v43  ;;  %v13103_v15 = vpack.c.bf16 %v6198_v58, %v6197_v43  ;;  %v10685_v41 = vld [vmem:[%s15309_s5 + $0x30] sm:$0xff] }
0x3765   :  { %v6200_v18 = vmax.f32 %v6192_v44, 0.0  ;;  %v6180_v28 = vmul.f32 %v10629_v2, %v6166_v3  ;;  %12272 = vmatmul.mubr.msk.f32.gmra.mrb[54].mxu1 %vm6314_vm8, %v6198_v58  ;;  %v10683_v58 = vld [vmem:[%s15309_s5 + $0x20] sm:$0xff]  ;;  %v10686_v44 = vld [vmem:[%s15309_s5 + $0x38] sm:$0xff] }
0x3766   :  { %v6199_v45 = vmax.f32 %v6191_v42, 0.0  ;;  %v6179_v29 = vmul.f32 %v10629_v2, %v6165_v13  ;;  %13104 = vmatprep.subr.bf16.mxu0 %v13103_v15  ;;  %v10666_v2 = vld [vmem:[%s15320_s1 + $0x8] sm:$0xf]  ;;  %v13135_v63 = vpack.c.bf16 %v10684_v60, %v10683_v58  ;;  %v13139_v3 = vpack.c.bf16 %v10686_v44, %v10685_v41  ;;  %v7030_v42 = vld [vmem:[%s15309_s5] sm:$0xff] }
0x3767   :  { %v6194_v20 = vadd.f32 %v10630_v6, %v6180_v28  ;;  %13106 = vmatpush3.bf16.msra.mxu0 %v13103_v15  ;;  %v7031_v13 = vld [vmem:[%s15309_s5 + $0x8] sm:$0xff]  ;;  %v7033_v28 = vld [vmem:[%s15309_s5 + $0x18] sm:$0xff] }
0x3768   :  { %v6193_v33 = vadd.f32 %v10630_v6, %v6179_v29  ;;  %12274 = vmatprep.mubr.msk.f32.mxu1 %vm6314_vm8, %v6199_v45  ;;  %v13107_v46 = vpack.c.bf16 %v6200_v18, %v6199_v45  ;;  %v14968_v29 = vld [vmem:[%s14049_s8] ss:$0 sm:$0xff] }
0x3769   :  { %v6202_v30 = vmax.f32 %v6194_v20, 0.0  ;;  %12275 = vmatmul.mubr.msk.f32.gmra.mrb[56].mxu1 %vm6314_vm8, %v6200_v18  ;;  %v7032_v18 = vld [vmem:[%s15309_s5 + $0x10] sm:$0xff]  ;;  %v10677_v20 = vld [vmem:[%s14054_s30] ss:$0 sm:$0xff] }
0x376a   :  { %v6201_v17 = vmax.f32 %v6193_v33, 0.0  ;;  %13108 = vmatprep.subr.bf16.mxu0 %v13107_v46  ;;  %v13147_v45 = vpack.c.bf16 %v7033_v28, %v7032_v18  ;;  %v10694_v18 = vld [vmem:[%s15309_s5 + $0x48] sm:$0xff] }
0x376b   :  { %13110 = vmatpush3.bf16.msra.mxu0 %v13107_v46 }
0x376c   :  { %12277 = vmatprep.mubr.msk.f32.mxu1 %vm6314_vm8, %v6201_v17  ;;  %v13111_v1 = vpack.c.bf16 %v6202_v30, %v6201_v17  ;;  %v14973_v17 = vld [vmem:[%s14059_s3] ss:$0 sm:$0xff] }
0x376d   :  { %12278 = vmatmul.mubr.msk.f32.gmra.mrb[58].mxu1 %vm6314_vm8, %v6202_v30 }
0x376e   :  { %13112 = vmatprep.subr.bf16.mxu0 %v13111_v1 }
0x376f   :  { %13114 = vmatpush3.bf16.msra.mxu0 %v13111_v1 }
0x3770   :  { %13116 = vmatprep.subr.bf16.mxu0 %v13099_v40 }
0x3772   :  { %12255 = vmatmul.mubr.msk.f32.vlgmr.msra.gmra.mrb[64].mxu0 %vm5502_vm11, %v14565_v51 }
0x3773   :  { %13118 = vmatpush3.bf16.msra.mxu0 %v13099_v40  ;;  %12257 = vmatprep.mubr.msk.f32.mxu0 %vm5502_vm11, %v14640_v5 }
0x3774   :  { %13120 = vmatprep.subr.bf16.mxu0 %v13103_v15 }
0x3776   :  { %12258 = vmatmul.mubr.msk.f32.gmra.mrb[66].mxu0 %vm5502_vm11, %v14648_v7 }
0x3777   :  { %13122 = vmatpush3.bf16.msra.mxu0 %v13103_v15  ;;  %12260 = vmatprep.mubr.msk.f32.mxu0 %vm5502_vm11, %v14782_v4  ;;  %v13143_v15 = vpack.c.bf16 %v7031_v13, %v7030_v42 }
0x3778   :  { %13124 = vmatprep.subr.bf16.mxu0 %v13107_v46 }
0x377a   :  { %12261 = vmatmul.mubr.msk.f32.gmra.mrb[68].mxu0 %vm5502_vm11, %v14792_v8 }
0x377b   :  { %13126 = vmatpush3.bf16.msra.mxu0 %v13107_v46  ;;  %12263 = vmatprep.mubr.msk.f32.mxu0 %vm5502_vm11, %v14795_v11 }
0x377c   :  { %13128 = vmatprep.subr.bf16.mxu0 %v13111_v1 }
0x377e   :  { %12264 = vmatmul.mubr.msk.f32.gmra.mrb[70].mxu0 %vm5502_vm11, %v14803_v12 }
0x377f   :  { %13130 = vmatpush3.bf16.msra.mxu0 %v13111_v1  ;;  %12310 = vmatprep.mubr.msk.f32.mxu0 %vm5502_vm11, %v14569_v52 }
0x3780   :  { %12336 = vmatprep.subr.mxu0 %v14541_v38 }
0x3782   :  { %12311 = vmatmul.mubr.msk.f32.vlgmr.msra.gmra.mrb[72].mxu0 %vm5502_vm11, %v14574_v53 }
0x3783   :  { %12337 = vmatpush3.msra.mxu0 %v14541_v38  ;;  %12313 = vmatprep.mubr.msk.f32.mxu0 %vm5502_vm11, %v14656_v9  ;;  %v6311_v38 = vld [vmem:[%s15320_s1] sm:$0xf] }
0x3784   :  { %12280 = vmatprep.subr.msk.mxu1 %vm6339_vm6, %v6311_v38 }
0x3785   :  { %12281 = vmatpush3.msk.msra.mxu1 %vm6339_vm6, %v6311_v38 }
0x3786   :  { %12314 = vmatmul.mubr.msk.f32.gmra.mrb[74].mxu0 %vm5502_vm11, %v14664_v10  ;;  %12322 = vmatprep.subr.msk.mxu1 %vm6339_vm6, %v10666_v2 }
0x3787   :  { %12316 = vmatprep.mubr.msk.f32.mxu0 %vm5502_vm11, %v14826_v16 }
0x378a   :  { %12317 = vmatmul.mubr.msk.f32.gmra.mrb[76].mxu0 %vm5502_vm11, %v14836_v25 }
0x378b   :  { %12319 = vmatprep.mubr.msk.f32.mxu0 %vm5502_vm11, %v14839_v26 }
0x378e   :  { %12320 = vmatmul.mubr.msk.f32.gmra.mrb[78].mxu0 %vm5502_vm11, %v14847_v27 }
0x378f   :  { %12338 = vmatprep.mubr.msk.f32.mxu0 %vm3283_vm7, %v14529_v24 }
0x3792   :  { %12339 = vmatmul.mubr.msk.f32.vlgmr.msra.gmra.mrb[80].mxu0 %vm3283_vm7, %v14544_v36 }
0x3793   :  { %12345 = vmatprep.mubr.msk.f32.mxu0 %vm3368_vm12, %v14551_v39 }
0x3845   :  { %v12256_v6 = vpop.f32.mrb[64].mxu0 }
0x3846   :  { %v6272_v31 = vpop.f32.mrb[65].mxu0 }
0x3847   :  { %12282 = vmatprep.mubr.msk.f32.mxu1 %vm6314_vm8, %v6272_v31 }
0x3848   :  { %12283 = vmatmul.mubr.msk.f32.vlgmr.msra.gmra.mrb[52].mxu1 %vm6314_vm8, %v12256_v6 }
0x3849   :  { %v12259_v0 = vpop.f32.mrb[66].mxu0  ;;  %12323 = vmatpush3.msk.msra.mxu1 %vm6339_vm6, %v10666_v2 }
0x384a   :  { %v6282_v32 = vpop.f32.mrb[67].mxu0 }
0x384b   :  { %12285 = vmatprep.mubr.msk.f32.mxu1 %vm6314_vm8, %v6282_v32 }
0x384c   :  { %12286 = vmatmul.mubr.msk.f32.gmra.mrb[54].mxu1 %vm6314_vm8, %v12259_v0 }
0x384d   :  { %v12262_v35 = vpop.f32.mrb[68].mxu0 }
0x384e   :  { %v6292_v37 = vpop.f32.mrb[69].mxu0 }
0x384f   :  { %12288 = vmatprep.mubr.msk.f32.mxu1 %vm6314_vm8, %v6292_v37 }
0x3850   :  { %12289 = vmatmul.mubr.msk.f32.gmra.mrb[56].mxu1 %vm6314_vm8, %v12262_v35 }
0x3851   :  { %v12265_v23 = vpop.f32.mrb[70].mxu0 }
0x3852   :  { %v6302_v59 = vpop.f32.mrb[71].mxu0 }
0x3853   :  { %12291 = vmatprep.mubr.msk.f32.mxu1 %vm6314_vm8, %v6302_v59 }
0x3854   :  { %12292 = vmatmul.mubr.msk.f32.gmra.mrb[58].mxu1 %vm6314_vm8, %v12265_v23 }
0x3855   :  { %v12312_v49 = vpop.f32.mrb[72].mxu0 }
0x3856   :  { %v6646_v19 = vpop.f32.mrb[73].mxu0 }
0x3857   :  { %12324 = vmatprep.mubr.msk.f32.mxu1 %vm6314_vm8, %v6646_v19 }
0x3858   :  { %12325 = vmatmul.mubr.msk.f32.vlgmr.msra.gmra.mrb[52].mxu1 %vm6314_vm8, %v12312_v49 }
0x3859   :  { %v12315_v50 = vpop.f32.mrb[74].mxu0 }
0x385a   :  { %v6656_v54 = vpop.f32.mrb[75].mxu0 }
0x385b   :  { %12327 = vmatprep.mubr.msk.f32.mxu1 %vm6314_vm8, %v6656_v54 }
0x385c   :  { %12328 = vmatmul.mubr.msk.f32.gmra.mrb[54].mxu1 %vm6314_vm8, %v12315_v50 }
0x385d   :  { %v12318_v55 = vpop.f32.mrb[76].mxu0 }
0x385e   :  { %v6666_v34 = vpop.f32.mrb[77].mxu0 }
0x385f   :  { %12330 = vmatprep.mubr.msk.f32.mxu1 %vm6314_vm8, %v6666_v34 }
0x3860   :  { %12331 = vmatmul.mubr.msk.f32.gmra.mrb[56].mxu1 %vm6314_vm8, %v12318_v55 }
0x3861   :  { %v12321_v14 = vpop.f32.mrb[78].mxu0 }
0x3862   :  { %v6676_v40 = vpop.f32.mrb[79].mxu0 }
0x3863   :  { %12333 = vmatprep.mubr.msk.f32.mxu1 %vm6314_vm8, %v6676_v40 }
0x3864   :  { %12334 = vmatmul.mubr.msk.f32.gmra.mrb[58].mxu1 %vm6314_vm8, %v12321_v14 }
0x3865   :  { %v12340_v61 = vpop.f32.mrb[80].mxu0  ;;  %12392 = vmatprep.mubr.msk.f32.mxu1 %vm3368_vm12, %v14551_v39 }
0x3866   :  { %v6943_v62 = vpop.f32.mrb[81].mxu0 }
0x3867   :  { %v14952_v43 = vpack.c.bf16 %v12340_v61, %v6943_v62 }
0x3869   :  { %13132 = vmatprep.subr.bf16.mxu0 %v14952_v43 }
0x386a   :  { %13134 = vmatpush3.bf16.msra.mxu0 %v14952_v43 }
0x386b   :  { %13136 = vmatprep.subr.bf16.mxu0 %v13135_v63 }
0x386d   :  { %12346 = vmatmul.mubr.msk.f32.vlgmr.msra.gmra.mrb[82].mxu0 %vm3368_vm12, %v14565_v51 }
0x386e   :  { %13138 = vmatpush3.bf16.msra.mxu0 %v13135_v63  ;;  %12356 = vmatprep.mubr.msk.f32.mxu0 %vm265_vm1, %v6943_v62 }
0x386f   :  { %13140 = vmatprep.subr.bf16.mxu0 %v13139_v3 }
0x3872   :  { %13142 = vmatpush3.bf16.msra.mxu0 %v13139_v3 }
0x3873   :  { %13144 = vmatprep.subr.bf16.mxu0 %v13143_v15 }
0x3875   :  { %12357 = vmatmul.mubr.msk.f32.vlgmr.msra.gmra.mrb[84].mxu0 %vm265_vm1, %v12340_v61 }
0x3876   :  { %13146 = vmatpush3.bf16.msra.mxu0 %v13143_v15  ;;  %v10693_v15 = vld [vmem:[%s15309_s5 + $0x40] sm:$0xff] }
0x3877   :  { %13148 = vmatprep.subr.bf16.mxu0 %v13147_v45 }
0x387a   :  { %13150 = vmatpush3.bf16.msra.mxu0 %v13147_v45 }
0x387b   :  { %13152 = vmatprep.subr.bf16.mxu0 %v14952_v43 }
0x392b   :  { %v12326_v33 = vpop.f32.mrb[52].mxu1 }
0x392c   :  { %v6834_v46 = vadd.f32 %v12326_v33, %v14968_v29  ;;  %v6780_v30 = vpop.f32.mrb[53].mxu1  ;;  %v13155_v33 = vpack.c.bf16 %v10694_v18, %v10693_v15  ;;  %v10717_v15 = vld [vmem:[#allocation13] ss:$0 sm:$0xff] }
0x392d   :  { %v6833_v1 = vadd.f32 %v14968_v29, %v6780_v30  ;;  %v10696_v30 = vld [vmem:[%s15309_s5 + $0x58] sm:$0xff] }
0x392e   :  { %v6848_v38 = vmul.f32 %v10677_v20, %v6834_v46  ;;  %v10695_v46 = vld [vmem:[%s15309_s5 + $0x50] sm:$0xff] }
0x392f   :  { %v6847_v2 = vmul.f32 %v10677_v20, %v6833_v1  ;;  %v12329_v6 = vpop.f32.mrb[54].mxu1 }
0x3930   :  { %v6862_v31 = vadd.f32 %v14973_v17, %v6848_v38  ;;  %v6836_v0 = vadd.f32 %v12329_v6, %v14968_v29  ;;  %v6790_v32 = vpop.f32.mrb[55].mxu1 }
0x3931   :  { %v6861_v35 = vadd.f32 %v14973_v17, %v6847_v2  ;;  %v6835_v37 = vadd.f32 %v14968_v29, %v6790_v32  ;;  %v10700_v2 = vld [vmem:[#allocation8] ss:$0 sm:$0xff]  ;;  %v10701_v32 = vld [vmem:[#allocation10] ss:$0 sm:$0xff] }
0x3932   :  { %6870 = vst.msk [vmem:[%s14064_s27 + $0x8] sm:$0xff] %vm6314_vm8, %v6862_v31  ;;  %v6850_v23 = vmul.f32 %v10677_v20, %v6836_v0 }
0x3933   :  { %6869 = vst.msk [vmem:[%s14064_s27] sm:$0xff] %vm6314_vm8, %v6861_v35  ;;  %v6849_v59 = vmul.f32 %v10677_v20, %v6835_v37  ;;  %v12332_v49 = vpop.f32.mrb[56].mxu1 }
0x3934   :  { %v6864_v19 = vadd.f32 %v14973_v17, %v6850_v23  ;;  %v6838_v50 = vadd.f32 %v12332_v49, %v14968_v29  ;;  %v6800_v54 = vpop.f32.mrb[57].mxu1 }
0x3935   :  { %v6863_v55 = vadd.f32 %v14973_v17, %v6849_v59  ;;  %v6837_v34 = vadd.f32 %v14968_v29, %v6800_v54  ;;  %v10705_v54 = vld [vmem:[%s15311_s21 + $0x18] sm:$0xff] }
0x3936   :  { %6872 = vst.msk [vmem:[%s14064_s27 + $0x18] sm:$0xff] %vm6314_vm8, %v6864_v19  ;;  %v6852_v14 = vmul.f32 %v10677_v20, %v6838_v50  ;;  %v10704_v50 = vld [vmem:[%s15311_s21 + $0x10] sm:$0xff] }
0x3937   :  { %6871 = vst.msk [vmem:[%s14064_s27 + $0x10] sm:$0xff] %vm6314_vm8, %v6863_v55  ;;  %v6851_v40 = vmul.f32 %v10677_v20, %v6837_v34  ;;  %v12335_v58 = vpop.f32.mrb[58].mxu1 }
0x3938   :  { %v6866_v60 = vadd.f32 %v14973_v17, %v6852_v14  ;;  %v6840_v61 = vadd.f32 %v12335_v58, %v14968_v29  ;;  %v6810_v62 = vpop.f32.mrb[59].mxu1  ;;  %v13167_v14 = vpack.c.bf16 %v10705_v54, %v10704_v50  ;;  %v7467_v58 = vld [vmem:[%s15311_s21 + $0x8] sm:$0xff]  ;;  %v10741_v54 = vld [vmem:[%s15312_s25 + $0x20] sm:$0xff] }
0x3939   :  { %v6865_v63 = vadd.f32 %v14973_v17, %v6851_v40  ;;  %v6839_v41 = vadd.f32 %v14968_v29, %v6810_v62  ;;  %v7466_v40 = vld [vmem:[%s15311_s21] sm:$0xff]  ;;  %v10713_v62 = vld [vmem:[%s15311_s21 + $0x28] sm:$0xff] }
0x393a   :  { %6874 = vst.msk [vmem:[%s14064_s27 + $0x28] sm:$0xff] %vm6314_vm8, %v6866_v60  ;;  %v6854_v44 = vmul.f32 %v10677_v20, %v6840_v61  ;;  %v13171_v60 = vpack.c.bf16 %v7467_v58, %v7466_v40  ;;  %v10712_v61 = vld [vmem:[%s15311_s21 + $0x20] sm:$0xff] }
0x393b   :  { %6873 = vst.msk [vmem:[%s14064_s27 + $0x20] sm:$0xff] %vm6314_vm8, %v6865_v63  ;;  %v6853_v3 = vmul.f32 %v10677_v20, %v6839_v41  ;;  %v13159_v20 = vpack.c.bf16 %v10696_v30, %v10695_v46  ;;  %v13179_v63 = vpack.c.bf16 %v10713_v62, %v10712_v61 }
0x393c   :  { %v6868_v42 = vadd.f32 %v14973_v17, %v6854_v44 }
0x393d   :  { %v6867_v13 = vadd.f32 %v14973_v17, %v6853_v3 }
0x393e   :  { %6876 = vst.msk [vmem:[%s14064_s27 + $0x38] sm:$0xff] %vm6314_vm8, %v6868_v42 }
0x393f   :  { %6875 = vst.msk [vmem:[%s14064_s27 + $0x30] sm:$0xff] %vm6314_vm8, %v6867_v13  ;;  %v10716_v13 = vld [vmem:[#allocation11] ss:$0 sm:$0xff] }
0x3940   :  { %v12347_v28 = vpop.f32.mrb[82].mxu0 }
0x3941   :  { %v7021_v45 = vpop.f32.mrb[83].mxu0 }
0x3942   :  { %12367 = vmatprep.mubr.msk.f32.mxu0 %vm265_vm1, %v7021_v45 }
0x3943   :  { %12368 = vmatmul.mubr.msk.f32.vlgmr.msra.gmra.mrb[84].mxu0 %vm265_vm1, %v12347_v28 }
0x3944   :  { %13154 = vmatpush3.bf16.msra.mxu0 %v14952_v43  ;;  %12374 = vmatprep.mubr.msk.f32.mxu0 %vm3368_vm12, %v14569_v52  ;;  %v10699_v43 = vld [vmem:[#allocation7] ss:$0 sm:$0xff] }
0x3945   :  { %13156 = vmatprep.subr.bf16.mxu0 %v13155_v33 }
0x3947   :  { %12375 = vmatmul.mubr.msk.f32.vlgmr.msra.gmra.mrb[86].mxu0 %vm3368_vm12, %v14574_v53 }
0x3948   :  { %13158 = vmatpush3.bf16.msra.mxu0 %v13155_v33  ;;  %v10718_v33 = vld [vmem:[#allocation14] ss:$0 sm:$0xff] }
0x3949   :  { %13160 = vmatprep.subr.bf16.mxu0 %v13159_v20 }
0x394c   :  { %13162 = vmatpush3.bf16.msra.mxu0 %v13159_v20 }
0x3a1a   :  { %v12376_v1 = vpop.f32.mrb[86].mxu0 }
0x3a1b   :  { %v7266_v38 = vpop.f32.mrb[87].mxu0 }
0x3a1c   :  { %12385 = vmatprep.mubr.msk.f32.mxu0 %vm265_vm1, %v7266_v38 }
0x3a1d   :  { %12386 = vmatmul.mubr.msk.f32.vlgmr.msra.gmra.mrb[84].mxu0 %vm265_vm1, %v12376_v1 }
0x3a1e   :  { %12413 = vmatprep.mubr.msk.f32.mxu0 %vm3368_vm12, %v14569_v52 }
0x3af0   :  { %v12387_v6 = vpop.f32.mrb[84].mxu0 }
0x3af1   :  { %v7369_v31 = vadd.f32 %v12387_v6, %v10699_v43  ;;  %v7351_v0 = vpop.f32.mrb[85].mxu0  ;;  %v10728_v6 = vld [vmem:[%s15312_s25 + $0x18] sm:$0xff] }
0x3af2   :  { %v7368_v35 = vadd.f32 %v10699_v43, %v7351_v0  ;;  %v7989_v0 = vld [vmem:[%s15312_s25] sm:$0xff] }
0x3af3   :  { %v7377_v37 = vmul.f32 %v10700_v2, %v7369_v31 }
0x3af4   :  { %v7376_v23 = vmul.f32 %v10700_v2, %v7368_v35  ;;  %v10727_v2 = vld [vmem:[%s15312_s25 + $0x10] sm:$0xff] }
0x3af5   :  { %v7385_v59 = vadd.f32 %v10701_v32, %v7377_v37  ;;  %v13195_v31 = vpack.c.bf16 %v10728_v6, %v10727_v2 }
0x3af6   :  { %v7384_v49 = vadd.f32 %v10701_v32, %v7376_v23  ;;  %v7990_v32 = vld [vmem:[%s15312_s25 + $0x8] sm:$0xff] }
0x3af7   :  { %v7387_v19 = vmax.f32 %v7385_v59, 0.0  ;;  %v13199_v35 = vpack.c.bf16 %v7990_v32, %v7989_v0 }
0x3af8   :  { %v7386_v55 = vmax.f32 %v7384_v49, 0.0 }
0x3afa   :  { %v13163_v34 = vpack.c.bf16 %v7387_v19, %v7386_v55 }
0x3afc   :  { %13164 = vmatprep.subr.bf16.mxu1 %v13163_v34  ;;  %13176 = vmatprep.subr.bf16.mxu0 %v13163_v34 }
0x3afd   :  { %13166 = vmatpush3.bf16.msra.mxu1 %v13163_v34  ;;  %13178 = vmatpush3.bf16.msra.mxu0 %v13163_v34 }
0x3afe   :  { %13168 = vmatprep.subr.bf16.mxu1 %v13167_v14 }
0x3b00   :  { %12393 = vmatmul.mubr.msk.f32.vlgmr.msra.gmra.mrb[60].mxu1 %vm3368_vm12, %v14565_v51  ;;  %12414 = vmatmul.mubr.msk.f32.vlgmr.msra.gmra.mrb[88].mxu0 %vm3368_vm12, %v14574_v53 }
0x3b01   :  { %13170 = vmatpush3.bf16.msra.mxu1 %v13167_v14  ;;  %12399 = vmatprep.mubr.msk.f32.mxu1 %vm3368_vm12, %v7386_v55  ;;  %v10742_v55 = vld [vmem:[%s15312_s25 + $0x28] sm:$0xff] }
0x3b02   :  { %13172 = vmatprep.subr.bf16.mxu1 %v13171_v60  ;;  %12427 = vmatprep.mubr.msk.f32.mxu0 %vm3368_vm12, %v14529_v24  ;;  %v13211_v34 = vpack.c.bf16 %v10742_v55, %v10741_v54  ;;  %v10767_v54 = vld [vmem:[%s15315_s11 + $0x10] sm:$0xff] }
0x3b04   :  { %12400 = vmatmul.mubr.msk.f32.vlgmr.msra.gmra.mrb[62].mxu1 %vm3368_vm12, %v7387_v19 }
0x3b05   :  { %13174 = vmatpush3.bf16.msra.mxu1 %v13171_v60 }
0x3b06   :  { %13180 = vmatprep.subr.bf16.mxu1 %v13179_v63 }
0x3bd3   :  { %v12394_v41 = vpop.f32.mrb[60].mxu1  ;;  %v12415_v44 = vpop.f32.mrb[88].mxu0 }
0x3bd4   :  { %v7457_v3 = vpop.f32.mrb[61].mxu1  ;;  %v7698_v42 = vpop.f32.mrb[89].mxu0 }
0x3bd5   :  { %12406 = vmatprep.mubr.msk.f32.mxu1 %vm3368_vm12, %v7457_v3  ;;  %v10747_v3 = vld [vmem:[#allocation16] ss:$0 sm:$0xff] }
0x3bd6   :  { %12407 = vmatmul.mubr.msk.f32.vlgmr.msra.gmra.mrb[62].mxu1 %vm3368_vm12, %v12394_v41 }
0x3bd7   :  { %13182 = vmatpush3.bf16.msra.mxu1 %v13179_v63  ;;  %12420 = vmatprep.mubr.msk.f32.mxu1 %vm3368_vm12, %v7698_v42  ;;  %v10748_v42 = vld [vmem:[%s15313_s29] ss:$0 sm:$0xff] }
0x3bd8   :  { %13196 = vmatprep.subr.bf16.mxu1 %v13195_v31 }
0x3bde   :  { %12421 = vmatmul.mubr.msk.f32.vlgmr.msra.gmra.mrb[62].mxu1 %vm3368_vm12, %v12415_v44  ;;  %v10754_v44 = vld [vmem:[%s15315_s11 + $0x8] sm:$0xff] }
0x3bdf   :  { %13198 = vmatpush3.bf16.msra.mxu1 %v13195_v31 }
0x3be0   :  { %13200 = vmatprep.subr.bf16.mxu1 %v13199_v35 }
0x3cb1   :  { %v12422_v18 = vpop.f32.mrb[62].mxu1 }
0x3cb2   :  { %v7799_v28 = vadd.f32 %v12422_v18, %v10716_v13  ;;  %v7781_v45 = vpop.f32.mrb[63].mxu1 }
0x3cb3   :  { %v7798_v46 = vadd.f32 %v10716_v13, %v7781_v45 }
0x3cb4   :  { %v7807_v30 = vmul.f32 %v10717_v15, %v7799_v28  ;;  %v10749_v28 = vld [vmem:[%s15314_s4] ss:$0 sm:$0xff] }
0x3cb5   :  { %v7806_v20 = vmul.f32 %v10717_v15, %v7798_v46 }
0x3cb6   :  { %v7815_v1 = vadd.f32 %v10718_v33, %v7807_v30 }
0x3cb7   :  { %v7814_v38 = vadd.f32 %v10718_v33, %v7806_v20 }
0x3cb9   :  { %v13183_v43 = vpack.c.bf16 %v7815_v1, %v7814_v38 }
0x3cbb   :  { %13184 = vmatprep.subr.bf16.mxu0 %v13183_v43 }
0x3cbc   :  { %13186 = vmatpush3.bf16.msra.mxu0 %v13183_v43 }
0x3cbf   :  { %12428 = vmatmul.mubr.msk.f32.vlgmr.msra.gmra.mrb[90].mxu0 %vm3368_vm12, %v14544_v36 }
0x3cc0   :  { %12430 = vmatprep.mubr.msk.f32.mxu0 %vm3368_vm12, %v14621_v56 }
0x3cc3   :  { %12431 = vmatmul.mubr.msk.f32.gmra.mrb[92].mxu0 %vm3368_vm12, %v14628_v57 }
0x3cc4   :  { %12441 = vmatprep.mubr.msk.f32.mxu0 %vm265_vm1, %v14551_v39 }
0x3d92   :  { %v12429_v37 = vpop.f32.mrb[90].mxu0 }
0x3d93   :  { %v7882_v23 = vpop.f32.mrb[91].mxu0 }
0x3d94   :  { %v13187_v59 = vpack.c.bf16 %v12429_v37, %v7882_v23  ;;  %12451 = vmatprep.mubr.msk.f32.mxu1 %vm3368_vm12, %v7882_v23 }
0x3d95   :  { %12452 = vmatmul.mubr.msk.f32.vlgmr.msra.gmra.mrb[64].mxu1 %vm3368_vm12, %v12429_v37 }
0x3d96   :  { %v12432_v49 = vpop.f32.mrb[92].mxu0  ;;  %13188 = vmatprep.subr.bf16.mxu0 %v13187_v59  ;;  %13202 = vmatpush3.bf16.msra.mxu1 %v13199_v35 }
0x3d97   :  { %v7892_v19 = vpop.f32.mrb[93].mxu0  ;;  %13190 = vmatpush3.bf16.msra.mxu0 %v13187_v59  ;;  %13212 = vmatprep.subr.bf16.mxu1 %v13211_v34 }
0x3d98   :  { %v13191_v50 = vpack.c.bf16 %v12432_v49, %v7892_v19  ;;  %12454 = vmatprep.mubr.msk.f32.mxu1 %vm3368_vm12, %v7892_v19 }
0x3d99   :  { %12455 = vmatmul.mubr.msk.f32.gmra.mrb[66].mxu1 %vm3368_vm12, %v12432_v49 }
0x3d9a   :  { %13192 = vmatprep.subr.bf16.mxu0 %v13191_v50 }
0x3d9b   :  { %13194 = vmatpush3.bf16.msra.mxu0 %v13191_v50 }
0x3d9c   :  { %13204 = vmatprep.subr.bf16.mxu0 %v13187_v59 }
0x3d9e   :  { %12442 = vmatmul.mubr.msk.f32.vlgmr.msra.gmra.mrb[94].mxu0 %vm265_vm1, %v14565_v51 }
0x3d9f   :  { %13206 = vmatpush3.bf16.msra.mxu0 %v13187_v59  ;;  %12444 = vmatprep.mubr.msk.f32.mxu0 %vm265_vm1, %v14640_v5 }
0x3da0   :  { %13208 = vmatprep.subr.bf16.mxu0 %v13191_v50 }
0x3da2   :  { %12445 = vmatmul.mubr.msk.f32.gmra.mrb[96].mxu0 %vm265_vm1, %v14648_v7 }
0x3da3   :  { %13210 = vmatpush3.bf16.msra.mxu0 %v13191_v50  ;;  %12475 = vmatprep.mubr.msk.f32.mxu0 %vm265_vm1, %v14569_v52  ;;  %v8497_v50 = vld [vmem:[%s15315_s11] sm:$0xff] }
0x3da6   :  { %12476 = vmatmul.mubr.msk.f32.vlgmr.msra.gmra.mrb[98].mxu0 %vm265_vm1, %v14574_v53 }
0x3da7   :  { %12478 = vmatprep.mubr.msk.f32.mxu0 %vm265_vm1, %v14656_v9 }
0x3daa   :  { %12479 = vmatmul.mubr.msk.f32.gmra.mrb[100].mxu0 %vm265_vm1, %v14664_v10 }
0x3dab   :  { %12499 = vmatprep.mubr.msk.f32.mxu0 %vm265_vm1, %v14551_v39 }
0x3e71   :  { %v12443_v14 = vpop.f32.mrb[94].mxu0 }
0x3e72   :  { %v7970_v40 = vpop.f32.mrb[95].mxu0 }
0x3e73   :  { %12461 = vmatprep.mubr.msk.f32.mxu1 %vm3368_vm12, %v7970_v40 }
0x3e74   :  { %12462 = vmatmul.mubr.msk.f32.vlgmr.msra.gmra.mrb[64].mxu1 %vm3368_vm12, %v12443_v14 }
0x3e75   :  { %v12446_v58 = vpop.f32.mrb[96].mxu0  ;;  %13214 = vmatpush3.bf16.msra.mxu1 %v13211_v34 }
0x3e76   :  { %v7980_v60 = vpop.f32.mrb[97].mxu0  ;;  %12505 = vmatprep.subr.mxu1 %v10754_v44 }
0x3e77   :  { %12464 = vmatprep.mubr.msk.f32.mxu1 %vm3368_vm12, %v7980_v60 }
0x3e78   :  { %12465 = vmatmul.mubr.msk.f32.gmra.mrb[66].mxu1 %vm3368_vm12, %v12446_v58 }
0x3e79   :  { %v12477_v61 = vpop.f32.mrb[98].mxu0 }
0x3e7a   :  { %v8253_v62 = vpop.f32.mrb[99].mxu0 }
0x3e7b   :  { %12485 = vmatprep.mubr.msk.f32.mxu1 %vm3368_vm12, %v8253_v62  ;;  %v10772_v62 = vld [vmem:[%s15316_s23] ss:$0 sm:$0xff] }
0x3e7c   :  { %12486 = vmatmul.mubr.msk.f32.vlgmr.msra.gmra.mrb[64].mxu1 %vm3368_vm12, %v12477_v61 }
0x3e7d   :  { %v12480_v63 = vpop.f32.mrb[100].mxu0  ;;  %12506 = vmatpush3.msra.mxu1 %v10754_v44 }
0x3e7e   :  { %v8263_v41 = vpop.f32.mrb[101].mxu0  ;;  %12513 = vmatprep.subr.mxu1 %v8497_v50 }
0x3e7f   :  { %12488 = vmatprep.mubr.msk.f32.mxu1 %vm3368_vm12, %v8263_v41 }
0x3e80   :  { %12489 = vmatmul.mubr.msk.f32.gmra.mrb[66].mxu1 %vm3368_vm12, %v12480_v63  ;;  %v10773_v63 = vld [vmem:[%s15317_s20] ss:$0 sm:$0xff] }
0x3f4f   :  { %v12487_v13 = vpop.f32.mrb[64].mxu1 }
0x3f50   :  { %v8382_v15 = vadd.f32 %v12487_v13, %v10747_v3  ;;  %v8352_v18 = vpop.f32.mrb[65].mxu1 }
0x3f51   :  { %v8381_v45 = vadd.f32 %v10747_v3, %v8352_v18 }
0x3f52   :  { %v8392_v33 = vmul.f32 %v10748_v42, %v8382_v15 }
0x3f53   :  { %v8391_v46 = vmul.f32 %v10748_v42, %v8381_v45  ;;  %v12490_v30 = vpop.f32.mrb[66].mxu1 }
0x3f54   :  { %v8402_v20 = vadd.f32 %v10749_v28, %v8392_v33  ;;  %v8384_v1 = vadd.f32 %v12490_v30, %v10747_v3  ;;  %v8362_v38 = vpop.f32.mrb[67].mxu1 }
0x3f55   :  { %v8401_v43 = vadd.f32 %v10749_v28, %v8391_v46  ;;  %v8383_v2 = vadd.f32 %v10747_v3, %v8362_v38 }
0x3f56   :  { %v8406_v6 = vmax.f32 %v8402_v20, 0.0  ;;  %v8394_v31 = vmul.f32 %v10748_v42, %v8384_v1 }
0x3f57   :  { %v8405_v0 = vmax.f32 %v8401_v43, 0.0  ;;  %v8393_v32 = vmul.f32 %v10748_v42, %v8383_v2  ;;  %v10774_v42 = vld [vmem:[%s15318_s26] ss:$0 sm:$0xff] }
0x3f58   :  { %v8404_v35 = vadd.f32 %v10749_v28, %v8394_v31 }
0x3f59   :  { %v13215_v37 = vpack.c.bf16 %v8406_v6, %v8405_v0  ;;  %v8403_v23 = vadd.f32 %v10749_v28, %v8393_v32  ;;  %12507 = vmatprep.mubr.msk.f32.mxu1 %vm3283_vm7, %v8405_v0 }
0x3f5a   :  { %v8408_v59 = vmax.f32 %v8404_v35, 0.0  ;;  %12508 = vmatmul.mubr.msk.f32.vlgmr.msra.gmra.mrb[68].mxu1 %vm3283_vm7, %v8406_v6 }
0x3f5b   :  { %v8407_v49 = vmax.f32 %v8403_v23, 0.0  ;;  %13216 = vmatprep.subr.bf16.mxu0 %v13215_v37  ;;  %12514 = vmatpush3.msra.mxu1 %v8497_v50 }
0x3f5c   :  { %13218 = vmatpush3.bf16.msra.mxu0 %v13215_v37  ;;  %12535 = vmatprep.subr.mxu1 %v10767_v54 }
0x3f5d   :  { %v13219_v19 = vpack.c.bf16 %v8408_v59, %v8407_v49  ;;  %12510 = vmatprep.mubr.msk.f32.mxu1 %vm3283_vm7, %v8407_v49 }
0x3f5e   :  { %12511 = vmatmul.mubr.msk.f32.gmra.mrb[70].mxu1 %vm3283_vm7, %v8408_v59 }
0x3f5f   :  { %13220 = vmatprep.subr.bf16.mxu0 %v13219_v19 }
0x3f60   :  { %13222 = vmatpush3.bf16.msra.mxu0 %v13219_v19 }
0x3f61   :  { %13224 = vmatprep.subr.bf16.mxu0 %v13215_v37 }
0x3f63   :  { %12500 = vmatmul.mubr.msk.f32.vlgmr.msra.gmra.mrb[102].mxu0 %vm265_vm1, %v14565_v51 }
0x3f64   :  { %13226 = vmatpush3.bf16.msra.mxu0 %v13215_v37  ;;  %12502 = vmatprep.mubr.msk.f32.mxu0 %vm265_vm1, %v14640_v5 }
0x3f65   :  { %13228 = vmatprep.subr.bf16.mxu0 %v13219_v19 }
0x3f67   :  { %12503 = vmatmul.mubr.msk.f32.gmra.mrb[104].mxu0 %vm265_vm1, %v14648_v7 }
0x3f68   :  { %13230 = vmatpush3.bf16.msra.mxu0 %v13219_v19  ;;  %12529 = vmatprep.mubr.msk.f32.mxu0 %vm265_vm1, %v14569_v52  ;;  %v10816_v19 = vld [vmem:[%s15319_s28 + $0x10] sm:$0xff] }
0x3f6b   :  { %12530 = vmatmul.mubr.msk.f32.vlgmr.msra.gmra.mrb[106].mxu0 %vm265_vm1, %v14574_v53 }
0x3f6c   :  { %12532 = vmatprep.mubr.msk.f32.mxu0 %vm265_vm1, %v14656_v9 }
0x3f6f   :  { %12533 = vmatmul.mubr.msk.f32.gmra.mrb[108].mxu0 %vm265_vm1, %v14664_v10 }
0x3f70   :  { %12551 = vmatprep.mubr.msk.f32.mxu0 %vm265_vm1, %v14529_v24 }
0x4036   :  { %v12501_v55 = vpop.f32.mrb[102].mxu0 }
0x4037   :  { %v8478_v34 = vpop.f32.mrb[103].mxu0 }
0x4038   :  { %12515 = vmatprep.mubr.msk.f32.mxu1 %vm3283_vm7, %v8478_v34 }
0x4039   :  { %12516 = vmatmul.mubr.msk.f32.vlgmr.msra.gmra.mrb[68].mxu1 %vm3283_vm7, %v12501_v55 }
0x403a   :  { %v12504_v14 = vpop.f32.mrb[104].mxu0  ;;  %12536 = vmatpush3.msra.mxu1 %v10767_v54 }
0x403b   :  { %v8488_v40 = vpop.f32.mrb[105].mxu0 }
0x403c   :  { %12518 = vmatprep.mubr.msk.f32.mxu1 %vm3283_vm7, %v8488_v40 }
0x403d   :  { %12519 = vmatmul.mubr.msk.f32.gmra.mrb[70].mxu1 %vm3283_vm7, %v12504_v14 }
0x403e   :  { %v12531_v24 = vpop.f32.mrb[106].mxu0 }
0x403f   :  { %v8759_v58 = vpop.f32.mrb[107].mxu0 }
0x4040   :  { %12537 = vmatprep.mubr.msk.f32.mxu1 %vm3283_vm7, %v8759_v58 }
0x4041   :  { %12538 = vmatmul.mubr.msk.f32.vlgmr.msra.gmra.mrb[68].mxu1 %vm3283_vm7, %v12531_v24 }
0x4042   :  { %v12534_v60 = vpop.f32.mrb[108].mxu0 }
0x4043   :  { %v8769_v61 = vpop.f32.mrb[109].mxu0 }
0x4044   :  { %12540 = vmatprep.mubr.msk.f32.mxu1 %vm3283_vm7, %v8769_v61 }
0x4045   :  { %12541 = vmatmul.mubr.msk.f32.gmra.mrb[70].mxu1 %vm3283_vm7, %v12534_v60 }
0x4114   :  { %v12539_v41 = vpop.f32.mrb[68].mxu1 }
0x4115   :  { %v8887_v44 = vadd.f32 %v12539_v41, %v10772_v62  ;;  %v8857_v3 = vpop.f32.mrb[69].mxu1 }
0x4116   :  { %v8886_v13 = vadd.f32 %v10772_v62, %v8857_v3 }
0x4117   :  { %v8897_v15 = vmul.f32 %v10773_v63, %v8887_v44 }
0x4118   :  { %v8896_v18 = vmul.f32 %v10773_v63, %v8886_v13  ;;  %v12542_v28 = vpop.f32.mrb[70].mxu1  ;;  %v9784_v13 = vld [vmem:[%s15320_s1] sm:$0xf] }
0x4119   :  { %v8907_v45 = vadd.f32 %v10774_v42, %v8897_v15  ;;  %v8889_v33 = vadd.f32 %v12542_v28, %v10772_v62  ;;  %v8867_v46 = vpop.f32.mrb[71].mxu1  ;;  %v10825_v15 = vld [vmem:[%s15321_s9] ss:$0 sm:$0xff] }
0x411a   :  { %v8906_v30 = vadd.f32 %v10774_v42, %v8896_v18  ;;  %v8888_v20 = vadd.f32 %v10772_v62, %v8867_v46  ;;  %v10826_v18 = vld [vmem:[%s15322_s15] ss:$0 sm:$0xff] }
0x411b   :  { %v8899_v1 = vmul.f32 %v10773_v63, %v8889_v33  ;;  %v10827_v46 = vld [vmem:[%s15323_s2] ss:$0 sm:$0xff] }
0x411c   :  { %v8898_v38 = vmul.f32 %v10773_v63, %v8888_v20  ;;  %v13231_v43 = vpack.c.bf16 %v8907_v45, %v8906_v30 }
0x411d   :  { %v8909_v2 = vadd.f32 %v10774_v42, %v8899_v1 }
0x411e   :  { %v8908_v6 = vadd.f32 %v10774_v42, %v8898_v38  ;;  %13232 = vmatprep.subr.bf16.mxu0 %v13231_v43  ;;  %v10836_v42 = vld [vmem:[%s15320_s1 + $0x4] sm:$0xf] }
0x411f   :  { %13234 = vmatpush3.bf16.msra.mxu0 %v13231_v43 }
0x4120   :  { %v13235_v31 = vpack.c.bf16 %v8909_v2, %v8908_v6 }
0x4122   :  { %13236 = vmatprep.subr.bf16.mxu0 %v13235_v31 }
0x4123   :  { %13238 = vmatpush3.bf16.msra.mxu0 %v13235_v31 }
0x4126   :  { %12552 = vmatmul.mubr.msk.f32.vlgmr.msra.gmra.mrb[110].mxu0 %vm265_vm1, %v14544_v36  ;;  %v10791_v36 = vld [vmem:[%s15319_s28 + $0x8] sm:$0xff] }
0x4127   :  { %12554 = vmatprep.mubr.msk.f32.mxu0 %vm265_vm1, %v14621_v56  ;;  %12591 = vmatprep.subr.mxu1 %v10791_v36  ;;  %v9123_v56 = vld [vmem:[%s15319_s28] sm:$0xff] }
0x4128   :  { %12592 = vmatpush3.msra.mxu1 %v10791_v36 }
0x4129   :  { %12605 = vmatprep.subr.mxu1 %v9123_v56 }
0x412a   :  { %12555 = vmatmul.mubr.msk.f32.gmra.mrb[112].mxu0 %vm265_vm1, %v14628_v57 }
0x412b   :  { %12557 = vmatprep.mubr.msk.f32.mxu0 %vm265_vm1, %v14745_v47 }
0x412e   :  { %12558 = vmatmul.mubr.msk.f32.gmra.mrb[114].mxu0 %vm265_vm1, %v14756_v22 }
0x412f   :  { %12560 = vmatprep.mubr.msk.f32.mxu0 %vm265_vm1, %v14759_v48 }
0x4132   :  { %12561 = vmatmul.mubr.msk.f32.gmra.mrb[116].mxu0 %vm265_vm1, %v14766_v21 }
0x4133   :  { %12579 = vmatprep.mubr.msk.f32.mxu0 %vm5502_vm11, %v14551_v39 }
0x41f9   :  { %v12553_v57 = vpop.f32.mrb[110].mxu0 }
0x41fa   :  { %v8976_v0 = vpop.f32.mrb[111].mxu0 }
0x41fb   :  { %v13239_v47 = vpack.c.bf16 %v12553_v57, %v8976_v0  ;;  %12593 = vmatprep.mubr.msk.f32.mxu1 %vm3283_vm7, %v8976_v0 }
0x41fc   :  { %12594 = vmatmul.mubr.msk.f32.vlgmr.msra.gmra.mrb[72].mxu1 %vm3283_vm7, %v12553_v57 }
0x41fd   :  { %v12556_v22 = vpop.f32.mrb[112].mxu0  ;;  %13240 = vmatprep.subr.bf16.mxu0 %v13239_v47  ;;  %12606 = vmatpush3.msra.mxu1 %v9123_v56 }
0x41fe   :  { %v8986_v48 = vpop.f32.mrb[113].mxu0  ;;  %13242 = vmatpush3.bf16.msra.mxu0 %v13239_v47  ;;  %12647 = vmatprep.subr.mxu1 %v10816_v19 }
0x41ff   :  { %v13243_v21 = vpack.c.bf16 %v12556_v22, %v8986_v48  ;;  %12596 = vmatprep.mubr.msk.f32.mxu1 %vm3283_vm7, %v8986_v48 }
0x4200   :  { %12597 = vmatmul.mubr.msk.f32.gmra.mrb[74].mxu1 %vm3283_vm7, %v12556_v22 }
0x4201   :  { %v12559_v32 = vpop.f32.mrb[114].mxu0  ;;  %13244 = vmatprep.subr.bf16.mxu0 %v13243_v21 }
0x4202   :  { %v8996_v35 = vpop.f32.mrb[115].mxu0  ;;  %13246 = vmatpush3.bf16.msra.mxu0 %v13243_v21 }
0x4203   :  { %v13247_v37 = vpack.c.bf16 %v12559_v32, %v8996_v35  ;;  %12599 = vmatprep.mubr.msk.f32.mxu1 %vm3283_vm7, %v8996_v35 }
0x4204   :  { %12600 = vmatmul.mubr.msk.f32.gmra.mrb[76].mxu1 %vm3283_vm7, %v12559_v32 }
0x4205   :  { %v12562_v23 = vpop.f32.mrb[116].mxu0  ;;  %13248 = vmatprep.subr.bf16.mxu0 %v13247_v37 }
0x4206   :  { %v9006_v59 = vpop.f32.mrb[117].mxu0  ;;  %13250 = vmatpush3.bf16.msra.mxu0 %v13247_v37 }
0x4207   :  { %v13251_v49 = vpack.c.bf16 %v12562_v23, %v9006_v59  ;;  %12602 = vmatprep.mubr.msk.f32.mxu1 %vm3283_vm7, %v9006_v59 }
0x4208   :  { %12603 = vmatmul.mubr.msk.f32.gmra.mrb[78].mxu1 %vm3283_vm7, %v12562_v23 }
0x4209   :  { %13252 = vmatprep.subr.bf16.mxu0 %v13251_v49 }
0x420a   :  { %13254 = vmatpush3.bf16.msra.mxu0 %v13251_v49 }
0x420b   :  { %13256 = vmatprep.subr.bf16.mxu0 %v13239_v47 }
0x420d   :  { %12580 = vmatmul.mubr.msk.f32.vlgmr.msra.gmra.mrb[118].mxu0 %vm5502_vm11, %v14565_v51 }
0x420e   :  { %13258 = vmatpush3.bf16.msra.mxu0 %v13239_v47  ;;  %12582 = vmatprep.mubr.msk.f32.mxu0 %vm5502_vm11, %v14640_v5 }
0x420f   :  { %13260 = vmatprep.subr.bf16.mxu0 %v13243_v21 }
0x4211   :  { %12583 = vmatmul.mubr.msk.f32.gmra.mrb[120].mxu0 %vm5502_vm11, %v14648_v7 }
0x4212   :  { %13262 = vmatpush3.bf16.msra.mxu0 %v13243_v21  ;;  %12585 = vmatprep.mubr.msk.f32.mxu0 %vm5502_vm11, %v14782_v4 }
0x4213   :  { %13264 = vmatprep.subr.bf16.mxu0 %v13247_v37 }
0x4215   :  { %12586 = vmatmul.mubr.msk.f32.gmra.mrb[122].mxu0 %vm5502_vm11, %v14792_v8 }
0x4216   :  { %13266 = vmatpush3.bf16.msra.mxu0 %v13247_v37  ;;  %12588 = vmatprep.mubr.msk.f32.mxu0 %vm5502_vm11, %v14795_v11 }
0x4217   :  { %13268 = vmatprep.subr.bf16.mxu0 %v13251_v49 }
0x4219   :  { %12589 = vmatmul.mubr.msk.f32.gmra.mrb[124].mxu0 %vm5502_vm11, %v14803_v12 }
0x421a   :  { %13270 = vmatpush3.bf16.msra.mxu0 %v13251_v49  ;;  %12635 = vmatprep.mubr.msk.f32.mxu0 %vm5502_vm11, %v14569_v52 }
0x421d   :  { %12636 = vmatmul.mubr.msk.f32.vlgmr.msra.gmra.mrb[126].mxu0 %vm5502_vm11, %v14574_v53 }
0x421e   :  { %12638 = vmatprep.mubr.msk.f32.mxu0 %vm5502_vm11, %v14656_v9 }
0x4221   :  { %12639 = vmatmul.mubr.msk.f32.gmra.mrb[128].mxu0 %vm5502_vm11, %v14664_v10 }
0x4222   :  { %12641 = vmatprep.mubr.msk.f32.mxu0 %vm5502_vm11, %v14826_v16 }
0x4225   :  { %12642 = vmatmul.mubr.msk.f32.gmra.mrb[130].mxu0 %vm5502_vm11, %v14836_v25 }
0x4226   :  { %12644 = vmatprep.mubr.msk.f32.mxu0 %vm5502_vm11, %v14839_v26 }
0x4229   :  { %12645 = vmatmul.mubr.msk.f32.gmra.mrb[132].mxu0 %vm5502_vm11, %v14847_v27 }
0x422a   :  { %12677 = vmatprep.mubr.msk.f32.mxu0 %vm5502_vm11, %v14551_v39 }
0x42e0   :  { %v12581_v50 = vpop.f32.mrb[118].mxu0 }
0x42e1   :  { %v9084_v54 = vpop.f32.mrb[119].mxu0 }
0x42e2   :  { %12607 = vmatprep.mubr.msk.f32.mxu1 %vm3283_vm7, %v9084_v54 }
0x42e3   :  { %12608 = vmatmul.mubr.msk.f32.vlgmr.msra.gmra.mrb[72].mxu1 %vm3283_vm7, %v12581_v50 }
0x42e4   :  { %v12584_v55 = vpop.f32.mrb[120].mxu0  ;;  %12648 = vmatpush3.msra.mxu1 %v10816_v19 }
0x42e5   :  { %v9094_v34 = vpop.f32.mrb[121].mxu0  ;;  %12689 = vmatprep.subr.msk.mxu1 %vm6339_vm6, %v10836_v42 }
0x42e6   :  { %12610 = vmatprep.mubr.msk.f32.mxu1 %vm3283_vm7, %v9094_v34 }
0x42e7   :  { %12611 = vmatmul.mubr.msk.f32.gmra.mrb[74].mxu1 %vm3283_vm7, %v12584_v55 }
0x42e8   :  { %v12587_v14 = vpop.f32.mrb[122].mxu0 }
0x42e9   :  { %v9104_v40 = vpop.f32.mrb[123].mxu0 }
0x42ea   :  { %12613 = vmatprep.mubr.msk.f32.mxu1 %vm3283_vm7, %v9104_v40 }
0x42eb   :  { %12614 = vmatmul.mubr.msk.f32.gmra.mrb[76].mxu1 %vm3283_vm7, %v12587_v14 }
0x42ec   :  { %v12590_v39 = vpop.f32.mrb[124].mxu0 }
0x42ed   :  { %v9114_v24 = vpop.f32.mrb[125].mxu0 }
0x42ee   :  { %12616 = vmatprep.mubr.msk.f32.mxu1 %vm3283_vm7, %v9114_v24 }
0x42ef   :  { %12617 = vmatmul.mubr.msk.f32.gmra.mrb[78].mxu1 %vm3283_vm7, %v12590_v39 }
0x42f0   :  { %v12637_v58 = vpop.f32.mrb[126].mxu0 }
0x42f1   :  { %v9449_v60 = vpop.f32.mrb[127].mxu0 }
0x42f2   :  { %12649 = vmatprep.mubr.msk.f32.mxu1 %vm3283_vm7, %v9449_v60 }
0x42f3   :  { %12650 = vmatmul.mubr.msk.f32.vlgmr.msra.gmra.mrb[72].mxu1 %vm3283_vm7, %v12637_v58 }
0x42f4   :  { %v12640_v61 = vpop.f32.mrb[128].mxu0  ;;  %12690 = vmatpush3.msk.msra.mxu1 %vm6339_vm6, %v10836_v42 }
0x42f5   :  { %v9459_v62 = vpop.f32.mrb[129].mxu0  ;;  %12703 = vmatprep.subr.msk.mxu1 %vm6339_vm6, %v9784_v13 }
0x42f6   :  { %12652 = vmatprep.mubr.msk.f32.mxu1 %vm3283_vm7, %v9459_v62 }
0x42f7   :  { %12653 = vmatmul.mubr.msk.f32.gmra.mrb[74].mxu1 %vm3283_vm7, %v12640_v61 }
0x42f8   :  { %v12643_v63 = vpop.f32.mrb[130].mxu0 }
0x42f9   :  { %v9469_v41 = vpop.f32.mrb[131].mxu0 }
0x42fa   :  { %12655 = vmatprep.mubr.msk.f32.mxu1 %vm3283_vm7, %v9469_v41 }
0x42fb   :  { %12656 = vmatmul.mubr.msk.f32.gmra.mrb[76].mxu1 %vm3283_vm7, %v12643_v63 }
0x42fc   :  { %v12646_v44 = vpop.f32.mrb[132].mxu0 }
0x42fd   :  { %v9479_v3 = vpop.f32.mrb[133].mxu0 }
0x42fe   :  { %12658 = vmatprep.mubr.msk.f32.mxu1 %vm3283_vm7, %v9479_v3 }
0x42ff   :  { %12659 = vmatmul.mubr.msk.f32.gmra.mrb[78].mxu1 %vm3283_vm7, %v12646_v44 }
0x43c6   :  { %v12651_v28 = vpop.f32.mrb[72].mxu1 }
0x43c7   :  { %v9633_v45 = vadd.f32 %v12651_v28, %v10825_v15  ;;  %v9579_v33 = vpop.f32.mrb[73].mxu1 }
0x43c8   :  { %v9632_v30 = vadd.f32 %v10825_v15, %v9579_v33 }
0x43c9   :  { %v9647_v20 = vmul.f32 %v10826_v18, %v9633_v45 }
0x43ca   :  { %v9646_v1 = vmul.f32 %v10826_v18, %v9632_v30  ;;  %v12654_v38 = vpop.f32.mrb[74].mxu1 }
0x43cb   :  { %v9661_v43 = vadd.f32 %v10827_v46, %v9647_v20  ;;  %v9635_v2 = vadd.f32 %v12654_v38, %v10825_v15  ;;  %v9589_v6 = vpop.f32.mrb[75].mxu1  ;;  %v13639_v20 = vld [vmem:[%s14054_s30] ss:$0 sm:$0xff] }
0x43cc   :  { %v9660_v31 = vadd.f32 %v10827_v46, %v9646_v1  ;;  %v9634_v36 = vadd.f32 %v10825_v15, %v9589_v6 }
0x43cd   :  { %v9669_v56 = vmax.f32 %v9661_v43, 0.0  ;;  %v9649_v57 = vmul.f32 %v10826_v18, %v9635_v2 }
0x43ce   :  { %v9668_v0 = vmax.f32 %v9660_v31, 0.0  ;;  %v9648_v47 = vmul.f32 %v10826_v18, %v9634_v36  ;;  %v12657_v22 = vpop.f32.mrb[76].mxu1  ;;  %v13640_v36 = vld [vmem:[%s14059_s3] ss:$0 sm:$0xff] }
0x43cf   :  { %v9663_v48 = vadd.f32 %v10827_v46, %v9649_v57  ;;  %v9637_v21 = vadd.f32 %v12657_v22, %v10825_v15  ;;  %v9599_v32 = vpop.f32.mrb[77].mxu1 }
0x43d0   :  { %v13271_v35 = vpack.c.bf16 %v9669_v56, %v9668_v0  ;;  %v9662_v37 = vadd.f32 %v10827_v46, %v9648_v47  ;;  %v9636_v23 = vadd.f32 %v10825_v15, %v9599_v32  ;;  %12691 = vmatprep.mubr.msk.f32.mxu1 %vm6314_vm8, %v9668_v0 }
0x43d1   :  { %v9671_v59 = vmax.f32 %v9663_v48, 0.0  ;;  %v9651_v49 = vmul.f32 %v10826_v18, %v9637_v21  ;;  %12692 = vmatmul.mubr.msk.f32.vlgmr.msra.gmra.mrb[80].mxu1 %vm6314_vm8, %v9669_v56 }
0x43d2   :  { %v9670_v19 = vmax.f32 %v9662_v37, 0.0  ;;  %v9650_v50 = vmul.f32 %v10826_v18, %v9636_v23  ;;  %v12660_v54 = vpop.f32.mrb[78].mxu1  ;;  %13272 = vmatprep.subr.bf16.mxu0 %v13271_v35  ;;  %12704 = vmatpush3.msk.msra.mxu1 %vm6339_vm6, %v9784_v13 }
0x43d3   :  { %v9665_v55 = vadd.f32 %v10827_v46, %v9651_v49  ;;  %v9639_v34 = vadd.f32 %v12660_v54, %v10825_v15  ;;  %v9609_v14 = vpop.f32.mrb[79].mxu1  ;;  %13274 = vmatpush3.bf16.msra.mxu0 %v13271_v35 }
0x43d4   :  { %v13275_v40 = vpack.c.bf16 %v9671_v59, %v9670_v19  ;;  %v9664_v39 = vadd.f32 %v10827_v46, %v9650_v50  ;;  %v9638_v24 = vadd.f32 %v10825_v15, %v9609_v14  ;;  %12694 = vmatprep.mubr.msk.f32.mxu1 %vm6314_vm8, %v9670_v19 }
0x43d5   :  { %v9673_v58 = vmax.f32 %v9665_v55, 0.0  ;;  %v9653_v60 = vmul.f32 %v10826_v18, %v9639_v34  ;;  %12695 = vmatmul.mubr.msk.f32.gmra.mrb[82].mxu1 %vm6314_vm8, %v9671_v59 }
0x43d6   :  { %v9672_v61 = vmax.f32 %v9664_v39, 0.0  ;;  %v9652_v62 = vmul.f32 %v10826_v18, %v9638_v24  ;;  %13276 = vmatprep.subr.bf16.mxu0 %v13275_v40 }
0x43d7   :  { %v9667_v63 = vadd.f32 %v10827_v46, %v9653_v60  ;;  %13278 = vmatpush3.bf16.msra.mxu0 %v13275_v40 }
0x43d8   :  { %v13279_v41 = vpack.c.bf16 %v9673_v58, %v9672_v61  ;;  %v9666_v44 = vadd.f32 %v10827_v46, %v9652_v62  ;;  %12697 = vmatprep.mubr.msk.f32.mxu1 %vm6314_vm8, %v9672_v61  ;;  %v13638_v46 = vld [vmem:[%s14049_s8] ss:$0 sm:$0xff] }
0x43d9   :  { %v9675_v3 = vmax.f32 %v9667_v63, 0.0  ;;  %12698 = vmatmul.mubr.msk.f32.gmra.mrb[84].mxu1 %vm6314_vm8, %v9673_v58 }
0x43da   :  { %v9674_v42 = vmax.f32 %v9666_v44, 0.0  ;;  %13280 = vmatprep.subr.bf16.mxu0 %v13279_v41 }
0x43db   :  { %13282 = vmatpush3.bf16.msra.mxu0 %v13279_v41 }
0x43dc   :  { %v13283_v13 = vpack.c.bf16 %v9675_v3, %v9674_v42  ;;  %12700 = vmatprep.mubr.msk.f32.mxu1 %vm6314_vm8, %v9674_v42 }
0x43dd   :  { %12701 = vmatmul.mubr.msk.f32.gmra.mrb[86].mxu1 %vm6314_vm8, %v9675_v3 }
0x43de   :  { %13284 = vmatprep.subr.bf16.mxu0 %v13283_v13 }
0x43df   :  { %13286 = vmatpush3.bf16.msra.mxu0 %v13283_v13 }
0x43e0   :  { %13288 = vmatprep.subr.bf16.mxu0 %v13271_v35 }
0x43e2   :  { %12678 = vmatmul.mubr.msk.f32.vlgmr.msra.gmra.mrb[134].mxu0 %vm5502_vm11, %v14565_v51  ;;  %v10863_v51 = vld [vmem:[%s15320_s1 + $0x8] sm:$0xf] }
0x43e3   :  { %13290 = vmatpush3.bf16.msra.mxu0 %v13271_v35  ;;  %12680 = vmatprep.mubr.msk.f32.mxu0 %vm5502_vm11, %v14640_v5 }
0x43e4   :  { %13292 = vmatprep.subr.bf16.mxu0 %v13275_v40  ;;  %12745 = vmatprep.subr.msk.mxu1 %vm6339_vm6, %v10863_v51 }
0x43e6   :  { %12681 = vmatmul.mubr.msk.f32.gmra.mrb[136].mxu0 %vm5502_vm11, %v14648_v7 }
0x43e7   :  { %13294 = vmatpush3.bf16.msra.mxu0 %v13275_v40  ;;  %12683 = vmatprep.mubr.msk.f32.mxu0 %vm5502_vm11, %v14782_v4 }
0x43e8   :  { %13296 = vmatprep.subr.bf16.mxu0 %v13279_v41 }
0x43ea   :  { %12684 = vmatmul.mubr.msk.f32.gmra.mrb[138].mxu0 %vm5502_vm11, %v14792_v8 }
0x43eb   :  { %13298 = vmatpush3.bf16.msra.mxu0 %v13279_v41  ;;  %12686 = vmatprep.mubr.msk.f32.mxu0 %vm5502_vm11, %v14795_v11 }
0x43ec   :  { %13300 = vmatprep.subr.bf16.mxu0 %v13283_v13 }
0x43ee   :  { %12687 = vmatmul.mubr.msk.f32.gmra.mrb[140].mxu0 %vm5502_vm11, %v14803_v12 }
0x43ef   :  { %13302 = vmatpush3.bf16.msra.mxu0 %v13283_v13  ;;  %12733 = vmatprep.mubr.msk.f32.mxu0 %vm5502_vm11, %v14569_v52 }
0x43f2   :  { %12734 = vmatmul.mubr.msk.f32.vlgmr.msra.gmra.mrb[142].mxu0 %vm5502_vm11, %v14574_v53 }
0x43f3   :  { %12736 = vmatprep.mubr.msk.f32.mxu0 %vm5502_vm11, %v14656_v9 }
0x43f6   :  { %12737 = vmatmul.mubr.msk.f32.gmra.mrb[144].mxu0 %vm5502_vm11, %v14664_v10 }
0x43f7   :  { %12739 = vmatprep.mubr.msk.f32.mxu0 %vm5502_vm11, %v14826_v16 }
0x43fa   :  { %12740 = vmatmul.mubr.msk.f32.gmra.mrb[146].mxu0 %vm5502_vm11, %v14836_v25 }
0x43fb   :  { %12742 = vmatprep.mubr.msk.f32.mxu0 %vm5502_vm11, %v14839_v26 }
0x43fe   :  { %12743 = vmatmul.mubr.msk.f32.gmra.mrb[148].mxu0 %vm5502_vm11, %v14847_v27 }
0x44b5   :  { %v12679_v52 = vpop.f32.mrb[134].mxu0 }
0x44b6   :  { %v9745_v53 = vpop.f32.mrb[135].mxu0 }
0x44b7   :  { %12705 = vmatprep.mubr.msk.f32.mxu1 %vm6314_vm8, %v9745_v53 }
0x44b8   :  { %12706 = vmatmul.mubr.msk.f32.vlgmr.msra.gmra.mrb[80].mxu1 %vm6314_vm8, %v12679_v52 }
0x44b9   :  { %v12682_v5 = vpop.f32.mrb[136].mxu0  ;;  %12746 = vmatpush3.msk.msra.mxu1 %vm6339_vm6, %v10863_v51 }
0x44ba   :  { %v9755_v7 = vpop.f32.mrb[137].mxu0 }
0x44bb   :  { %12708 = vmatprep.mubr.msk.f32.mxu1 %vm6314_vm8, %v9755_v7 }
0x44bc   :  { %12709 = vmatmul.mubr.msk.f32.gmra.mrb[82].mxu1 %vm6314_vm8, %v12682_v5 }
0x44bd   :  { %v12685_v9 = vpop.f32.mrb[138].mxu0 }
0x44be   :  { %v9765_v10 = vpop.f32.mrb[139].mxu0 }
0x44bf   :  { %12711 = vmatprep.mubr.msk.f32.mxu1 %vm6314_vm8, %v9765_v10 }
0x44c0   :  { %12712 = vmatmul.mubr.msk.f32.gmra.mrb[84].mxu1 %vm6314_vm8, %v12685_v9 }
0x44c1   :  { %v12688_v4 = vpop.f32.mrb[140].mxu0 }
0x44c2   :  { %v9775_v8 = vpop.f32.mrb[141].mxu0 }
0x44c3   :  { %12714 = vmatprep.mubr.msk.f32.mxu1 %vm6314_vm8, %v9775_v8 }
0x44c4   :  { %12715 = vmatmul.mubr.msk.f32.gmra.mrb[86].mxu1 %vm6314_vm8, %v12688_v4 }
0x44c5   :  { %v12735_v11 = vpop.f32.mrb[142].mxu0 }
0x44c6   :  { %v10116_v12 = vpop.f32.mrb[143].mxu0 }
0x44c7   :  { %12747 = vmatprep.mubr.msk.f32.mxu1 %vm6314_vm8, %v10116_v12 }
0x44c8   :  { %12748 = vmatmul.mubr.msk.f32.vlgmr.msra.gmra.mrb[80].mxu1 %vm6314_vm8, %v12735_v11 }
0x44c9   :  { %v12738_v16 = vpop.f32.mrb[144].mxu0 }
0x44ca   :  { %v10126_v25 = vpop.f32.mrb[145].mxu0 }
0x44cb   :  { %12750 = vmatprep.mubr.msk.f32.mxu1 %vm6314_vm8, %v10126_v25 }
0x44cc   :  { %12751 = vmatmul.mubr.msk.f32.gmra.mrb[82].mxu1 %vm6314_vm8, %v12738_v16 }
0x44cd   :  { %v12741_v26 = vpop.f32.mrb[146].mxu0 }
0x44ce   :  { %v10136_v27 = vpop.f32.mrb[147].mxu0 }
0x44cf   :  { %12753 = vmatprep.mubr.msk.f32.mxu1 %vm6314_vm8, %v10136_v27 }
0x44d0   :  { %12754 = vmatmul.mubr.msk.f32.gmra.mrb[84].mxu1 %vm6314_vm8, %v12741_v26 }
0x44d1   :  { %v12744_v15 = vpop.f32.mrb[148].mxu0 }
0x44d2   :  { %v10146_v18 = vpop.f32.mrb[149].mxu0 }
0x44d3   :  { %12756 = vmatprep.mubr.msk.f32.mxu1 %vm6314_vm8, %v10146_v18 }
0x44d4   :  { %12757 = vmatmul.mubr.msk.f32.gmra.mrb[86].mxu1 %vm6314_vm8, %v12744_v15 }
0x459b   :  { %v12749_v28 = vpop.f32.mrb[80].mxu1 }
0x459c   :  { %v10303_v45 = vadd.f32 %v12749_v28, %v14968_v29  ;;  %v10249_v33 = vpop.f32.mrb[81].mxu1 }
0x459d   :  { %v10302_v30 = vadd.f32 %v13638_v46, %v10249_v33 }
0x459e   :  { %v10317_v1 = vmul.f32 %v13639_v20, %v10303_v45 }
0x459f   :  { %v10316_v38 = vmul.f32 %v13639_v20, %v10302_v30  ;;  %v12752_v43 = vpop.f32.mrb[82].mxu1 }
0x45a0   :  { %v10331_v2 = vadd.f32 %v14973_v17, %v10317_v1  ;;  %v10305_v6 = vadd.f32 %v13638_v46, %v12752_v43  ;;  %v10259_v31 = vpop.f32.mrb[83].mxu1 }
0x45a1   :  { %v10330_v56 = vadd.f32 %v13640_v36, %v10316_v38  ;;  %v10304_v57 = vadd.f32 %v13638_v46, %v10259_v31 }
0x45a2   :  { %10877 = vst.msk [vmem:[%s14064_s27 + $0x48] sm:$0xff] %vm6314_vm8, %v10331_v2  ;;  %v10319_v29 = vmul.f32 %v13639_v20, %v10305_v6 }
0x45a3   :  { %10876 = vst.msk [vmem:[%s14064_s27 + $0x40] sm:$0xff] %vm6314_vm8, %v10330_v56  ;;  %v10318_v0 = vmul.f32 %v13639_v20, %v10304_v57  ;;  %v12755_v47 = vpop.f32.mrb[84].mxu1 }
0x45a4   :  { %v10333_v22 = vadd.f32 %v13640_v36, %v10319_v29  ;;  %v10307_v48 = vadd.f32 %v13638_v46, %v12755_v47  ;;  %v10269_v21 = vpop.f32.mrb[85].mxu1 }
0x45a5   :  { %v10332_v17 = vadd.f32 %v13640_v36, %v10318_v0  ;;  %v10306_v32 = vadd.f32 %v13638_v46, %v10269_v21 }
0x45a6   :  { %10879 = vst.msk [vmem:[%s14064_s27 + $0x58] sm:$0xff] %vm6314_vm8, %v10333_v22  ;;  %v10321_v35 = vmul.f32 %v13639_v20, %v10307_v48 }
0x45a7   :  { %10878 = vst.msk [vmem:[%s14064_s27 + $0x50] sm:$0xff] %vm6314_vm8, %v10332_v17  ;;  %v10320_v37 = vmul.f32 %v13639_v20, %v10306_v32  ;;  %v12758_v23 = vpop.f32.mrb[86].mxu1 }
0x45a8   :  { %v10335_v59 = vadd.f32 %v13640_v36, %v10321_v35  ;;  %v10309_v49 = vadd.f32 %v13638_v46, %v12758_v23  ;;  %v10279_v19 = vpop.f32.mrb[87].mxu1 }
0x45a9   :  { %v10334_v50 = vadd.f32 %v13640_v36, %v10320_v37  ;;  %v10308_v54 = vadd.f32 %v13638_v46, %v10279_v19 }
0x45aa   :  { %10881 = vst.msk [vmem:[%s14064_s27 + $0x68] sm:$0xff] %vm6314_vm8, %v10335_v59  ;;  %v10323_v55 = vmul.f32 %v13639_v20, %v10309_v49 }
0x45ab   :  { %10880 = vst.msk [vmem:[%s14064_s27 + $0x60] sm:$0xff] %vm6314_vm8, %v10334_v50  ;;  %v10322_v34 = vmul.f32 %v13639_v20, %v10308_v54 }
0x45ac   :  { %v10337_v14 = vadd.f32 %v13640_v36, %v10323_v55 }
0x45ad   :  { %v10336_v40 = vadd.f32 %v13640_v36, %v10322_v34 }
0x45ae   :  { %10883 = vst.msk [vmem:[%s14064_s27 + $0x78] sm:$0xff] %vm6314_vm8, %v10337_v14 }
0x45af   :  { %10882 = vst.msk [vmem:[%s14064_s27 + $0x70] sm:$0xff] %vm6314_vm8, %v10336_v40 }
0x45b0   :  { %10351 = vsyncpa [#allocation4], 1 }
0x45b1   :  { %10352 = vsyncpa [#allocation6], 1 }
0x45b2   :  { %10353 = vsyncpa [#allocation9], 1 }
0x45b3   :  { %10354 = vsyncpa [#allocation12], 1 }
0x45b4   :  { %10355 = vsyncpa [#allocation15], 1 }

</bundles_post_ra>
